<compile_context>
chip_gen: v6e
topology: v6e:2x2x1
jax: 0.10.0
libtpu: 0.0.40
codegen_flags: <defaults>
</compile_context>

<pallas_src>
import functools
import math

import jax
import jax.numpy as jnp
from jax.experimental import pallas as pl
from jax.experimental.pallas import tpu as pltpu


# ---------------------------------------------------------------------------
# Shared math helpers (used both inside the Pallas kernel and by the pure-JAX
# reference, so the two paths compute identical formulas).
# ---------------------------------------------------------------------------

def _layer_norm(x, w, b, eps=1e-5):
    mean = jnp.mean(x, axis=-1, keepdims=True)
    xc = x - mean
    var = jnp.mean(xc * xc, axis=-1, keepdims=True)
    return xc * jax.lax.rsqrt(var + eps) * w + b


def _softmax_last(x):
    m = jnp.max(x, axis=-1, keepdims=True)
    e = jnp.exp(x - m)
    return e / jnp.sum(e, axis=-1, keepdims=True)


def _softplus(x):
    # Matches F.softplus(beta=1, threshold=20).
    return jnp.where(x > 20.0, x, jnp.log(1.0 + jnp.exp(jnp.minimum(x, 20.0))))


def _mha(q_in, kv_in, wqkv, bqkv, wo, bo, *, nhead):
    """PyTorch-style MultiheadAttention (packed in_proj, no mask, no dropout).

    q_in: (S, E) queries; kv_in: (S_kv, E) keys/values.
    wqkv: (E, 3E) packed q|k|v projection, stored so the math is x @ W.
    """
    e = q_in.shape[-1]
    dh = e // nhead
    q = jnp.dot(q_in, wqkv[:, 0 * e:1 * e], preferred_element_type=jnp.float32) + bqkv[:, 0 * e:1 * e]
    k = jnp.dot(kv_in, wqkv[:, 1 * e:2 * e], preferred_element_type=jnp.float32) + bqkv[:, 1 * e:2 * e]
    v = jnp.dot(kv_in, wqkv[:, 2 * e:3 * e], preferred_element_type=jnp.float32) + bqkv[:, 2 * e:3 * e]
    scale = 1.0 / math.sqrt(dh)
    heads = []
    for h in range(nhead):                       # static unroll; nhead is small
        qh = q[:, h * dh:(h + 1) * dh] * scale
        kh = k[:, h * dh:(h + 1) * dh]
        vh = v[:, h * dh:(h + 1) * dh]
        # q @ k^T without an explicit transpose.
        s = jax.lax.dot_general(qh, kh, (((1,), (1,)), ((), ())),
                                preferred_element_type=jnp.float32)
        p = _softmax_last(s)
        heads.append(jnp.dot(p, vh, preferred_element_type=jnp.float32))
    attn = jnp.concatenate(heads, axis=-1)
    return jnp.dot(attn, wo, preferred_element_type=jnp.float32) + bo


def _ffn(x, w1, b1, w2, b2):
    h = jnp.maximum(jnp.dot(x, w1, preferred_element_type=jnp.float32) + b1, 0.0)
    return jnp.dot(h, w2, preferred_element_type=jnp.float32) + b2


def _encoder_layer_math(src, p, *, nhead):
    # Post-LN TransformerEncoderLayer (norm_first=False, activation=relu).
    sa = _mha(src, src, p["wqkv"], p["bqkv"], p["wo"], p["bo"], nhead=nhead)
    src = _layer_norm(src + sa, p["ln1w"], p["ln1b"])
    ff = _ffn(src, p["w1"], p["b1"], p["w2"], p["b2"])
    return _layer_norm(src + ff, p["ln2w"], p["ln2b"])


def _decoder_layer_math(tgt, mem, p, *, nhead):
    # Post-LN TransformerDecoderLayer: self-attn, cross-attn, FFN.
    sa = _mha(tgt, tgt, p["sa_wqkv"], p["sa_bqkv"], p["sa_wo"], p["sa_bo"], nhead=nhead)
    tgt = _layer_norm(tgt + sa, p["ln1w"], p["ln1b"])
    ca = _mha(tgt, mem, p["ca_wqkv"], p["ca_bqkv"], p["ca_wo"], p["ca_bo"], nhead=nhead)
    tgt = _layer_norm(tgt + ca, p["ln2w"], p["ln2b"])
    ff = _ffn(tgt, p["w1"], p["b1"], p["w2"], p["b2"])
    return _layer_norm(tgt + ff, p["ln3w"], p["ln3b"])


_ENC_LAYER_KEYS = ("wqkv", "bqkv", "wo", "bo", "w1", "b1", "w2", "b2",
                   "ln1w", "ln1b", "ln2w", "ln2b")
_DEC_LAYER_KEYS = ("sa_wqkv", "sa_bqkv", "sa_wo", "sa_bo",
                   "ca_wqkv", "ca_bqkv", "ca_wo", "ca_bo",
                   "w1", "b1", "w2", "b2",
                   "ln1w", "ln1b", "ln2w", "ln2b", "ln3w", "ln3b")

_GLOBAL_PRE_KEYS = ("enc_w_noise", "enc_w_x", "enc_w_cond", "enc_b", "pe0")
_GLOBAL_POST_KEYS = ("dec_norm_w", "dec_norm_b", "dec_out_w", "dec_out_b", "add_vector")


def _flatten_params(params):
    """Deterministic flattening of the param pytree for positional kernel args."""
    flat = [params[k] for k in _GLOBAL_PRE_KEYS]
    for lp in params["enc_layers"]:
        flat += [lp[k] for k in _ENC_LAYER_KEYS]
    flat += [params["enc_norm_w"], params["enc_norm_b"]]
    for lp in params["dec_layers"]:
        flat += [lp[k] for k in _DEC_LAYER_KEYS]
    flat += [params[k] for k in _GLOBAL_POST_KEYS]
    return flat


# ---------------------------------------------------------------------------
# Single fused Pallas kernel: the whole generator forward in one program.
# ---------------------------------------------------------------------------

def _generator_kernel(nhead, nonneg_end, n_enc, n_dec,
                      noise_ref, x_ref, cond_ref, *refs):
    *w_refs, o_ref = refs
    vals = [r[...] for r in w_refs]
    idx = 0

    def take(n):
        nonlocal idx
        out = vals[idx:idx + n]
        idx += n
        return out

    wn, wx, wc, b_enc, pe0 = take(len(_GLOBAL_PRE_KEYS))
    enc_layers = [dict(zip(_ENC_LAYER_KEYS, take(len(_ENC_LAYER_KEYS))))
                  for _ in range(n_enc)]
    enc_nw, enc_nb = take(2)
    dec_layers = [dict(zip(_DEC_LAYER_KEYS, take(len(_DEC_LAYER_KEYS))))
                  for _ in range(n_dec)]
    dec_nw, dec_nb, w_out, b_out, add_vec = take(len(_GLOBAL_POST_KEYS))

    # Fused concat + encoder Linear + positional encoding:
    # [noise | x | cond] @ W  ==  noise@Wn + x@Wx + cond@Wc  (no HBM concat).
    h = (jnp.dot(noise_ref[...], wn, preferred_element_type=jnp.float32)
         + jnp.dot(x_ref[...], wx, preferred_element_type=jnp.float32)
         + jnp.dot(cond_ref[...], wc, preferred_element_type=jnp.float32)
         + b_enc + pe0)

    # Transformer encoder stack + final encoder LayerNorm -> memory.
    mem = h
    for p in enc_layers:
        mem = _encoder_layer_math(mem, p, nhead=nhead)
    mem = _layer_norm(mem, enc_nw, enc_nb)

    # Transformer decoder stack (tgt starts as the same encoded tensor: transformer(x, x)).
    tgt = h
    for p in dec_layers:
        tgt = _decoder_layer_math(tgt, mem, p, nhead=nhead)
    tgt = _layer_norm(tgt, dec_nw, dec_nb)

    # Output Linear + softplus/identity split + add_vector (lane-dense single store).
    z = jnp.dot(tgt, w_out, preferred_element_type=jnp.float32) + b_out
    col = jax.lax.broadcasted_iota(jnp.int32, z.shape, 1)
    o_ref[...] = jnp.where(col < nonneg_end, _softplus(z), z) + add_vec


def generator_transformer_forward(noise, x, cond, params, *, nhead, nonnegative_end_ind):
    B = noise.shape[0]
    out_features = params["dec_out_b"].shape[-1]
    flat = _flatten_params(params)

    kernel = functools.partial(_generator_kernel, nhead, nonnegative_end_ind,
                               len(params["enc_layers"]), len(params["dec_layers"]))

    vmem_spec = pl.BlockSpec(memory_space=pltpu.MemorySpace.VMEM)
    args = (noise, x, cond, *flat)
    return pl.pallas_call(
        kernel,
        out_shape=jax.ShapeDtypeStruct((B, out_features), jnp.float32),
        in_specs=[vmem_spec] * len(args),
        out_specs=vmem_spec,
    )(*args)


# ---------------------------------------------------------------------------
# Pure-JAX reference (same math, no Pallas) for correctness checking.
# ---------------------------------------------------------------------------

def reference_forward(noise, x, cond, params, *, nhead, nonnegative_end_ind):
    xcat = jnp.concatenate((noise, x, cond), axis=1)
    w_enc = jnp.concatenate((params["enc_w_noise"], params["enc_w_x"], params["enc_w_cond"]), axis=0)
    h = jnp.dot(xcat, w_enc, preferred_element_type=jnp.float32) + params["enc_b"] + params["pe0"]
    mem = h
    for lp in params["enc_layers"]:
        mem = _encoder_layer_math(mem, lp, nhead=nhead)
    mem = _layer_norm(mem, params["enc_norm_w"], params["enc_norm_b"])
    tgt = h
    for lp in params["dec_layers"]:
        tgt = _decoder_layer_math(tgt, mem, lp, nhead=nhead)
    tgt = _layer_norm(tgt, params["dec_norm_w"], params["dec_norm_b"])
    z = jnp.dot(tgt, params["dec_out_w"], preferred_element_type=jnp.float32) + params["dec_out_b"]
    res = _softplus(z[:, :nonnegative_end_ind])
    if nonnegative_end_ind != z.shape[1]:
        res = jnp.concatenate((res, z[:, nonnegative_end_ind:]), axis=1)
    return res + params["add_vector"]


# ---------------------------------------------------------------------------
# Parameter construction
# ---------------------------------------------------------------------------

def init_params(key, *, noise_dim, in_features, cond_dim, out_features, d_model,
                dim_feedforward, num_encoder_layers, num_decoder_layers, add_vector):
    keys = [key]

    def rand(shape, scale=0.1):
        keys[0], sub = jax.random.split(keys[0])
        return scale * jax.random.normal(sub, shape, jnp.float32)

    E, FF = d_model, dim_feedforward

    def enc_layer():
        return {
            "wqkv": rand((E, 3 * E)), "bqkv": rand((1, 3 * E)),
            "wo": rand((E, E)), "bo": rand((1, E)),
            "w1": rand((E, FF)), "b1": rand((1, FF)),
            "w2": rand((FF, E), scale=0.02), "b2": rand((1, E)),
            "ln1w": jnp.ones((1, E)), "ln1b": jnp.zeros((1, E)),
            "ln2w": jnp.ones((1, E)), "ln2b": jnp.zeros((1, E)),
        }

    def dec_layer():
        return {
            "sa_wqkv": rand((E, 3 * E)), "sa_bqkv": rand((1, 3 * E)),
            "sa_wo": rand((E, E)), "sa_bo": rand((1, E)),
            "ca_wqkv": rand((E, 3 * E)), "ca_bqkv": rand((1, 3 * E)),
            "ca_wo": rand((E, E)), "ca_bo": rand((1, E)),
            "w1": rand((E, FF)), "b1": rand((1, FF)),
            "w2": rand((FF, E), scale=0.02), "b2": rand((1, E)),
            "ln1w": jnp.ones((1, E)), "ln1b": jnp.zeros((1, E)),
            "ln2w": jnp.ones((1, E)), "ln2b": jnp.zeros((1, E)),
            "ln3w": jnp.ones((1, E)), "ln3b": jnp.zeros((1, E)),
        }

    # Positional encoding row 0 (sequence position 0): [sin(0), cos(0), ...] = [0,1,0,1,...]
    div = jnp.exp(jnp.arange(0, E, 2, dtype=jnp.float32) * (-math.log(10000.0) / E))
    pe0 = jnp.zeros((1, E), jnp.float32)
    pe0 = pe0.at[0, 0::2].set(jnp.sin(0.0 * div))
    pe0 = pe0.at[0, 1::2].set(jnp.cos(0.0 * div))

    return {
        "enc_w_noise": rand((noise_dim, E)),
        "enc_w_x": rand((in_features, E)),
        "enc_w_cond": rand((cond_dim, E)),
        "enc_b": rand((1, E)),
        "pe0": pe0,
        "enc_layers": [enc_layer() for _ in range(num_encoder_layers)],
        "enc_norm_w": jnp.ones((1, E)), "enc_norm_b": jnp.zeros((1, E)),
        "dec_layers": [dec_layer() for _ in range(num_decoder_layers)],
        "dec_norm_w": jnp.ones((1, E)), "dec_norm_b": jnp.zeros((1, E)),
        "dec_out_w": rand((E, out_features)),
        "dec_out_b": rand((1, out_features)),
        "add_vector": jnp.asarray(add_vector, jnp.float32).reshape(1, -1),
    }


if __name__ == "__main__":
    # Small deterministic config consistent with the module's __init__/forward.
    B = 8
    NOISE_DIM = 8
    IN_FEATURES = 8
    COND_DIM = 8
    OUT_FEATURES = 16
    D_MODEL = 32
    NHEAD = 4
    NUM_ENCODER_LAYERS = 1
    NUM_DECODER_LAYERS = 1
    DIM_FEEDFORWARD = 2048          # nn.Transformer default
    NONNEGATIVE_END_IND = 8
    ADD_VECTOR = [0.1 * i for i in range(OUT_FEATURES)]

    key = jax.random.PRNGKey(0)
    k_noise, k_x, k_cond, k_params = jax.random.split(key, 4)
    noise = jax.random.normal(k_noise, (B, NOISE_DIM), jnp.float32)
    x_in = jax.random.normal(k_x, (B, IN_FEATURES), jnp.float32)
    cond = jax.random.normal(k_cond, (B, COND_DIM), jnp.float32)

    params = init_params(
        k_params, noise_dim=NOISE_DIM, in_features=IN_FEATURES, cond_dim=COND_DIM,
        out_features=OUT_FEATURES, d_model=D_MODEL, dim_feedforward=DIM_FEEDFORWARD,
        num_encoder_layers=NUM_ENCODER_LAYERS, num_decoder_layers=NUM_DECODER_LAYERS,
        add_vector=ADD_VECTOR)

    fwd = jax.jit(generator_transformer_forward,
                  static_argnames=("nhead", "nonnegative_end_ind"))
    out = fwd(noise, x_in, cond, params,
              nhead=NHEAD, nonnegative_end_ind=NONNEGATIVE_END_IND)
    out = jax.block_until_ready(out)

    with jax.default_matmul_precision("highest"):
        ref = reference_forward(noise, x_in, cond, params,
                                nhead=NHEAD, nonnegative_end_ind=NONNEGATIVE_END_IND)
    ref = jax.block_until_ready(ref)

    assert out.shape == (B, OUT_FEATURES)
    max_err = float(jnp.max(jnp.abs(out - ref)))
    assert jnp.allclose(out, ref, atol=2e-3, rtol=2e-3), f"max abs err = {max_err}"

    print("KERNEL_OK")
</pallas_src>

<mosaic_0001>
module attributes {stable_mosaic.version = 11 : i64} {
  func.func @_generator_kernel(%arg0: memref<8x8xf32, #tpu.memory_space<vmem>>, %arg1: memref<8x8xf32, #tpu.memory_space<vmem>>, %arg2: memref<8x8xf32, #tpu.memory_space<vmem>>, %arg3: memref<8x32xf32, #tpu.memory_space<vmem>>, %arg4: memref<8x32xf32, #tpu.memory_space<vmem>>, %arg5: memref<8x32xf32, #tpu.memory_space<vmem>>, %arg6: memref<1x32xf32, #tpu.memory_space<vmem>>, %arg7: memref<1x32xf32, #tpu.memory_space<vmem>>, %arg8: memref<32x96xf32, #tpu.memory_space<vmem>>, %arg9: memref<1x96xf32, #tpu.memory_space<vmem>>, %arg10: memref<32x32xf32, #tpu.memory_space<vmem>>, %arg11: memref<1x32xf32, #tpu.memory_space<vmem>>, %arg12: memref<32x2048xf32, #tpu.memory_space<vmem>>, %arg13: memref<1x2048xf32, #tpu.memory_space<vmem>>, %arg14: memref<2048x32xf32, #tpu.memory_space<vmem>>, %arg15: memref<1x32xf32, #tpu.memory_space<vmem>>, %arg16: memref<1x32xf32, #tpu.memory_space<vmem>>, %arg17: memref<1x32xf32, #tpu.memory_space<vmem>>, %arg18: memref<1x32xf32, #tpu.memory_space<vmem>>, %arg19: memref<1x32xf32, #tpu.memory_space<vmem>>, %arg20: memref<1x32xf32, #tpu.memory_space<vmem>>, %arg21: memref<1x32xf32, #tpu.memory_space<vmem>>, %arg22: memref<32x96xf32, #tpu.memory_space<vmem>>, %arg23: memref<1x96xf32, #tpu.memory_space<vmem>>, %arg24: memref<32x32xf32, #tpu.memory_space<vmem>>, %arg25: memref<1x32xf32, #tpu.memory_space<vmem>>, %arg26: memref<32x96xf32, #tpu.memory_space<vmem>>, %arg27: memref<1x96xf32, #tpu.memory_space<vmem>>, %arg28: memref<32x32xf32, #tpu.memory_space<vmem>>, %arg29: memref<1x32xf32, #tpu.memory_space<vmem>>, %arg30: memref<32x2048xf32, #tpu.memory_space<vmem>>, %arg31: memref<1x2048xf32, #tpu.memory_space<vmem>>, %arg32: memref<2048x32xf32, #tpu.memory_space<vmem>>, %arg33: memref<1x32xf32, #tpu.memory_space<vmem>>, %arg34: memref<1x32xf32, #tpu.memory_space<vmem>>, %arg35: memref<1x32xf32, #tpu.memory_space<vmem>>, %arg36: memref<1x32xf32, #tpu.memory_space<vmem>>, %arg37: memref<1x32xf32, #tpu.memory_space<vmem>>, %arg38: memref<1x32xf32, #tpu.memory_space<vmem>>, %arg39: memref<1x32xf32, #tpu.memory_space<vmem>>, %arg40: memref<1x32xf32, #tpu.memory_space<vmem>>, %arg41: memref<1x32xf32, #tpu.memory_space<vmem>>, %arg42: memref<32x16xf32, #tpu.memory_space<vmem>>, %arg43: memref<1x16xf32, #tpu.memory_space<vmem>>, %arg44: memref<1x16xf32, #tpu.memory_space<vmem>>, %arg45: memref<8x16xf32, #tpu.memory_space<vmem>>) attributes {dimension_semantics = [], scalar_prefetch = 0 : i64, scratch_operands = 0 : i64, tpu.core_type = #tpu.core_type<tc>} {
    %c0 = arith.constant 0 : index
    %c0_0 = arith.constant 0 : index
    %0 = vector.load %arg3[%c0, %c0_0] : memref<8x32xf32, #tpu.memory_space<vmem>>, vector<8x32xf32>
    %c0_1 = arith.constant 0 : index
    %c0_2 = arith.constant 0 : index
    %1 = vector.load %arg4[%c0_1, %c0_2] : memref<8x32xf32, #tpu.memory_space<vmem>>, vector<8x32xf32>
    %c0_3 = arith.constant 0 : index
    %c0_4 = arith.constant 0 : index
    %2 = vector.load %arg5[%c0_3, %c0_4] : memref<8x32xf32, #tpu.memory_space<vmem>>, vector<8x32xf32>
    %c0_5 = arith.constant 0 : index
    %c0_6 = arith.constant 0 : index
    %3 = vector.load %arg6[%c0_5, %c0_6] : memref<1x32xf32, #tpu.memory_space<vmem>>, vector<1x32xf32>
    %c0_7 = arith.constant 0 : index
    %c0_8 = arith.constant 0 : index
    %4 = vector.load %arg7[%c0_7, %c0_8] : memref<1x32xf32, #tpu.memory_space<vmem>>, vector<1x32xf32>
    %c0_9 = arith.constant 0 : index
    %c0_10 = arith.constant 0 : index
    %5 = vector.load %arg8[%c0_9, %c0_10] : memref<32x96xf32, #tpu.memory_space<vmem>>, vector<32x96xf32>
    %c0_11 = arith.constant 0 : index
    %c0_12 = arith.constant 0 : index
    %6 = vector.load %arg9[%c0_11, %c0_12] : memref<1x96xf32, #tpu.memory_space<vmem>>, vector<1x96xf32>
    %c0_13 = arith.constant 0 : index
    %c0_14 = arith.constant 0 : index
    %7 = vector.load %arg10[%c0_13, %c0_14] : memref<32x32xf32, #tpu.memory_space<vmem>>, vector<32x32xf32>
    %c0_15 = arith.constant 0 : index
    %c0_16 = arith.constant 0 : index
    %8 = vector.load %arg11[%c0_15, %c0_16] : memref<1x32xf32, #tpu.memory_space<vmem>>, vector<1x32xf32>
    %c0_17 = arith.constant 0 : index
    %c0_18 = arith.constant 0 : index
    %9 = vector.load %arg12[%c0_17, %c0_18] : memref<32x2048xf32, #tpu.memory_space<vmem>>, vector<32x2048xf32>
    %c0_19 = arith.constant 0 : index
    %c0_20 = arith.constant 0 : index
    %10 = vector.load %arg13[%c0_19, %c0_20] : memref<1x2048xf32, #tpu.memory_space<vmem>>, vector<1x2048xf32>
    %c0_21 = arith.constant 0 : index
    %c0_22 = arith.constant 0 : index
    %11 = vector.load %arg14[%c0_21, %c0_22] : memref<2048x32xf32, #tpu.memory_space<vmem>>, vector<2048x32xf32>
    %c0_23 = arith.constant 0 : index
    %c0_24 = arith.constant 0 : index
    %12 = vector.load %arg15[%c0_23, %c0_24] : memref<1x32xf32, #tpu.memory_space<vmem>>, vector<1x32xf32>
    %c0_25 = arith.constant 0 : index
    %c0_26 = arith.constant 0 : index
    %13 = vector.load %arg16[%c0_25, %c0_26] : memref<1x32xf32, #tpu.memory_space<vmem>>, vector<1x32xf32>
    %c0_27 = arith.constant 0 : index
    %c0_28 = arith.constant 0 : index
    %14 = vector.load %arg17[%c0_27, %c0_28] : memref<1x32xf32, #tpu.memory_space<vmem>>, vector<1x32xf32>
    %c0_29 = arith.constant 0 : index
    %c0_30 = arith.constant 0 : index
    %15 = vector.load %arg18[%c0_29, %c0_30] : memref<1x32xf32, #tpu.memory_space<vmem>>, vector<1x32xf32>
    %c0_31 = arith.constant 0 : index
    %c0_32 = arith.constant 0 : index
    %16 = vector.load %arg19[%c0_31, %c0_32] : memref<1x32xf32, #tpu.memory_space<vmem>>, vector<1x32xf32>
    %c0_33 = arith.constant 0 : index
    %c0_34 = arith.constant 0 : index
    %17 = vector.load %arg20[%c0_33, %c0_34] : memref<1x32xf32, #tpu.memory_space<vmem>>, vector<1x32xf32>
    %c0_35 = arith.constant 0 : index
    %c0_36 = arith.constant 0 : index
    %18 = vector.load %arg21[%c0_35, %c0_36] : memref<1x32xf32, #tpu.memory_space<vmem>>, vector<1x32xf32>
    %c0_37 = arith.constant 0 : index
    %c0_38 = arith.constant 0 : index
    %19 = vector.load %arg22[%c0_37, %c0_38] : memref<32x96xf32, #tpu.memory_space<vmem>>, vector<32x96xf32>
    %c0_39 = arith.constant 0 : index
    %c0_40 = arith.constant 0 : index
    %20 = vector.load %arg23[%c0_39, %c0_40] : memref<1x96xf32, #tpu.memory_space<vmem>>, vector<1x96xf32>
    %c0_41 = arith.constant 0 : index
    %c0_42 = arith.constant 0 : index
    %21 = vector.load %arg24[%c0_41, %c0_42] : memref<32x32xf32, #tpu.memory_space<vmem>>, vector<32x32xf32>
    %c0_43 = arith.constant 0 : index
    %c0_44 = arith.constant 0 : index
    %22 = vector.load %arg25[%c0_43, %c0_44] : memref<1x32xf32, #tpu.memory_space<vmem>>, vector<1x32xf32>
    %c0_45 = arith.constant 0 : index
    %c0_46 = arith.constant 0 : index
    %23 = vector.load %arg26[%c0_45, %c0_46] : memref<32x96xf32, #tpu.memory_space<vmem>>, vector<32x96xf32>
    %c0_47 = arith.constant 0 : index
    %c0_48 = arith.constant 0 : index
    %24 = vector.load %arg27[%c0_47, %c0_48] : memref<1x96xf32, #tpu.memory_space<vmem>>, vector<1x96xf32>
    %c0_49 = arith.constant 0 : index
    %c0_50 = arith.constant 0 : index
    %25 = vector.load %arg28[%c0_49, %c0_50] : memref<32x32xf32, #tpu.memory_space<vmem>>, vector<32x32xf32>
    %c0_51 = arith.constant 0 : index
    %c0_52 = arith.constant 0 : index
    %26 = vector.load %arg29[%c0_51, %c0_52] : memref<1x32xf32, #tpu.memory_space<vmem>>, vector<1x32xf32>
    %c0_53 = arith.constant 0 : index
    %c0_54 = arith.constant 0 : index
    %27 = vector.load %arg30[%c0_53, %c0_54] : memref<32x2048xf32, #tpu.memory_space<vmem>>, vector<32x2048xf32>
    %c0_55 = arith.constant 0 : index
    %c0_56 = arith.constant 0 : index
    %28 = vector.load %arg31[%c0_55, %c0_56] : memref<1x2048xf32, #tpu.memory_space<vmem>>, vector<1x2048xf32>
    %c0_57 = arith.constant 0 : index
    %c0_58 = arith.constant 0 : index
    %29 = vector.load %arg32[%c0_57, %c0_58] : memref<2048x32xf32, #tpu.memory_space<vmem>>, vector<2048x32xf32>
    %c0_59 = arith.constant 0 : index
    %c0_60 = arith.constant 0 : index
    %30 = vector.load %arg33[%c0_59, %c0_60] : memref<1x32xf32, #tpu.memory_space<vmem>>, vector<1x32xf32>
    %c0_61 = arith.constant 0 : index
    %c0_62 = arith.constant 0 : index
    %31 = vector.load %arg34[%c0_61, %c0_62] : memref<1x32xf32, #tpu.memory_space<vmem>>, vector<1x32xf32>
    %c0_63 = arith.constant 0 : index
    %c0_64 = arith.constant 0 : index
    %32 = vector.load %arg35[%c0_63, %c0_64] : memref<1x32xf32, #tpu.memory_space<vmem>>, vector<1x32xf32>
    %c0_65 = arith.constant 0 : index
    %c0_66 = arith.constant 0 : index
    %33 = vector.load %arg36[%c0_65, %c0_66] : memref<1x32xf32, #tpu.memory_space<vmem>>, vector<1x32xf32>
    %c0_67 = arith.constant 0 : index
    %c0_68 = arith.constant 0 : index
    %34 = vector.load %arg37[%c0_67, %c0_68] : memref<1x32xf32, #tpu.memory_space<vmem>>, vector<1x32xf32>
    %c0_69 = arith.constant 0 : index
    %c0_70 = arith.constant 0 : index
    %35 = vector.load %arg38[%c0_69, %c0_70] : memref<1x32xf32, #tpu.memory_space<vmem>>, vector<1x32xf32>
    %c0_71 = arith.constant 0 : index
    %c0_72 = arith.constant 0 : index
    %36 = vector.load %arg39[%c0_71, %c0_72] : memref<1x32xf32, #tpu.memory_space<vmem>>, vector<1x32xf32>
    %c0_73 = arith.constant 0 : index
    %c0_74 = arith.constant 0 : index
    %37 = vector.load %arg40[%c0_73, %c0_74] : memref<1x32xf32, #tpu.memory_space<vmem>>, vector<1x32xf32>
    %c0_75 = arith.constant 0 : index
    %c0_76 = arith.constant 0 : index
    %38 = vector.load %arg41[%c0_75, %c0_76] : memref<1x32xf32, #tpu.memory_space<vmem>>, vector<1x32xf32>
    %c0_77 = arith.constant 0 : index
    %c0_78 = arith.constant 0 : index
    %39 = vector.load %arg42[%c0_77, %c0_78] : memref<32x16xf32, #tpu.memory_space<vmem>>, vector<32x16xf32>
    %c0_79 = arith.constant 0 : index
    %c0_80 = arith.constant 0 : index
    %40 = vector.load %arg43[%c0_79, %c0_80] : memref<1x16xf32, #tpu.memory_space<vmem>>, vector<1x16xf32>
    %c0_81 = arith.constant 0 : index
    %c0_82 = arith.constant 0 : index
    %41 = vector.load %arg44[%c0_81, %c0_82] : memref<1x16xf32, #tpu.memory_space<vmem>>, vector<1x16xf32>
    %c0_83 = arith.constant 0 : index
    %c0_84 = arith.constant 0 : index
    %42 = vector.load %arg0[%c0_83, %c0_84] : memref<8x8xf32, #tpu.memory_space<vmem>>, vector<8x8xf32>
    %cst = arith.constant dense<0.000000e+00> : vector<8x32xf32>
    %43 = tpu.matmul %42, %0, %cst {dimension_numbers = #tpu.dot_dimension_numbers<[1], [0], [0], [1], [0, 0, 1, 1], [], []>} : vector<8x8xf32>, vector<8x32xf32>, vector<8x32xf32> -> vector<8x32xf32>
    %c0_85 = arith.constant 0 : index
    %c0_86 = arith.constant 0 : index
    %44 = vector.load %arg1[%c0_85, %c0_86] : memref<8x8xf32, #tpu.memory_space<vmem>>, vector<8x8xf32>
    %cst_87 = arith.constant dense<0.000000e+00> : vector<8x32xf32>
    %45 = tpu.matmul %44, %1, %cst_87 {dimension_numbers = #tpu.dot_dimension_numbers<[1], [0], [0], [1], [0, 0, 1, 1], [], []>} : vector<8x8xf32>, vector<8x32xf32>, vector<8x32xf32> -> vector<8x32xf32>
    %46 = arith.addf %43, %45 : vector<8x32xf32>
    %c0_88 = arith.constant 0 : index
    %c0_89 = arith.constant 0 : index
    %47 = vector.load %arg2[%c0_88, %c0_89] : memref<8x8xf32, #tpu.memory_space<vmem>>, vector<8x8xf32>
    %cst_90 = arith.constant dense<0.000000e+00> : vector<8x32xf32>
    %48 = tpu.matmul %47, %2, %cst_90 {dimension_numbers = #tpu.dot_dimension_numbers<[1], [0], [0], [1], [0, 0, 1, 1], [], []>} : vector<8x8xf32>, vector<8x32xf32>, vector<8x32xf32> -> vector<8x32xf32>
    %49 = arith.addf %46, %48 : vector<8x32xf32>
    %50 = vector.broadcast %3 : vector<1x32xf32> to vector<8x32xf32>
    %51 = arith.addf %49, %50 : vector<8x32xf32>
    %52 = vector.broadcast %4 : vector<1x32xf32> to vector<8x32xf32>
    %53 = arith.addf %51, %52 : vector<8x32xf32>
    %54 = vector.extract_strided_slice %5 {offsets = [0, 0], sizes = [32, 32], strides = [1, 1]} : vector<32x96xf32> to vector<32x32xf32>
    %cst_91 = arith.constant dense<0.000000e+00> : vector<8x32xf32>
    %55 = tpu.matmul %53, %54, %cst_91 {dimension_numbers = #tpu.dot_dimension_numbers<[1], [0], [0], [1], [0, 0, 1, 1], [], []>} : vector<8x32xf32>, vector<32x32xf32>, vector<8x32xf32> -> vector<8x32xf32>
    %56 = vector.extract_strided_slice %6 {offsets = [0, 0], sizes = [1, 32], strides = [1, 1]} : vector<1x96xf32> to vector<1x32xf32>
    %57 = vector.broadcast %56 : vector<1x32xf32> to vector<8x32xf32>
    %58 = arith.addf %55, %57 : vector<8x32xf32>
    %59 = vector.extract_strided_slice %5 {offsets = [0, 32], sizes = [32, 32], strides = [1, 1]} : vector<32x96xf32> to vector<32x32xf32>
    %cst_92 = arith.constant dense<0.000000e+00> : vector<8x32xf32>
    %60 = tpu.matmul %53, %59, %cst_92 {dimension_numbers = #tpu.dot_dimension_numbers<[1], [0], [0], [1], [0, 0, 1, 1], [], []>} : vector<8x32xf32>, vector<32x32xf32>, vector<8x32xf32> -> vector<8x32xf32>
    %61 = vector.extract_strided_slice %6 {offsets = [0, 32], sizes = [1, 32], strides = [1, 1]} : vector<1x96xf32> to vector<1x32xf32>
    %62 = vector.broadcast %61 : vector<1x32xf32> to vector<8x32xf32>
    %63 = arith.addf %60, %62 : vector<8x32xf32>
    %64 = vector.extract_strided_slice %5 {offsets = [0, 64], sizes = [32, 32], strides = [1, 1]} : vector<32x96xf32> to vector<32x32xf32>
    %cst_93 = arith.constant dense<0.000000e+00> : vector<8x32xf32>
    %65 = tpu.matmul %53, %64, %cst_93 {dimension_numbers = #tpu.dot_dimension_numbers<[1], [0], [0], [1], [0, 0, 1, 1], [], []>} : vector<8x32xf32>, vector<32x32xf32>, vector<8x32xf32> -> vector<8x32xf32>
    %66 = vector.extract_strided_slice %6 {offsets = [0, 64], sizes = [1, 32], strides = [1, 1]} : vector<1x96xf32> to vector<1x32xf32>
    %67 = vector.broadcast %66 : vector<1x32xf32> to vector<8x32xf32>
    %68 = arith.addf %65, %67 : vector<8x32xf32>
    %69 = vector.extract_strided_slice %58 {offsets = [0, 0], sizes = [8, 8], strides = [1, 1]} : vector<8x32xf32> to vector<8x8xf32>
    %cst_94 = arith.constant 0.353553385 : f32
    %70 = vector.broadcast %cst_94 : f32 to vector<8x8xf32>
    %71 = arith.mulf %69, %70 : vector<8x8xf32>
    %72 = vector.extract_strided_slice %63 {offsets = [0, 0], sizes = [8, 8], strides = [1, 1]} : vector<8x32xf32> to vector<8x8xf32>
    %73 = vector.extract_strided_slice %68 {offsets = [0, 0], sizes = [8, 8], strides = [1, 1]} : vector<8x32xf32> to vector<8x8xf32>
    %cst_95 = arith.constant dense<0.000000e+00> : vector<8x8xf32>
    %74 = tpu.matmul %71, %72, %cst_95 {dimension_numbers = #tpu.dot_dimension_numbers<[1], [1], [0], [0], [0, 0, 1, 0], [], []>} : vector<8x8xf32>, vector<8x8xf32>, vector<8x8xf32> -> vector<8x8xf32>
    %cst_96 = arith.constant dense<0xFF800000> : vector<8xf32>
    %75 = vector.multi_reduction <maximumf>, %74, %cst_96 [1] : vector<8x8xf32> to vector<8xf32>
    %76 = vector.shape_cast %75 : vector<8xf32> to vector<8x1xf32>
    %77 = vector.broadcast %76 : vector<8x1xf32> to vector<8x8xf32>
    %78 = arith.subf %74, %77 : vector<8x8xf32>
    %79 = math.exp %78 : vector<8x8xf32>
    %cst_97 = arith.constant dense<0.000000e+00> : vector<8xf32>
    %80 = vector.multi_reduction <add>, %79, %cst_97 [1] : vector<8x8xf32> to vector<8xf32>
    %81 = vector.shape_cast %80 : vector<8xf32> to vector<8x1xf32>
    %82 = vector.broadcast %81 : vector<8x1xf32> to vector<8x8xf32>
    %83 = arith.divf %79, %82 : vector<8x8xf32>
    %cst_98 = arith.constant dense<0.000000e+00> : vector<8x8xf32>
    %84 = tpu.matmul %83, %73, %cst_98 {dimension_numbers = #tpu.dot_dimension_numbers<[1], [0], [0], [1], [0, 0, 1, 1], [], []>} : vector<8x8xf32>, vector<8x8xf32>, vector<8x8xf32> -> vector<8x8xf32>
    %85 = vector.extract_strided_slice %58 {offsets = [0, 8], sizes = [8, 8], strides = [1, 1]} : vector<8x32xf32> to vector<8x8xf32>
    %cst_99 = arith.constant 0.353553385 : f32
    %86 = vector.broadcast %cst_99 : f32 to vector<8x8xf32>
    %87 = arith.mulf %85, %86 : vector<8x8xf32>
    %88 = vector.extract_strided_slice %63 {offsets = [0, 8], sizes = [8, 8], strides = [1, 1]} : vector<8x32xf32> to vector<8x8xf32>
    %89 = vector.extract_strided_slice %68 {offsets = [0, 8], sizes = [8, 8], strides = [1, 1]} : vector<8x32xf32> to vector<8x8xf32>
    %cst_100 = arith.constant dense<0.000000e+00> : vector<8x8xf32>
    %90 = tpu.matmul %87, %88, %cst_100 {dimension_numbers = #tpu.dot_dimension_numbers<[1], [1], [0], [0], [0, 0, 1, 0], [], []>} : vector<8x8xf32>, vector<8x8xf32>, vector<8x8xf32> -> vector<8x8xf32>
    %cst_101 = arith.constant dense<0xFF800000> : vector<8xf32>
    %91 = vector.multi_reduction <maximumf>, %90, %cst_101 [1] : vector<8x8xf32> to vector<8xf32>
    %92 = vector.shape_cast %91 : vector<8xf32> to vector<8x1xf32>
    %93 = vector.broadcast %92 : vector<8x1xf32> to vector<8x8xf32>
    %94 = arith.subf %90, %93 : vector<8x8xf32>
    %95 = math.exp %94 : vector<8x8xf32>
    %cst_102 = arith.constant dense<0.000000e+00> : vector<8xf32>
    %96 = vector.multi_reduction <add>, %95, %cst_102 [1] : vector<8x8xf32> to vector<8xf32>
    %97 = vector.shape_cast %96 : vector<8xf32> to vector<8x1xf32>
    %98 = vector.broadcast %97 : vector<8x1xf32> to vector<8x8xf32>
    %99 = arith.divf %95, %98 : vector<8x8xf32>
    %cst_103 = arith.constant dense<0.000000e+00> : vector<8x8xf32>
    %100 = tpu.matmul %99, %89, %cst_103 {dimension_numbers = #tpu.dot_dimension_numbers<[1], [0], [0], [1], [0, 0, 1, 1], [], []>} : vector<8x8xf32>, vector<8x8xf32>, vector<8x8xf32> -> vector<8x8xf32>
    %101 = vector.extract_strided_slice %58 {offsets = [0, 16], sizes = [8, 8], strides = [1, 1]} : vector<8x32xf32> to vector<8x8xf32>
    %cst_104 = arith.constant 0.353553385 : f32
    %102 = vector.broadcast %cst_104 : f32 to vector<8x8xf32>
    %103 = arith.mulf %101, %102 : vector<8x8xf32>
    %104 = vector.extract_strided_slice %63 {offsets = [0, 16], sizes = [8, 8], strides = [1, 1]} : vector<8x32xf32> to vector<8x8xf32>
    %105 = vector.extract_strided_slice %68 {offsets = [0, 16], sizes = [8, 8], strides = [1, 1]} : vector<8x32xf32> to vector<8x8xf32>
    %cst_105 = arith.constant dense<0.000000e+00> : vector<8x8xf32>
    %106 = tpu.matmul %103, %104, %cst_105 {dimension_numbers = #tpu.dot_dimension_numbers<[1], [1], [0], [0], [0, 0, 1, 0], [], []>} : vector<8x8xf32>, vector<8x8xf32>, vector<8x8xf32> -> vector<8x8xf32>
    %cst_106 = arith.constant dense<0xFF800000> : vector<8xf32>
    %107 = vector.multi_reduction <maximumf>, %106, %cst_106 [1] : vector<8x8xf32> to vector<8xf32>
    %108 = vector.shape_cast %107 : vector<8xf32> to vector<8x1xf32>
    %109 = vector.broadcast %108 : vector<8x1xf32> to vector<8x8xf32>
    %110 = arith.subf %106, %109 : vector<8x8xf32>
    %111 = math.exp %110 : vector<8x8xf32>
    %cst_107 = arith.constant dense<0.000000e+00> : vector<8xf32>
    %112 = vector.multi_reduction <add>, %111, %cst_107 [1] : vector<8x8xf32> to vector<8xf32>
    %113 = vector.shape_cast %112 : vector<8xf32> to vector<8x1xf32>
    %114 = vector.broadcast %113 : vector<8x1xf32> to vector<8x8xf32>
    %115 = arith.divf %111, %114 : vector<8x8xf32>
    %cst_108 = arith.constant dense<0.000000e+00> : vector<8x8xf32>
    %116 = tpu.matmul %115, %105, %cst_108 {dimension_numbers = #tpu.dot_dimension_numbers<[1], [0], [0], [1], [0, 0, 1, 1], [], []>} : vector<8x8xf32>, vector<8x8xf32>, vector<8x8xf32> -> vector<8x8xf32>
    %117 = vector.extract_strided_slice %58 {offsets = [0, 24], sizes = [8, 8], strides = [1, 1]} : vector<8x32xf32> to vector<8x8xf32>
    %cst_109 = arith.constant 0.353553385 : f32
    %118 = vector.broadcast %cst_109 : f32 to vector<8x8xf32>
    %119 = arith.mulf %117, %118 : vector<8x8xf32>
    %120 = vector.extract_strided_slice %63 {offsets = [0, 24], sizes = [8, 8], strides = [1, 1]} : vector<8x32xf32> to vector<8x8xf32>
    %121 = vector.extract_strided_slice %68 {offsets = [0, 24], sizes = [8, 8], strides = [1, 1]} : vector<8x32xf32> to vector<8x8xf32>
    %cst_110 = arith.constant dense<0.000000e+00> : vector<8x8xf32>
    %122 = tpu.matmul %119, %120, %cst_110 {dimension_numbers = #tpu.dot_dimension_numbers<[1], [1], [0], [0], [0, 0, 1, 0], [], []>} : vector<8x8xf32>, vector<8x8xf32>, vector<8x8xf32> -> vector<8x8xf32>
    %cst_111 = arith.constant dense<0xFF800000> : vector<8xf32>
    %123 = vector.multi_reduction <maximumf>, %122, %cst_111 [1] : vector<8x8xf32> to vector<8xf32>
    %124 = vector.shape_cast %123 : vector<8xf32> to vector<8x1xf32>
    %125 = vector.broadcast %124 : vector<8x1xf32> to vector<8x8xf32>
    %126 = arith.subf %122, %125 : vector<8x8xf32>
    %127 = math.exp %126 : vector<8x8xf32>
    %cst_112 = arith.constant dense<0.000000e+00> : vector<8xf32>
    %128 = vector.multi_reduction <add>, %127, %cst_112 [1] : vector<8x8xf32> to vector<8xf32>
    %129 = vector.shape_cast %128 : vector<8xf32> to vector<8x1xf32>
    %130 = vector.broadcast %129 : vector<8x1xf32> to vector<8x8xf32>
    %131 = arith.divf %127, %130 : vector<8x8xf32>
    %cst_113 = arith.constant dense<0.000000e+00> : vector<8x8xf32>
    %132 = tpu.matmul %131, %121, %cst_113 {dimension_numbers = #tpu.dot_dimension_numbers<[1], [0], [0], [1], [0, 0, 1, 1], [], []>} : vector<8x8xf32>, vector<8x8xf32>, vector<8x8xf32> -> vector<8x8xf32>
    %133 = tpu.concatenate %84, %100, %116, %132 in 1 : vector<8x8xf32>, vector<8x8xf32>, vector<8x8xf32>, vector<8x8xf32> -> vector<8x32xf32>
    %cst_114 = arith.constant dense<0.000000e+00> : vector<8x32xf32>
    %134 = tpu.matmul %133, %7, %cst_114 {dimension_numbers = #tpu.dot_dimension_numbers<[1], [0], [0], [1], [0, 0, 1, 1], [], []>} : vector<8x32xf32>, vector<32x32xf32>, vector<8x32xf32> -> vector<8x32xf32>
    %135 = vector.broadcast %8 : vector<1x32xf32> to vector<8x32xf32>
    %136 = arith.addf %134, %135 : vector<8x32xf32>
    %137 = arith.addf %53, %136 : vector<8x32xf32>
    %cst_115 = arith.constant dense<0.000000e+00> : vector<8xf32>
    %138 = vector.multi_reduction <add>, %137, %cst_115 [1] : vector<8x32xf32> to vector<8xf32>
    %139 = vector.shape_cast %138 : vector<8xf32> to vector<8x1xf32>
    %cst_116 = arith.constant 3.200000e+01 : f32
    %140 = vector.broadcast %cst_116 : f32 to vector<8x1xf32>
    %141 = arith.divf %139, %140 : vector<8x1xf32>
    %142 = vector.broadcast %141 : vector<8x1xf32> to vector<8x32xf32>
    %143 = arith.subf %137, %142 : vector<8x32xf32>
    %144 = arith.mulf %143, %143 : vector<8x32xf32>
    %cst_117 = arith.constant dense<0.000000e+00> : vector<8xf32>
    %145 = vector.multi_reduction <add>, %144, %cst_117 [1] : vector<8x32xf32> to vector<8xf32>
    %146 = vector.shape_cast %145 : vector<8xf32> to vector<8x1xf32>
    %cst_118 = arith.constant 3.200000e+01 : f32
    %147 = vector.broadcast %cst_118 : f32 to vector<8x1xf32>
    %148 = arith.divf %146, %147 : vector<8x1xf32>
    %cst_119 = arith.constant 9.99999974E-6 : f32
    %149 = vector.broadcast %cst_119 : f32 to vector<8x1xf32>
    %150 = arith.addf %148, %149 : vector<8x1xf32>
    %151 = math.rsqrt %150 : vector<8x1xf32>
    %152 = vector.broadcast %151 : vector<8x1xf32> to vector<8x32xf32>
    %153 = arith.mulf %143, %152 : vector<8x32xf32>
    %154 = vector.broadcast %13 : vector<1x32xf32> to vector<8x32xf32>
    %155 = arith.mulf %153, %154 : vector<8x32xf32>
    %156 = vector.broadcast %14 : vector<1x32xf32> to vector<8x32xf32>
    %157 = arith.addf %155, %156 : vector<8x32xf32>
    %cst_120 = arith.constant dense<0.000000e+00> : vector<8x2048xf32>
    %158 = tpu.matmul %157, %9, %cst_120 {dimension_numbers = #tpu.dot_dimension_numbers<[1], [0], [0], [1], [0, 0, 1, 1], [], []>} : vector<8x32xf32>, vector<32x2048xf32>, vector<8x2048xf32> -> vector<8x2048xf32>
    %159 = vector.broadcast %10 : vector<1x2048xf32> to vector<8x2048xf32>
    %160 = arith.addf %158, %159 : vector<8x2048xf32>
    %cst_121 = arith.constant 0.000000e+00 : f32
    %161 = vector.broadcast %cst_121 : f32 to vector<8x2048xf32>
    %162 = arith.maximumf %160, %161 : vector<8x2048xf32>
    %cst_122 = arith.constant dense<0.000000e+00> : vector<8x32xf32>
    %163 = tpu.matmul %162, %11, %cst_122 {dimension_numbers = #tpu.dot_dimension_numbers<[1], [0], [0], [1], [0, 0, 1, 1], [], []>} : vector<8x2048xf32>, vector<2048x32xf32>, vector<8x32xf32> -> vector<8x32xf32>
    %164 = vector.broadcast %12 : vector<1x32xf32> to vector<8x32xf32>
    %165 = arith.addf %163, %164 : vector<8x32xf32>
    %166 = arith.addf %157, %165 : vector<8x32xf32>
    %cst_123 = arith.constant dense<0.000000e+00> : vector<8xf32>
    %167 = vector.multi_reduction <add>, %166, %cst_123 [1] : vector<8x32xf32> to vector<8xf32>
    %168 = vector.shape_cast %167 : vector<8xf32> to vector<8x1xf32>
    %cst_124 = arith.constant 3.200000e+01 : f32
    %169 = vector.broadcast %cst_124 : f32 to vector<8x1xf32>
    %170 = arith.divf %168, %169 : vector<8x1xf32>
    %171 = vector.broadcast %170 : vector<8x1xf32> to vector<8x32xf32>
    %172 = arith.subf %166, %171 : vector<8x32xf32>
    %173 = arith.mulf %172, %172 : vector<8x32xf32>
    %cst_125 = arith.constant dense<0.000000e+00> : vector<8xf32>
    %174 = vector.multi_reduction <add>, %173, %cst_125 [1] : vector<8x32xf32> to vector<8xf32>
    %175 = vector.shape_cast %174 : vector<8xf32> to vector<8x1xf32>
    %cst_126 = arith.constant 3.200000e+01 : f32
    %176 = vector.broadcast %cst_126 : f32 to vector<8x1xf32>
    %177 = arith.divf %175, %176 : vector<8x1xf32>
    %cst_127 = arith.constant 9.99999974E-6 : f32
    %178 = vector.broadcast %cst_127 : f32 to vector<8x1xf32>
    %179 = arith.addf %177, %178 : vector<8x1xf32>
    %180 = math.rsqrt %179 : vector<8x1xf32>
    %181 = vector.broadcast %180 : vector<8x1xf32> to vector<8x32xf32>
    %182 = arith.mulf %172, %181 : vector<8x32xf32>
    %183 = vector.broadcast %15 : vector<1x32xf32> to vector<8x32xf32>
    %184 = arith.mulf %182, %183 : vector<8x32xf32>
    %185 = vector.broadcast %16 : vector<1x32xf32> to vector<8x32xf32>
    %186 = arith.addf %184, %185 : vector<8x32xf32>
    %cst_128 = arith.constant dense<0.000000e+00> : vector<8xf32>
    %187 = vector.multi_reduction <add>, %186, %cst_128 [1] : vector<8x32xf32> to vector<8xf32>
    %188 = vector.shape_cast %187 : vector<8xf32> to vector<8x1xf32>
    %cst_129 = arith.constant 3.200000e+01 : f32
    %189 = vector.broadcast %cst_129 : f32 to vector<8x1xf32>
    %190 = arith.divf %188, %189 : vector<8x1xf32>
    %191 = vector.broadcast %190 : vector<8x1xf32> to vector<8x32xf32>
    %192 = arith.subf %186, %191 : vector<8x32xf32>
    %193 = arith.mulf %192, %192 : vector<8x32xf32>
    %cst_130 = arith.constant dense<0.000000e+00> : vector<8xf32>
    %194 = vector.multi_reduction <add>, %193, %cst_130 [1] : vector<8x32xf32> to vector<8xf32>
    %195 = vector.shape_cast %194 : vector<8xf32> to vector<8x1xf32>
    %cst_131 = arith.constant 3.200000e+01 : f32
    %196 = vector.broadcast %cst_131 : f32 to vector<8x1xf32>
    %197 = arith.divf %195, %196 : vector<8x1xf32>
    %cst_132 = arith.constant 9.99999974E-6 : f32
    %198 = vector.broadcast %cst_132 : f32 to vector<8x1xf32>
    %199 = arith.addf %197, %198 : vector<8x1xf32>
    %200 = math.rsqrt %199 : vector<8x1xf32>
    %201 = vector.broadcast %200 : vector<8x1xf32> to vector<8x32xf32>
    %202 = arith.mulf %192, %201 : vector<8x32xf32>
    %203 = vector.broadcast %17 : vector<1x32xf32> to vector<8x32xf32>
    %204 = arith.mulf %202, %203 : vector<8x32xf32>
    %205 = vector.broadcast %18 : vector<1x32xf32> to vector<8x32xf32>
    %206 = arith.addf %204, %205 : vector<8x32xf32>
    %207 = vector.extract_strided_slice %19 {offsets = [0, 0], sizes = [32, 32], strides = [1, 1]} : vector<32x96xf32> to vector<32x32xf32>
    %cst_133 = arith.constant dense<0.000000e+00> : vector<8x32xf32>
    %208 = tpu.matmul %53, %207, %cst_133 {dimension_numbers = #tpu.dot_dimension_numbers<[1], [0], [0], [1], [0, 0, 1, 1], [], []>} : vector<8x32xf32>, vector<32x32xf32>, vector<8x32xf32> -> vector<8x32xf32>
    %209 = vector.extract_strided_slice %20 {offsets = [0, 0], sizes = [1, 32], strides = [1, 1]} : vector<1x96xf32> to vector<1x32xf32>
    %210 = vector.broadcast %209 : vector<1x32xf32> to vector<8x32xf32>
    %211 = arith.addf %208, %210 : vector<8x32xf32>
    %212 = vector.extract_strided_slice %19 {offsets = [0, 32], sizes = [32, 32], strides = [1, 1]} : vector<32x96xf32> to vector<32x32xf32>
    %cst_134 = arith.constant dense<0.000000e+00> : vector<8x32xf32>
    %213 = tpu.matmul %53, %212, %cst_134 {dimension_numbers = #tpu.dot_dimension_numbers<[1], [0], [0], [1], [0, 0, 1, 1], [], []>} : vector<8x32xf32>, vector<32x32xf32>, vector<8x32xf32> -> vector<8x32xf32>
    %214 = vector.extract_strided_slice %20 {offsets = [0, 32], sizes = [1, 32], strides = [1, 1]} : vector<1x96xf32> to vector<1x32xf32>
    %215 = vector.broadcast %214 : vector<1x32xf32> to vector<8x32xf32>
    %216 = arith.addf %213, %215 : vector<8x32xf32>
    %217 = vector.extract_strided_slice %19 {offsets = [0, 64], sizes = [32, 32], strides = [1, 1]} : vector<32x96xf32> to vector<32x32xf32>
    %cst_135 = arith.constant dense<0.000000e+00> : vector<8x32xf32>
    %218 = tpu.matmul %53, %217, %cst_135 {dimension_numbers = #tpu.dot_dimension_numbers<[1], [0], [0], [1], [0, 0, 1, 1], [], []>} : vector<8x32xf32>, vector<32x32xf32>, vector<8x32xf32> -> vector<8x32xf32>
    %219 = vector.extract_strided_slice %20 {offsets = [0, 64], sizes = [1, 32], strides = [1, 1]} : vector<1x96xf32> to vector<1x32xf32>
    %220 = vector.broadcast %219 : vector<1x32xf32> to vector<8x32xf32>
    %221 = arith.addf %218, %220 : vector<8x32xf32>
    %222 = vector.extract_strided_slice %211 {offsets = [0, 0], sizes = [8, 8], strides = [1, 1]} : vector<8x32xf32> to vector<8x8xf32>
    %cst_136 = arith.constant 0.353553385 : f32
    %223 = vector.broadcast %cst_136 : f32 to vector<8x8xf32>
    %224 = arith.mulf %222, %223 : vector<8x8xf32>
    %225 = vector.extract_strided_slice %216 {offsets = [0, 0], sizes = [8, 8], strides = [1, 1]} : vector<8x32xf32> to vector<8x8xf32>
    %226 = vector.extract_strided_slice %221 {offsets = [0, 0], sizes = [8, 8], strides = [1, 1]} : vector<8x32xf32> to vector<8x8xf32>
    %cst_137 = arith.constant dense<0.000000e+00> : vector<8x8xf32>
    %227 = tpu.matmul %224, %225, %cst_137 {dimension_numbers = #tpu.dot_dimension_numbers<[1], [1], [0], [0], [0, 0, 1, 0], [], []>} : vector<8x8xf32>, vector<8x8xf32>, vector<8x8xf32> -> vector<8x8xf32>
    %cst_138 = arith.constant dense<0xFF800000> : vector<8xf32>
    %228 = vector.multi_reduction <maximumf>, %227, %cst_138 [1] : vector<8x8xf32> to vector<8xf32>
    %229 = vector.shape_cast %228 : vector<8xf32> to vector<8x1xf32>
    %230 = vector.broadcast %229 : vector<8x1xf32> to vector<8x8xf32>
    %231 = arith.subf %227, %230 : vector<8x8xf32>
    %232 = math.exp %231 : vector<8x8xf32>
    %cst_139 = arith.constant dense<0.000000e+00> : vector<8xf32>
    %233 = vector.multi_reduction <add>, %232, %cst_139 [1] : vector<8x8xf32> to vector<8xf32>
    %234 = vector.shape_cast %233 : vector<8xf32> to vector<8x1xf32>
    %235 = vector.broadcast %234 : vector<8x1xf32> to vector<8x8xf32>
    %236 = arith.divf %232, %235 : vector<8x8xf32>
    %cst_140 = arith.constant dense<0.000000e+00> : vector<8x8xf32>
    %237 = tpu.matmul %236, %226, %cst_140 {dimension_numbers = #tpu.dot_dimension_numbers<[1], [0], [0], [1], [0, 0, 1, 1], [], []>} : vector<8x8xf32>, vector<8x8xf32>, vector<8x8xf32> -> vector<8x8xf32>
    %238 = vector.extract_strided_slice %211 {offsets = [0, 8], sizes = [8, 8], strides = [1, 1]} : vector<8x32xf32> to vector<8x8xf32>
    %cst_141 = arith.constant 0.353553385 : f32
    %239 = vector.broadcast %cst_141 : f32 to vector<8x8xf32>
    %240 = arith.mulf %238, %239 : vector<8x8xf32>
    %241 = vector.extract_strided_slice %216 {offsets = [0, 8], sizes = [8, 8], strides = [1, 1]} : vector<8x32xf32> to vector<8x8xf32>
    %242 = vector.extract_strided_slice %221 {offsets = [0, 8], sizes = [8, 8], strides = [1, 1]} : vector<8x32xf32> to vector<8x8xf32>
    %cst_142 = arith.constant dense<0.000000e+00> : vector<8x8xf32>
    %243 = tpu.matmul %240, %241, %cst_142 {dimension_numbers = #tpu.dot_dimension_numbers<[1], [1], [0], [0], [0, 0, 1, 0], [], []>} : vector<8x8xf32>, vector<8x8xf32>, vector<8x8xf32> -> vector<8x8xf32>
    %cst_143 = arith.constant dense<0xFF800000> : vector<8xf32>
    %244 = vector.multi_reduction <maximumf>, %243, %cst_143 [1] : vector<8x8xf32> to vector<8xf32>
    %245 = vector.shape_cast %244 : vector<8xf32> to vector<8x1xf32>
    %246 = vector.broadcast %245 : vector<8x1xf32> to vector<8x8xf32>
    %247 = arith.subf %243, %246 : vector<8x8xf32>
    %248 = math.exp %247 : vector<8x8xf32>
    %cst_144 = arith.constant dense<0.000000e+00> : vector<8xf32>
    %249 = vector.multi_reduction <add>, %248, %cst_144 [1] : vector<8x8xf32> to vector<8xf32>
    %250 = vector.shape_cast %249 : vector<8xf32> to vector<8x1xf32>
    %251 = vector.broadcast %250 : vector<8x1xf32> to vector<8x8xf32>
    %252 = arith.divf %248, %251 : vector<8x8xf32>
    %cst_145 = arith.constant dense<0.000000e+00> : vector<8x8xf32>
    %253 = tpu.matmul %252, %242, %cst_145 {dimension_numbers = #tpu.dot_dimension_numbers<[1], [0], [0], [1], [0, 0, 1, 1], [], []>} : vector<8x8xf32>, vector<8x8xf32>, vector<8x8xf32> -> vector<8x8xf32>
    %254 = vector.extract_strided_slice %211 {offsets = [0, 16], sizes = [8, 8], strides = [1, 1]} : vector<8x32xf32> to vector<8x8xf32>
    %cst_146 = arith.constant 0.353553385 : f32
    %255 = vector.broadcast %cst_146 : f32 to vector<8x8xf32>
    %256 = arith.mulf %254, %255 : vector<8x8xf32>
    %257 = vector.extract_strided_slice %216 {offsets = [0, 16], sizes = [8, 8], strides = [1, 1]} : vector<8x32xf32> to vector<8x8xf32>
    %258 = vector.extract_strided_slice %221 {offsets = [0, 16], sizes = [8, 8], strides = [1, 1]} : vector<8x32xf32> to vector<8x8xf32>
    %cst_147 = arith.constant dense<0.000000e+00> : vector<8x8xf32>
    %259 = tpu.matmul %256, %257, %cst_147 {dimension_numbers = #tpu.dot_dimension_numbers<[1], [1], [0], [0], [0, 0, 1, 0], [], []>} : vector<8x8xf32>, vector<8x8xf32>, vector<8x8xf32> -> vector<8x8xf32>
    %cst_148 = arith.constant dense<0xFF800000> : vector<8xf32>
    %260 = vector.multi_reduction <maximumf>, %259, %cst_148 [1] : vector<8x8xf32> to vector<8xf32>
    %261 = vector.shape_cast %260 : vector<8xf32> to vector<8x1xf32>
    %262 = vector.broadcast %261 : vector<8x1xf32> to vector<8x8xf32>
    %263 = arith.subf %259, %262 : vector<8x8xf32>
    %264 = math.exp %263 : vector<8x8xf32>
    %cst_149 = arith.constant dense<0.000000e+00> : vector<8xf32>
    %265 = vector.multi_reduction <add>, %264, %cst_149 [1] : vector<8x8xf32> to vector<8xf32>
    %266 = vector.shape_cast %265 : vector<8xf32> to vector<8x1xf32>
    %267 = vector.broadcast %266 : vector<8x1xf32> to vector<8x8xf32>
    %268 = arith.divf %264, %267 : vector<8x8xf32>
    %cst_150 = arith.constant dense<0.000000e+00> : vector<8x8xf32>
    %269 = tpu.matmul %268, %258, %cst_150 {dimension_numbers = #tpu.dot_dimension_numbers<[1], [0], [0], [1], [0, 0, 1, 1], [], []>} : vector<8x8xf32>, vector<8x8xf32>, vector<8x8xf32> -> vector<8x8xf32>
    %270 = vector.extract_strided_slice %211 {offsets = [0, 24], sizes = [8, 8], strides = [1, 1]} : vector<8x32xf32> to vector<8x8xf32>
    %cst_151 = arith.constant 0.353553385 : f32
    %271 = vector.broadcast %cst_151 : f32 to vector<8x8xf32>
    %272 = arith.mulf %270, %271 : vector<8x8xf32>
    %273 = vector.extract_strided_slice %216 {offsets = [0, 24], sizes = [8, 8], strides = [1, 1]} : vector<8x32xf32> to vector<8x8xf32>
    %274 = vector.extract_strided_slice %221 {offsets = [0, 24], sizes = [8, 8], strides = [1, 1]} : vector<8x32xf32> to vector<8x8xf32>
    %cst_152 = arith.constant dense<0.000000e+00> : vector<8x8xf32>
    %275 = tpu.matmul %272, %273, %cst_152 {dimension_numbers = #tpu.dot_dimension_numbers<[1], [1], [0], [0], [0, 0, 1, 0], [], []>} : vector<8x8xf32>, vector<8x8xf32>, vector<8x8xf32> -> vector<8x8xf32>
    %cst_153 = arith.constant dense<0xFF800000> : vector<8xf32>
    %276 = vector.multi_reduction <maximumf>, %275, %cst_153 [1] : vector<8x8xf32> to vector<8xf32>
    %277 = vector.shape_cast %276 : vector<8xf32> to vector<8x1xf32>
    %278 = vector.broadcast %277 : vector<8x1xf32> to vector<8x8xf32>
    %279 = arith.subf %275, %278 : vector<8x8xf32>
    %280 = math.exp %279 : vector<8x8xf32>
    %cst_154 = arith.constant dense<0.000000e+00> : vector<8xf32>
    %281 = vector.multi_reduction <add>, %280, %cst_154 [1] : vector<8x8xf32> to vector<8xf32>
    %282 = vector.shape_cast %281 : vector<8xf32> to vector<8x1xf32>
    %283 = vector.broadcast %282 : vector<8x1xf32> to vector<8x8xf32>
    %284 = arith.divf %280, %283 : vector<8x8xf32>
    %cst_155 = arith.constant dense<0.000000e+00> : vector<8x8xf32>
    %285 = tpu.matmul %284, %274, %cst_155 {dimension_numbers = #tpu.dot_dimension_numbers<[1], [0], [0], [1], [0, 0, 1, 1], [], []>} : vector<8x8xf32>, vector<8x8xf32>, vector<8x8xf32> -> vector<8x8xf32>
    %286 = tpu.concatenate %237, %253, %269, %285 in 1 : vector<8x8xf32>, vector<8x8xf32>, vector<8x8xf32>, vector<8x8xf32> -> vector<8x32xf32>
    %cst_156 = arith.constant dense<0.000000e+00> : vector<8x32xf32>
    %287 = tpu.matmul %286, %21, %cst_156 {dimension_numbers = #tpu.dot_dimension_numbers<[1], [0], [0], [1], [0, 0, 1, 1], [], []>} : vector<8x32xf32>, vector<32x32xf32>, vector<8x32xf32> -> vector<8x32xf32>
    %288 = vector.broadcast %22 : vector<1x32xf32> to vector<8x32xf32>
    %289 = arith.addf %287, %288 : vector<8x32xf32>
    %290 = arith.addf %53, %289 : vector<8x32xf32>
    %cst_157 = arith.constant dense<0.000000e+00> : vector<8xf32>
    %291 = vector.multi_reduction <add>, %290, %cst_157 [1] : vector<8x32xf32> to vector<8xf32>
    %292 = vector.shape_cast %291 : vector<8xf32> to vector<8x1xf32>
    %cst_158 = arith.constant 3.200000e+01 : f32
    %293 = vector.broadcast %cst_158 : f32 to vector<8x1xf32>
    %294 = arith.divf %292, %293 : vector<8x1xf32>
    %295 = vector.broadcast %294 : vector<8x1xf32> to vector<8x32xf32>
    %296 = arith.subf %290, %295 : vector<8x32xf32>
    %297 = arith.mulf %296, %296 : vector<8x32xf32>
    %cst_159 = arith.constant dense<0.000000e+00> : vector<8xf32>
    %298 = vector.multi_reduction <add>, %297, %cst_159 [1] : vector<8x32xf32> to vector<8xf32>
    %299 = vector.shape_cast %298 : vector<8xf32> to vector<8x1xf32>
    %cst_160 = arith.constant 3.200000e+01 : f32
    %300 = vector.broadcast %cst_160 : f32 to vector<8x1xf32>
    %301 = arith.divf %299, %300 : vector<8x1xf32>
    %cst_161 = arith.constant 9.99999974E-6 : f32
    %302 = vector.broadcast %cst_161 : f32 to vector<8x1xf32>
    %303 = arith.addf %301, %302 : vector<8x1xf32>
    %304 = math.rsqrt %303 : vector<8x1xf32>
    %305 = vector.broadcast %304 : vector<8x1xf32> to vector<8x32xf32>
    %306 = arith.mulf %296, %305 : vector<8x32xf32>
    %307 = vector.broadcast %31 : vector<1x32xf32> to vector<8x32xf32>
    %308 = arith.mulf %306, %307 : vector<8x32xf32>
    %309 = vector.broadcast %32 : vector<1x32xf32> to vector<8x32xf32>
    %310 = arith.addf %308, %309 : vector<8x32xf32>
    %311 = vector.extract_strided_slice %23 {offsets = [0, 0], sizes = [32, 32], strides = [1, 1]} : vector<32x96xf32> to vector<32x32xf32>
    %cst_162 = arith.constant dense<0.000000e+00> : vector<8x32xf32>
    %312 = tpu.matmul %310, %311, %cst_162 {dimension_numbers = #tpu.dot_dimension_numbers<[1], [0], [0], [1], [0, 0, 1, 1], [], []>} : vector<8x32xf32>, vector<32x32xf32>, vector<8x32xf32> -> vector<8x32xf32>
    %313 = vector.extract_strided_slice %24 {offsets = [0, 0], sizes = [1, 32], strides = [1, 1]} : vector<1x96xf32> to vector<1x32xf32>
    %314 = vector.broadcast %313 : vector<1x32xf32> to vector<8x32xf32>
    %315 = arith.addf %312, %314 : vector<8x32xf32>
    %316 = vector.extract_strided_slice %23 {offsets = [0, 32], sizes = [32, 32], strides = [1, 1]} : vector<32x96xf32> to vector<32x32xf32>
    %cst_163 = arith.constant dense<0.000000e+00> : vector<8x32xf32>
    %317 = tpu.matmul %206, %316, %cst_163 {dimension_numbers = #tpu.dot_dimension_numbers<[1], [0], [0], [1], [0, 0, 1, 1], [], []>} : vector<8x32xf32>, vector<32x32xf32>, vector<8x32xf32> -> vector<8x32xf32>
    %318 = vector.extract_strided_slice %24 {offsets = [0, 32], sizes = [1, 32], strides = [1, 1]} : vector<1x96xf32> to vector<1x32xf32>
    %319 = vector.broadcast %318 : vector<1x32xf32> to vector<8x32xf32>
    %320 = arith.addf %317, %319 : vector<8x32xf32>
    %321 = vector.extract_strided_slice %23 {offsets = [0, 64], sizes = [32, 32], strides = [1, 1]} : vector<32x96xf32> to vector<32x32xf32>
    %cst_164 = arith.constant dense<0.000000e+00> : vector<8x32xf32>
    %322 = tpu.matmul %206, %321, %cst_164 {dimension_numbers = #tpu.dot_dimension_numbers<[1], [0], [0], [1], [0, 0, 1, 1], [], []>} : vector<8x32xf32>, vector<32x32xf32>, vector<8x32xf32> -> vector<8x32xf32>
    %323 = vector.extract_strided_slice %24 {offsets = [0, 64], sizes = [1, 32], strides = [1, 1]} : vector<1x96xf32> to vector<1x32xf32>
    %324 = vector.broadcast %323 : vector<1x32xf32> to vector<8x32xf32>
    %325 = arith.addf %322, %324 : vector<8x32xf32>
    %326 = vector.extract_strided_slice %315 {offsets = [0, 0], sizes = [8, 8], strides = [1, 1]} : vector<8x32xf32> to vector<8x8xf32>
    %cst_165 = arith.constant 0.353553385 : f32
    %327 = vector.broadcast %cst_165 : f32 to vector<8x8xf32>
    %328 = arith.mulf %326, %327 : vector<8x8xf32>
    %329 = vector.extract_strided_slice %320 {offsets = [0, 0], sizes = [8, 8], strides = [1, 1]} : vector<8x32xf32> to vector<8x8xf32>
    %330 = vector.extract_strided_slice %325 {offsets = [0, 0], sizes = [8, 8], strides = [1, 1]} : vector<8x32xf32> to vector<8x8xf32>
    %cst_166 = arith.constant dense<0.000000e+00> : vector<8x8xf32>
    %331 = tpu.matmul %328, %329, %cst_166 {dimension_numbers = #tpu.dot_dimension_numbers<[1], [1], [0], [0], [0, 0, 1, 0], [], []>} : vector<8x8xf32>, vector<8x8xf32>, vector<8x8xf32> -> vector<8x8xf32>
    %cst_167 = arith.constant dense<0xFF800000> : vector<8xf32>
    %332 = vector.multi_reduction <maximumf>, %331, %cst_167 [1] : vector<8x8xf32> to vector<8xf32>
    %333 = vector.shape_cast %332 : vector<8xf32> to vector<8x1xf32>
    %334 = vector.broadcast %333 : vector<8x1xf32> to vector<8x8xf32>
    %335 = arith.subf %331, %334 : vector<8x8xf32>
    %336 = math.exp %335 : vector<8x8xf32>
    %cst_168 = arith.constant dense<0.000000e+00> : vector<8xf32>
    %337 = vector.multi_reduction <add>, %336, %cst_168 [1] : vector<8x8xf32> to vector<8xf32>
    %338 = vector.shape_cast %337 : vector<8xf32> to vector<8x1xf32>
    %339 = vector.broadcast %338 : vector<8x1xf32> to vector<8x8xf32>
    %340 = arith.divf %336, %339 : vector<8x8xf32>
    %cst_169 = arith.constant dense<0.000000e+00> : vector<8x8xf32>
    %341 = tpu.matmul %340, %330, %cst_169 {dimension_numbers = #tpu.dot_dimension_numbers<[1], [0], [0], [1], [0, 0, 1, 1], [], []>} : vector<8x8xf32>, vector<8x8xf32>, vector<8x8xf32> -> vector<8x8xf32>
    %342 = vector.extract_strided_slice %315 {offsets = [0, 8], sizes = [8, 8], strides = [1, 1]} : vector<8x32xf32> to vector<8x8xf32>
    %cst_170 = arith.constant 0.353553385 : f32
    %343 = vector.broadcast %cst_170 : f32 to vector<8x8xf32>
    %344 = arith.mulf %342, %343 : vector<8x8xf32>
    %345 = vector.extract_strided_slice %320 {offsets = [0, 8], sizes = [8, 8], strides = [1, 1]} : vector<8x32xf32> to vector<8x8xf32>
    %346 = vector.extract_strided_slice %325 {offsets = [0, 8], sizes = [8, 8], strides = [1, 1]} : vector<8x32xf32> to vector<8x8xf32>
    %cst_171 = arith.constant dense<0.000000e+00> : vector<8x8xf32>
    %347 = tpu.matmul %344, %345, %cst_171 {dimension_numbers = #tpu.dot_dimension_numbers<[1], [1], [0], [0], [0, 0, 1, 0], [], []>} : vector<8x8xf32>, vector<8x8xf32>, vector<8x8xf32> -> vector<8x8xf32>
    %cst_172 = arith.constant dense<0xFF800000> : vector<8xf32>
    %348 = vector.multi_reduction <maximumf>, %347, %cst_172 [1] : vector<8x8xf32> to vector<8xf32>
    %349 = vector.shape_cast %348 : vector<8xf32> to vector<8x1xf32>
    %350 = vector.broadcast %349 : vector<8x1xf32> to vector<8x8xf32>
    %351 = arith.subf %347, %350 : vector<8x8xf32>
    %352 = math.exp %351 : vector<8x8xf32>
    %cst_173 = arith.constant dense<0.000000e+00> : vector<8xf32>
    %353 = vector.multi_reduction <add>, %352, %cst_173 [1] : vector<8x8xf32> to vector<8xf32>
    %354 = vector.shape_cast %353 : vector<8xf32> to vector<8x1xf32>
    %355 = vector.broadcast %354 : vector<8x1xf32> to vector<8x8xf32>
    %356 = arith.divf %352, %355 : vector<8x8xf32>
    %cst_174 = arith.constant dense<0.000000e+00> : vector<8x8xf32>
    %357 = tpu.matmul %356, %346, %cst_174 {dimension_numbers = #tpu.dot_dimension_numbers<[1], [0], [0], [1], [0, 0, 1, 1], [], []>} : vector<8x8xf32>, vector<8x8xf32>, vector<8x8xf32> -> vector<8x8xf32>
    %358 = vector.extract_strided_slice %315 {offsets = [0, 16], sizes = [8, 8], strides = [1, 1]} : vector<8x32xf32> to vector<8x8xf32>
    %cst_175 = arith.constant 0.353553385 : f32
    %359 = vector.broadcast %cst_175 : f32 to vector<8x8xf32>
    %360 = arith.mulf %358, %359 : vector<8x8xf32>
    %361 = vector.extract_strided_slice %320 {offsets = [0, 16], sizes = [8, 8], strides = [1, 1]} : vector<8x32xf32> to vector<8x8xf32>
    %362 = vector.extract_strided_slice %325 {offsets = [0, 16], sizes = [8, 8], strides = [1, 1]} : vector<8x32xf32> to vector<8x8xf32>
    %cst_176 = arith.constant dense<0.000000e+00> : vector<8x8xf32>
    %363 = tpu.matmul %360, %361, %cst_176 {dimension_numbers = #tpu.dot_dimension_numbers<[1], [1], [0], [0], [0, 0, 1, 0], [], []>} : vector<8x8xf32>, vector<8x8xf32>, vector<8x8xf32> -> vector<8x8xf32>
    %cst_177 = arith.constant dense<0xFF800000> : vector<8xf32>
    %364 = vector.multi_reduction <maximumf>, %363, %cst_177 [1] : vector<8x8xf32> to vector<8xf32>
    %365 = vector.shape_cast %364 : vector<8xf32> to vector<8x1xf32>
    %366 = vector.broadcast %365 : vector<8x1xf32> to vector<8x8xf32>
    %367 = arith.subf %363, %366 : vector<8x8xf32>
    %368 = math.exp %367 : vector<8x8xf32>
    %cst_178 = arith.constant dense<0.000000e+00> : vector<8xf32>
    %369 = vector.multi_reduction <add>, %368, %cst_178 [1] : vector<8x8xf32> to vector<8xf32>
    %370 = vector.shape_cast %369 : vector<8xf32> to vector<8x1xf32>
    %371 = vector.broadcast %370 : vector<8x1xf32> to vector<8x8xf32>
    %372 = arith.divf %368, %371 : vector<8x8xf32>
    %cst_179 = arith.constant dense<0.000000e+00> : vector<8x8xf32>
    %373 = tpu.matmul %372, %362, %cst_179 {dimension_numbers = #tpu.dot_dimension_numbers<[1], [0], [0], [1], [0, 0, 1, 1], [], []>} : vector<8x8xf32>, vector<8x8xf32>, vector<8x8xf32> -> vector<8x8xf32>
    %374 = vector.extract_strided_slice %315 {offsets = [0, 24], sizes = [8, 8], strides = [1, 1]} : vector<8x32xf32> to vector<8x8xf32>
    %cst_180 = arith.constant 0.353553385 : f32
    %375 = vector.broadcast %cst_180 : f32 to vector<8x8xf32>
    %376 = arith.mulf %374, %375 : vector<8x8xf32>
    %377 = vector.extract_strided_slice %320 {offsets = [0, 24], sizes = [8, 8], strides = [1, 1]} : vector<8x32xf32> to vector<8x8xf32>
    %378 = vector.extract_strided_slice %325 {offsets = [0, 24], sizes = [8, 8], strides = [1, 1]} : vector<8x32xf32> to vector<8x8xf32>
    %cst_181 = arith.constant dense<0.000000e+00> : vector<8x8xf32>
    %379 = tpu.matmul %376, %377, %cst_181 {dimension_numbers = #tpu.dot_dimension_numbers<[1], [1], [0], [0], [0, 0, 1, 0], [], []>} : vector<8x8xf32>, vector<8x8xf32>, vector<8x8xf32> -> vector<8x8xf32>
    %cst_182 = arith.constant dense<0xFF800000> : vector<8xf32>
    %380 = vector.multi_reduction <maximumf>, %379, %cst_182 [1] : vector<8x8xf32> to vector<8xf32>
    %381 = vector.shape_cast %380 : vector<8xf32> to vector<8x1xf32>
    %382 = vector.broadcast %381 : vector<8x1xf32> to vector<8x8xf32>
    %383 = arith.subf %379, %382 : vector<8x8xf32>
    %384 = math.exp %383 : vector<8x8xf32>
    %cst_183 = arith.constant dense<0.000000e+00> : vector<8xf32>
    %385 = vector.multi_reduction <add>, %384, %cst_183 [1] : vector<8x8xf32> to vector<8xf32>
    %386 = vector.shape_cast %385 : vector<8xf32> to vector<8x1xf32>
    %387 = vector.broadcast %386 : vector<8x1xf32> to vector<8x8xf32>
    %388 = arith.divf %384, %387 : vector<8x8xf32>
    %cst_184 = arith.constant dense<0.000000e+00> : vector<8x8xf32>
    %389 = tpu.matmul %388, %378, %cst_184 {dimension_numbers = #tpu.dot_dimension_numbers<[1], [0], [0], [1], [0, 0, 1, 1], [], []>} : vector<8x8xf32>, vector<8x8xf32>, vector<8x8xf32> -> vector<8x8xf32>
    %390 = tpu.concatenate %341, %357, %373, %389 in 1 : vector<8x8xf32>, vector<8x8xf32>, vector<8x8xf32>, vector<8x8xf32> -> vector<8x32xf32>
    %cst_185 = arith.constant dense<0.000000e+00> : vector<8x32xf32>
    %391 = tpu.matmul %390, %25, %cst_185 {dimension_numbers = #tpu.dot_dimension_numbers<[1], [0], [0], [1], [0, 0, 1, 1], [], []>} : vector<8x32xf32>, vector<32x32xf32>, vector<8x32xf32> -> vector<8x32xf32>
    %392 = vector.broadcast %26 : vector<1x32xf32> to vector<8x32xf32>
    %393 = arith.addf %391, %392 : vector<8x32xf32>
    %394 = arith.addf %310, %393 : vector<8x32xf32>
    %cst_186 = arith.constant dense<0.000000e+00> : vector<8xf32>
    %395 = vector.multi_reduction <add>, %394, %cst_186 [1] : vector<8x32xf32> to vector<8xf32>
    %396 = vector.shape_cast %395 : vector<8xf32> to vector<8x1xf32>
    %cst_187 = arith.constant 3.200000e+01 : f32
    %397 = vector.broadcast %cst_187 : f32 to vector<8x1xf32>
    %398 = arith.divf %396, %397 : vector<8x1xf32>
    %399 = vector.broadcast %398 : vector<8x1xf32> to vector<8x32xf32>
    %400 = arith.subf %394, %399 : vector<8x32xf32>
    %401 = arith.mulf %400, %400 : vector<8x32xf32>
    %cst_188 = arith.constant dense<0.000000e+00> : vector<8xf32>
    %402 = vector.multi_reduction <add>, %401, %cst_188 [1] : vector<8x32xf32> to vector<8xf32>
    %403 = vector.shape_cast %402 : vector<8xf32> to vector<8x1xf32>
    %cst_189 = arith.constant 3.200000e+01 : f32
    %404 = vector.broadcast %cst_189 : f32 to vector<8x1xf32>
    %405 = arith.divf %403, %404 : vector<8x1xf32>
    %cst_190 = arith.constant 9.99999974E-6 : f32
    %406 = vector.broadcast %cst_190 : f32 to vector<8x1xf32>
    %407 = arith.addf %405, %406 : vector<8x1xf32>
    %408 = math.rsqrt %407 : vector<8x1xf32>
    %409 = vector.broadcast %408 : vector<8x1xf32> to vector<8x32xf32>
    %410 = arith.mulf %400, %409 : vector<8x32xf32>
    %411 = vector.broadcast %33 : vector<1x32xf32> to vector<8x32xf32>
    %412 = arith.mulf %410, %411 : vector<8x32xf32>
    %413 = vector.broadcast %34 : vector<1x32xf32> to vector<8x32xf32>
    %414 = arith.addf %412, %413 : vector<8x32xf32>
    %cst_191 = arith.constant dense<0.000000e+00> : vector<8x2048xf32>
    %415 = tpu.matmul %414, %27, %cst_191 {dimension_numbers = #tpu.dot_dimension_numbers<[1], [0], [0], [1], [0, 0, 1, 1], [], []>} : vector<8x32xf32>, vector<32x2048xf32>, vector<8x2048xf32> -> vector<8x2048xf32>
    %416 = vector.broadcast %28 : vector<1x2048xf32> to vector<8x2048xf32>
    %417 = arith.addf %415, %416 : vector<8x2048xf32>
    %cst_192 = arith.constant 0.000000e+00 : f32
    %418 = vector.broadcast %cst_192 : f32 to vector<8x2048xf32>
    %419 = arith.maximumf %417, %418 : vector<8x2048xf32>
    %cst_193 = arith.constant dense<0.000000e+00> : vector<8x32xf32>
    %420 = tpu.matmul %419, %29, %cst_193 {dimension_numbers = #tpu.dot_dimension_numbers<[1], [0], [0], [1], [0, 0, 1, 1], [], []>} : vector<8x2048xf32>, vector<2048x32xf32>, vector<8x32xf32> -> vector<8x32xf32>
    %421 = vector.broadcast %30 : vector<1x32xf32> to vector<8x32xf32>
    %422 = arith.addf %420, %421 : vector<8x32xf32>
    %423 = arith.addf %414, %422 : vector<8x32xf32>
    %cst_194 = arith.constant dense<0.000000e+00> : vector<8xf32>
    %424 = vector.multi_reduction <add>, %423, %cst_194 [1] : vector<8x32xf32> to vector<8xf32>
    %425 = vector.shape_cast %424 : vector<8xf32> to vector<8x1xf32>
    %cst_195 = arith.constant 3.200000e+01 : f32
    %426 = vector.broadcast %cst_195 : f32 to vector<8x1xf32>
    %427 = arith.divf %425, %426 : vector<8x1xf32>
    %428 = vector.broadcast %427 : vector<8x1xf32> to vector<8x32xf32>
    %429 = arith.subf %423, %428 : vector<8x32xf32>
    %430 = arith.mulf %429, %429 : vector<8x32xf32>
    %cst_196 = arith.constant dense<0.000000e+00> : vector<8xf32>
    %431 = vector.multi_reduction <add>, %430, %cst_196 [1] : vector<8x32xf32> to vector<8xf32>
    %432 = vector.shape_cast %431 : vector<8xf32> to vector<8x1xf32>
    %cst_197 = arith.constant 3.200000e+01 : f32
    %433 = vector.broadcast %cst_197 : f32 to vector<8x1xf32>
    %434 = arith.divf %432, %433 : vector<8x1xf32>
    %cst_198 = arith.constant 9.99999974E-6 : f32
    %435 = vector.broadcast %cst_198 : f32 to vector<8x1xf32>
    %436 = arith.addf %434, %435 : vector<8x1xf32>
    %437 = math.rsqrt %436 : vector<8x1xf32>
    %438 = vector.broadcast %437 : vector<8x1xf32> to vector<8x32xf32>
    %439 = arith.mulf %429, %438 : vector<8x32xf32>
    %440 = vector.broadcast %35 : vector<1x32xf32> to vector<8x32xf32>
    %441 = arith.mulf %439, %440 : vector<8x32xf32>
    %442 = vector.broadcast %36 : vector<1x32xf32> to vector<8x32xf32>
    %443 = arith.addf %441, %442 : vector<8x32xf32>
    %cst_199 = arith.constant dense<0.000000e+00> : vector<8xf32>
    %444 = vector.multi_reduction <add>, %443, %cst_199 [1] : vector<8x32xf32> to vector<8xf32>
    %445 = vector.shape_cast %444 : vector<8xf32> to vector<8x1xf32>
    %cst_200 = arith.constant 3.200000e+01 : f32
    %446 = vector.broadcast %cst_200 : f32 to vector<8x1xf32>
    %447 = arith.divf %445, %446 : vector<8x1xf32>
    %448 = vector.broadcast %447 : vector<8x1xf32> to vector<8x32xf32>
    %449 = arith.subf %443, %448 : vector<8x32xf32>
    %450 = arith.mulf %449, %449 : vector<8x32xf32>
    %cst_201 = arith.constant dense<0.000000e+00> : vector<8xf32>
    %451 = vector.multi_reduction <add>, %450, %cst_201 [1] : vector<8x32xf32> to vector<8xf32>
    %452 = vector.shape_cast %451 : vector<8xf32> to vector<8x1xf32>
    %cst_202 = arith.constant 3.200000e+01 : f32
    %453 = vector.broadcast %cst_202 : f32 to vector<8x1xf32>
    %454 = arith.divf %452, %453 : vector<8x1xf32>
    %cst_203 = arith.constant 9.99999974E-6 : f32
    %455 = vector.broadcast %cst_203 : f32 to vector<8x1xf32>
    %456 = arith.addf %454, %455 : vector<8x1xf32>
    %457 = math.rsqrt %456 : vector<8x1xf32>
    %458 = vector.broadcast %457 : vector<8x1xf32> to vector<8x32xf32>
    %459 = arith.mulf %449, %458 : vector<8x32xf32>
    %460 = vector.broadcast %37 : vector<1x32xf32> to vector<8x32xf32>
    %461 = arith.mulf %459, %460 : vector<8x32xf32>
    %462 = vector.broadcast %38 : vector<1x32xf32> to vector<8x32xf32>
    %463 = arith.addf %461, %462 : vector<8x32xf32>
    %cst_204 = arith.constant dense<0.000000e+00> : vector<8x16xf32>
    %464 = tpu.matmul %463, %39, %cst_204 {dimension_numbers = #tpu.dot_dimension_numbers<[1], [0], [0], [1], [0, 0, 1, 1], [], []>} : vector<8x32xf32>, vector<32x16xf32>, vector<8x16xf32> -> vector<8x16xf32>
    %465 = vector.broadcast %40 : vector<1x16xf32> to vector<8x16xf32>
    %466 = arith.addf %464, %465 : vector<8x16xf32>
    %467 = tpu.iota {dimensions = array<i32: 1>} : vector<8x16xi32>
    %c8_i32 = arith.constant 8 : i32
    %468 = vector.broadcast %c8_i32 : i32 to vector<8x16xi32>
    %469 = arith.cmpi slt, %467, %468 : vector<8x16xi32>
    %cst_205 = arith.constant 2.000000e+01 : f32
    %470 = vector.broadcast %cst_205 : f32 to vector<8x16xf32>
    %471 = arith.cmpf ogt, %466, %470 : vector<8x16xf32>
    %cst_206 = arith.constant 2.000000e+01 : f32
    %472 = vector.broadcast %cst_206 : f32 to vector<8x16xf32>
    %473 = arith.minimumf %466, %472 : vector<8x16xf32>
    %474 = math.exp %473 : vector<8x16xf32>
    %cst_207 = arith.constant 1.000000e+00 : f32
    %475 = vector.broadcast %cst_207 : f32 to vector<8x16xf32>
    %476 = arith.addf %475, %474 : vector<8x16xf32>
    %477 = math.log %476 : vector<8x16xf32>
    %478 = arith.select %471, %466, %477 : vector<8x16xi1>, vector<8x16xf32>
    %479 = arith.select %469, %478, %466 : vector<8x16xi1>, vector<8x16xf32>
    %480 = vector.broadcast %41 : vector<1x16xf32> to vector<8x16xf32>
    %481 = arith.addf %479, %480 : vector<8x16xf32>
    %c0_208 = arith.constant 0 : index
    %c0_209 = arith.constant 0 : index
    %482 = vector.load %arg45[%c0_208, %c0_209] : memref<8x16xf32, #tpu.memory_space<vmem>>, vector<8x16xf32>
    tpu.vector_store %arg45[%c0_208, %c0_209], %481 {strides = array<i32>} : memref<8x16xf32, #tpu.memory_space<vmem>>, vector<8x16xf32>,
    return
  }
}

</mosaic_0001>

<bundles_post_ra>
// kernel: generator_transformer_forward.1
= control target key start
LH: loop header
LB: loop body
LE: loop exit
PB: predicated region body
PF: predicated region fallthrough
CT: control target
= control target key end

     0   :  { %s8268_s6 = smov 1   ;;  %s8269_s10 = smov 2   ;;  %s9851_s0 = inlined_call_operand.smem [shape: u32[46], index: -1, kind: input, shape index: {}] }
   0x1   :  { %s8335_s5 = sld [smem:[%s9851_s0]]   ;;  %s8270_s14 = smov 3  }
   0x2   :  { %s8340_s9 = sld [smem:[%s9851_s0 + %s8268_s6]]   ;;  %s8271_s18 = smov 4  }
   0x3   :  { %s8345_s13 = sld [smem:[%s9851_s0 + %s8269_s10]]   ;;  %s8272_s22 = smov 5  }
   0x4   :  { %s8350_s17 = sld [smem:[%s9851_s0 + %s8270_s14]]   ;;  %s8273_s26 = smov 6  }
   0x5   :  { %s8355_s21 = sld [smem:[%s9851_s0 + %s8271_s18]]   ;;  %s8274_s30 = smov 7  }
   0x6   :  { %s8360_s25 = sld [smem:[%s9851_s0 + %s8272_s22]]   ;;  %s8275_s4 = smov 8  }
   0x7   :  { %s8365_s29 = sld [smem:[%s9851_s0 + %s8273_s26]]   ;;  %s8276_s10 = smov 9  }
   0x8   :  { %s8370_s3 = sld [smem:[%s9851_s0 + %s8274_s30]]   ;;  %s8277_s15 = smov 10  }
   0x9   :  { %s8375_s8 = sld [smem:[%s9851_s0 + %s8275_s4]]   ;;  %s8278_s20 = smov 11  }
   0xa   :  { %s8380_s14 = sld [smem:[%s9851_s0 + %s8276_s10]]   ;;  %s8279_s26 = smov 12  }
   0xb   :  { %s8385_s19 = sld [smem:[%s9851_s0 + %s8277_s15]]   ;;  %s8280_s1 = smov 13  }
   0xc   :  { %s8390_s24 = sld [smem:[%s9851_s0 + %s8278_s20]]   ;;  %s8281_s7 = smov 14  }
   0xd   :  { %s8395_s30 = sld [smem:[%s9851_s0 + %s8279_s26]]   ;;  %s8282_s15 = smov 15  }
   0xe   :  { %s8400_s6 = sld [smem:[%s9851_s0 + %s8280_s1]]   ;;  %s8283_s22 = smov 16  }
   0xf   :  { %s8405_s12 = sld [smem:[%s9851_s0 + %s8281_s7]]   ;;  %s8284_s28 = smov 17  }
  0x10   :  { %s8410_s20 = sld [smem:[%s9851_s0 + %s8282_s15]]   ;;  %s8285_s7 = smov 18  }
  0x11   :  { %s8415_s27 = sld [smem:[%s9851_s0 + %s8283_s22]]   ;;  %s8286_s15 = smov 19  }
  0x12   :  { %s8420_s4 = sld [smem:[%s9851_s0 + %s8284_s28]]   ;;  %s8287_s22 = smov 20  }
  0x13   :  { %s8288_s28 = smov 21   ;;  %s8311_s23 = smov 44  }
  0x14   :  { %9862 = sst [smem:[#allocation12_spill]] %s8400_s6  ;;  %s8312_s1 = smov 45  }
  0x15   :  { %9863 = sst [smem:[#allocation13_spill]] %s8405_s12 }
  0x16   :  { %9864 = sst [smem:[#allocation14_spill]] %s8410_s20 }
  0x17   :  { %9865 = sst [smem:[#allocation15_spill]] %s8415_s27 }
  0x18   :  { %9866 = sst [smem:[#allocation16_spill]] %s8420_s4 }
  0x19   :  { %s8425_s6 = sld [smem:[%s9851_s0 + %s8285_s7]]   ;;  %s8289_s7 = smov 22  }
  0x1a   :  { %s8430_s20 = sld [smem:[%s9851_s0 + %s8286_s15]]   ;;  %s8290_s15 = smov 23  }
  0x1b   :  { %s8435_s12 = sld [smem:[%s9851_s0 + %s8287_s22]]   ;;  %s8291_s22 = smov 24  }
  0x1c   :  { %s8440_s4 = sld [smem:[%s9851_s0 + %s8288_s28]]   ;;  %s8292_s28 = smov 25  }
  0x1f   :  { %9867 = sst [smem:[#allocation17_spill]] %s8425_s6 }
  0x20   :  { %9868 = sst [smem:[#allocation18_spill]] %s8430_s20 }
  0x21   :  { %9869 = sst [smem:[#allocation19_spill]] %s8435_s12 }
  0x22   :  { %9870 = sst [smem:[#allocation20_spill]] %s8440_s4 }
  0x23   :  { %s8445_s6 = sld [smem:[%s9851_s0 + %s8289_s7]]   ;;  %s8293_s7 = smov 26  }
  0x24   :  { %s8450_s20 = sld [smem:[%s9851_s0 + %s8290_s15]]   ;;  %s8294_s15 = smov 27  }
  0x25   :  { %s8455_s12 = sld [smem:[%s9851_s0 + %s8291_s22]]   ;;  %s8295_s22 = smov 28  }
  0x26   :  { %s8460_s4 = sld [smem:[%s9851_s0 + %s8292_s28]]   ;;  %s8296_s28 = smov 29  }
  0x27   :  { %s8465_s27 = sld [smem:[%s9851_s0 + %s8293_s7]]   ;;  %s8297_s7 = smov 30  }
  0x29   :  { %9871 = sst [smem:[#allocation21_spill]] %s8445_s6 }
  0x2a   :  { %9872 = sst [smem:[#allocation22_spill]] %s8450_s20 }
  0x2b   :  { %9873 = sst [smem:[#allocation23_spill]] %s8455_s12 }
  0x2c   :  { %9874 = sst [smem:[#allocation24_spill]] %s8460_s4 }
  0x2d   :  { %9875 = sst [smem:[#allocation25_spill]] %s8465_s27 }
  0x2e   :  { %s8470_s20 = sld [smem:[%s9851_s0 + %s8294_s15]]   ;;  %s8298_s15 = smov 31  }
  0x2f   :  { %s8475_s12 = sld [smem:[%s9851_s0 + %s8295_s22]]   ;;  %s8299_s22 = smov 32  }
  0x30   :  { %s8480_s4 = sld [smem:[%s9851_s0 + %s8296_s28]]   ;;  %s8300_s28 = smov 33  }
  0x31   :  { %s8485_s27 = sld [smem:[%s9851_s0 + %s8297_s7]]   ;;  %s8301_s7 = smov 34  }
  0x32   :  { %s8558_s6 = sld [smem:[%s9851_s0 + %s8312_s1]]  }
  0x34   :  { %9876 = sst [smem:[#allocation26_spill]] %s8470_s20 }
  0x35   :  { %9877 = sst [smem:[#allocation27_spill]] %s8475_s12 }
  0x36   :  { %9878 = sst [smem:[#allocation28_spill]] %s8480_s4 }
  0x37   :  { %9879 = sst [smem:[#allocation29_spill]] %s8485_s27 }
  0x38   :  { %s8490_s20 = sld [smem:[%s9851_s0 + %s8298_s15]]   ;;  %s8302_s15 = smov 35  }
  0x39   :  { %s8495_s12 = sld [smem:[%s9851_s0 + %s8299_s22]]   ;;  %s8303_s22 = smov 36  }
  0x3a   :  { %s8500_s4 = sld [smem:[%s9851_s0 + %s8300_s28]]   ;;  %s8304_s28 = smov 37  }
  0x3b   :  { %s8505_s27 = sld [smem:[%s9851_s0 + %s8301_s7]]   ;;  %s8305_s7 = smov 38  }
  0x3e   :  { %9880 = sst [smem:[#allocation30_spill]] %s8490_s20 }
  0x3f   :  { %9881 = sst [smem:[#allocation31_spill]] %s8495_s12 }
  0x40   :  { %9882 = sst [smem:[#allocation32_spill]] %s8500_s4 }
  0x41   :  { %9883 = sst [smem:[#allocation33_spill]] %s8505_s27 }
  0x42   :  { %s8510_s20 = sld [smem:[%s9851_s0 + %s8302_s15]]   ;;  %s8306_s15 = smov 39  }
  0x43   :  { %s8515_s12 = sld [smem:[%s9851_s0 + %s8303_s22]]   ;;  %s8307_s22 = smov 40  }
  0x44   :  { %s8520_s4 = sld [smem:[%s9851_s0 + %s8304_s28]]   ;;  %s8308_s28 = smov 41  }
  0x45   :  { %s8525_s27 = sld [smem:[%s9851_s0 + %s8305_s7]]   ;;  %s8309_s7 = smov 42  }
  0x48   :  { %9884 = sst [smem:[#allocation34_spill]] %s8510_s20 }
  0x49   :  { %9885 = sst [smem:[#allocation35_spill]] %s8515_s12 }
  0x4a   :  { %9886 = sst [smem:[#allocation36_spill]] %s8520_s4 }
  0x4b   :  { %9887 = sst [smem:[#allocation37_spill]] %s8525_s27 }
  0x4c   :  { %s8530_s20 = sld [smem:[%s9851_s0 + %s8306_s15]]   ;;  %s8310_s15 = smov 43  }
  0x4d   :  { %s8535_s12 = sld [smem:[%s9851_s0 + %s8307_s22]]  }
  0x4e   :  { %s8540_s4 = sld [smem:[%s9851_s0 + %s8308_s28]]  }
  0x4f   :  { %s8545_s27 = sld [smem:[%s9851_s0 + %s8309_s7]]  }
  0x52   :  { %9888 = sst [smem:[#allocation38_spill]] %s8530_s20 }
  0x53   :  { %9889 = sst [smem:[#allocation39_spill]] %s8535_s12 }
  0x54   :  { %s6998_s20 = sld [smem:[%s9851_s0 + %s8310_s15]]  }
  0x55   :  { %s8553_s12 = sld [smem:[%s9851_s0 + %s8311_s23]]  }
  0x56   :  { %96 = vsyncpa [#allocation3], 0 }
  0x57   :  { %97 = vsyncpa [#allocation6], 0 }
  0x58   :  { %98 = vsyncpa [#allocation4], 0  ;;  %s8313_s7 = smov [#allocation5]   ;;  %s8314_s11 = smov [#allocation2]  }
  0x59   :  { %s199_s10 = sshll.u32 %s8313_s7, 4  ;;  %s187_s16 = sshll.u32 %s8314_s11, 4  ;;  %s200_s10 = int_to_ptr.vmem [resolvable:$true] %s199_s10  ;;  %s188_s16 = int_to_ptr.vmem [resolvable:$true] %s187_s16 }
  0x5a   :  { %s8190_s15 = scalar_lea.vmem %s200_s10, 16  ;;  %s8194_s18 = scalar_lea.vmem %s200_s10, 32 }
  0x5b   :  { %p8191_p0 = scmp.ne.s32.totalorder %s200_s10, %s8190_s15  ;;  %p8195_p1 = scmp.lt.s32.totalorder %s200_s10, %s200_s10 }
  0x5c   :  { %p8196_p2 = scmp.lt.s32.totalorder %s8194_s18, %s8190_s15 }
  0x5e   :  { %p8197_p3 = por %p8196_p2, %p8195_p1 }
  0x60   :  { %p8198_p4 = pnand %p8197_p3, %p8191_p0 }
  0x62   :  { %8201 = shalt.err (!%p8198_p4)
}
  0x63   :  { %202 = dma.hbm_to_vmem [thread:$0]  %s6998_s20, 16, %s200_s10, [#allocation6]  }
  0x64   :  { %s8210_s0 = scalar_lea.vmem %s188_s16, 16  ;;  %s8214_s23 = scalar_lea.vmem %s188_s16, 32 }
  0x65   :  { %p8211_p5 = scmp.ne.s32.totalorder %s188_s16, %s8210_s0  ;;  %p8215_p6 = scmp.lt.s32.totalorder %s188_s16, %s188_s16 }
  0x66   :  { %p8216_p7 = scmp.lt.s32.totalorder %s8214_s23, %s8210_s0 }
  0x68   :  { %p8217_p8 = por %p8216_p7, %p8215_p6 }
  0x6a   :  { %p8218_p9 = pnand %p8217_p8, %p8211_p5 }
  0x6c   :  { %8221 = shalt.err (!%p8218_p9)
}
  0x6d   :  { %190 = dma.hbm_to_vmem [thread:$0]  %s8540_s4, 16, %s188_s16, [#allocation3]  }
  0x6e   :  { %s8315_s22 = smov [#allocation7]  }
  0x6f   :  { %s209_s26 = sshll.u32 %s8315_s22, 4  ;;  %s210_s26 = int_to_ptr.vmem [resolvable:$true] %s209_s26 }
  0x70   :  { %s8230_s1 = scalar_lea.vmem %s210_s26, 16  ;;  %s8234_s28 = scalar_lea.vmem %s210_s26, 32 }
  0x71   :  { %p8231_p10 = scmp.ne.s32.totalorder %s210_s26, %s8230_s1  ;;  %p8235_p11 = scmp.lt.s32.totalorder %s210_s26, %s210_s26 }
  0x72   :  { %p8236_p12 = scmp.lt.s32.totalorder %s8234_s28, %s8230_s1 }
  0x74   :  { %p8237_p13 = por %p8236_p12, %p8235_p11 }
  0x76   :  { %p8238_p0 = pnand %p8237_p13, %p8231_p10 }
  0x78   :  { %8241 = shalt.err (!%p8238_p0)
}
  0x79   :  { %212 = dma.hbm_to_vmem [thread:$0]  %s8553_s12, 16, %s210_s26, [#allocation6]  }
  0x7a   :  { %8262 = dma.done.wait [#allocation3], 16  }
  0x7b   :  { %8263 = vsyncadd [#allocation3], 4294967280 }
  0x7c   :  { %8264 = dma.done.wait [#allocation6], 32  }
  0x7d   :  { %8265 = vsyncadd [#allocation6], 4294967264  ;;  %v8316_v0 = vmov 0.0   ;;  %vm8317_vm0 = vmmov 0   ;;  %vm925_vm1 = vcmask 64512   ;;  %v223_v1 = vld [vmem:[%s8355_s21] sm:$0xff] }
  0x7e   :  { %7774 = vmatprep.subr.mxu0 %v8316_v0  ;;  %7779 = vmatprep.subr.mxu1 %v8316_v0  ;;  %v222_v2 = vld [vmem:[%s8350_s17] sm:$0xff]  ;;  %v230_v6 = vld [vmem:[%s8375_s8 + $0x18] sm:$0xff]  ;;  %v228_v7 = vld [vmem:[%s8375_s8 + $0x8] sm:$0xff]  ;;  %vm1167_vm2 = vcmask 261120   ;;  %s8321_s17 = smov 112   ;;  %s8322_s21 = smov 104  }
  0x7f   :  { %7776 = vmatprep.mubr.msk.f32.mxu0 %vm8317_vm0, %v8316_v0  ;;  %7781 = vmatprep.mubr.msk.f32.mxu1 %vm8317_vm0, %v8316_v0  ;;  %v924_v3 = vld [vmem:[%s8340_s9] sm:$0xff]  ;;  %s8318_s9 = smov 96   ;;  %v229_v9 = vld [vmem:[%s8375_s8 + $0x10] sm:$0xff]  ;;  %vm2085_vm3 = vcmask 130048   ;;  %vm2087_vm4 = vcmask 195584   ;;  %s9895_s12 = sld [smem:[#allocation12_spill]] }
  0x80   :  { %7775 = vmatpush3.msra.mxu0 %v223_v1  ;;  %7780 = vmatpush3.msra.mxu1 %v222_v2  ;;  %v923_v4 = vld [vmem:[%s8335_s5] sm:$0xff]  ;;  %s8319_s5 = smov 64   ;;  %s9896_s20 = sld [smem:[#allocation14_spill]] }
  0x81   :  { %v224_v5 = vld [vmem:[%s8360_s25] sm:$0xff]  ;;  %7777 = vmatmul.mubr.msk.f32.vlgmr.msra.gmra.mxu0 %vm925_vm1, %v924_v3  ;;  %7782 = vmatmul.mubr.msk.f32.vlgmr.msra.gmra.mxu1 %vm925_vm1, %v923_v4  ;;  %s8323_s25 = smov 8   ;;  %s9897_s4 = sld [smem:[#allocation23_spill]] }
  0x82   :  { %7784 = vmatprep.subr.mxu0 %v8316_v0  ;;  %7786 = vmatprep.mubr.msk.f32.mxu0 %vm8317_vm0, %v8316_v0  ;;  %v1072_v8 = vld [vmem:[%s8345_s13] sm:$0xff]  ;;  %s8320_s13 = smov 120   ;;  %s9898_s2 = sld [smem:[#allocation24_spill]] }
  0x83   :  { %7785 = vmatpush3.msra.mxu0 %v224_v5  ;;  %1251 = vrot.lane.b32.xlu0 %v230_v6, %s8318_s9  ;;  %v227_v10 = vld [vmem:[%s8375_s8] sm:$0xff]  ;;  %s9890_s8 = sld [smem:[#allocation21_spill]] }
  0x84   :  { %1247 = vrot.lane.b32.xlu1 %v228_v7, %s8318_s9  ;;  %7800 = vmatprep.subr.mxu0 %v8316_v0  ;;  %v8594_v11 = vld [vmem:[%s8380_s14] ss:$0 sm:$0xff]  ;;  %s9891_s14 = sld [smem:[#allocation15_spill]] }
  0x85   :  { %7787 = vmatmul.mubr.msk.f32.vlgmr.msra.gmra.mxu0 %vm925_vm1, %v1072_v8  ;;  %7789 = vmatprep.subr.mxu1 %v8316_v0  ;;  %v7004_v22 = vld [vmem:[%s8365_s29] ss:$0 sm:$0xff]  ;;  %s8324_s29 = smov 16   ;;  %s9899_s7 = sld [smem:[#allocation17_spill]] }
  0x86   :  { %7790 = vmatpush3.msra.mxu1 %v230_v6  ;;  %7797 = vmatprep.mubr.msk.f32.mxu1 %vm8317_vm0, %v8316_v0  ;;  %v7005_v25 = vld [vmem:[%s8370_s3] ss:$0 sm:$0xff]  ;;  %s8325_s3 = smov 24   ;;  %s9900_s10 = sld [smem:[#allocation18_spill]] }
  0x87   :  { %1249 = vrot.lane.b32.xlu0 %v229_v9, %s8318_s9  ;;  %7791 = vmatprep.subr.mxu1 %v8316_v0  ;;  %s9901_s11 = sld [smem:[#allocation25_spill]] }
  0x88   :  { %1245 = vrot.lane.b32.xlu1 %v227_v10, %s8318_s9  ;;  %7792 = vmatpush3.msra.mxu1 %v229_v9  ;;  %s9902_s16 = sld [smem:[#allocation26_spill]] }
  0x89   :  { %7793 = vmatprep.subr.mxu1 %v8316_v0  ;;  %7808 = vmatprep.mubr.msk.f32.mxu0 %vm8317_vm0, %v8316_v0  ;;  %s9903_s15 = sld [smem:[#allocation19_spill]] }
  0x8a   :  { %7794 = vmatpush3.msra.mxu1 %v228_v7  ;;  %s9904_s18 = sld [smem:[#allocation20_spill]] }
  0x8b   :  { %1257 = vrot.lane.b32.xlu0 %v8594_v11, %s8318_s9  ;;  %7795 = vmatprep.subr.mxu1 %v8316_v0  ;;  %s9905_s0 = sld [smem:[#allocation33_spill]] }
  0x8c   :  { %1336 = vrot.lane.b32.xlu1 %v230_v6, %s8319_s5  ;;  %7796 = vmatpush3.msra.mxu1 %v227_v10  ;;  %s9906_s23 = sld [smem:[#allocation34_spill]] }
  0x8d   :  { %7811 = vmatprep.subr.mxu1 %v8316_v0  ;;  %s9907_s22 = sld [smem:[#allocation27_spill]] }
  0x8e   :  { %s9908_s26 = sld [smem:[#allocation28_spill]] }
  0x8f   :  { %1334 = vrot.lane.b32.xlu0 %v229_v9, %s8319_s5  ;;  %s9909_s1 = sld [smem:[#allocation29_spill]] }
  0x90   :  { %1332 = vrot.lane.b32.xlu1 %v228_v7, %s8319_s5  ;;  %s9910_s28 = sld [smem:[#allocation35_spill]] }
  0x93   :  { %1330 = vrot.lane.b32.xlu0 %v227_v10, %s8319_s5 }
  0xf5   :  { %v1252_v12 = vpop.permute.xlu0 %1251 }
  0xf6   :  { %7801 = vmatpush3.msra.mxu0 %v1252_v12  ;;  %v1248_v13 = vpop.permute.xlu1 %1247 }
  0xf7   :  { %7802 = vmatprep.subr.mxu0 %v8316_v0 }
  0xf9   :  { %v1250_v14 = vpop.permute.xlu0 %1249 }
  0xfa   :  { %7803 = vmatpush3.msra.mxu0 %v1250_v14  ;;  %v1246_v15 = vpop.permute.xlu1 %1245 }
  0xfb   :  { %7804 = vmatprep.subr.mxu0 %v8316_v0 }
  0xfc   :  { %7805 = vmatpush3.msra.mxu0 %v1248_v13 }
  0xfd   :  { %7806 = vmatprep.subr.mxu0 %v8316_v0  ;;  %v1258_v21 = vpop.permute.xlu0 %1257 }
  0xfe   :  { %7807 = vmatpush3.msra.mxu0 %v1246_v15  ;;  %v1337_v28 = vpop.permute.xlu1 %1336 }
  0xff   :  { %7822 = vmatprep.subr.mxu0 %v8316_v0 }
 0x101   :  { %v1335_v30 = vpop.permute.xlu0 %1334 }
 0x102   :  { %v1333_v31 = vpop.permute.xlu1 %1332 }
 0x105   :  { %v1331_v32 = vpop.permute.xlu0 %1330 }
 0x141   :  { %v995_v16 = vpop.f32.mrf.mxu0  ;;  %v1068_v17 = vpop.f32.mrf.mxu1 }
 0x142   :  { %v1069_v20 = vadd.f32 %v1068_v17, %v995_v16 }
 0x143   :  { %v7778_v18 = vpop.f32.mrf.mxu0  ;;  %v7783_v19 = vpop.f32.mrf.mxu1 }
 0x145   :  { %v1142_v23 = vpop.f32.mrf.mxu0 }
 0x146   :  { %v1146_v24 = vadd.f32 %v1142_v23, %v1069_v20 }
 0x147   :  { %v7788_v26 = vpop.f32.mrf.mxu0 }
 0x148   :  { %v1153_v27 = vadd.f32 %v7004_v22, %v1146_v24 }
 0x14a   :  { %v8613_v29 = vadd.f32 %v7005_v25, %v1153_v27 }
 0x14c   :  { %7798 = vmatmul.mubr.msk.f32.vlgmr.msra.gmra.mxu1 %vm1167_vm2, %v8613_v29  ;;  %7809 = vmatmul.mubr.msk.f32.vlgmr.msra.gmra.mxu0 %vm1167_vm2, %v8613_v29 }
 0x14d   :  { %7812 = vmatpush3.msra.mxu1 %v1337_v28  ;;  %7819 = vmatprep.mubr.msk.f32.mxu1 %vm8317_vm0, %v8316_v0 }
 0x14e   :  { %7813 = vmatprep.subr.mxu1 %v8316_v0  ;;  %7824 = vmatprep.mubr.msk.f32.mxu0 %vm8317_vm0, %v8316_v0 }
 0x14f   :  { %7814 = vmatpush3.msra.mxu1 %v1335_v30 }
 0x150   :  { %7815 = vmatprep.subr.mxu1 %v8316_v0 }
 0x151   :  { %7816 = vmatpush3.msra.mxu1 %v1333_v31 }
 0x152   :  { %7817 = vmatprep.subr.mxu1 %v8316_v0 }
 0x153   :  { %7818 = vmatpush3.msra.mxu1 %v1331_v32 }
 0x154   :  { %7820 = vmatmul.mubr.msk.f32.vlgmr.msra.gmra.mxu1 %vm1167_vm2, %v8613_v29  ;;  %7832 = vmatprep.subr.mxu1 %v8316_v0 }
 0x155   :  { %7834 = vmatprep.mubr.msk.f32.mxu1 %vm8317_vm0, %v8316_v0 }
 0x20c   :  { %v1237_v33 = vpop.f32.mrf.mxu1  ;;  %v1326_v34 = vpop.f32.mrf.mxu0 }
 0x20d   :  { %v1238_v35 = vadd.f32 %v8594_v11, %v1237_v33  ;;  %v1327_v36 = vadd.f32 %v1326_v34, %v1258_v21 }
 0x20e   :  { %v7799_v37 = vpop.f32.mrf.mxu1  ;;  %v7810_v38 = vpop.f32.mrf.mxu0 }
 0x20f   :  { %v1415_v39 = vmul.f32 0.35355338, %v1238_v35  ;;  %1578 = vrot.lane.b32.xlu1 %v1327_v36, %s8320_s13  ;;  %7823 = vmatpush3.xpose.msk.msra.mxu0 %vm925_vm1, %v1327_v36  ;;  %v235_v37 = vld [vmem:[%s8385_s19 + $0x18] sm:$0xff]  ;;  %v234_v38 = vld [vmem:[%s8385_s19 + $0x10] sm:$0xff] }
 0x210   :  { %7827 = vmatprep.subr.mxu0 %v8316_v0 }
 0x211   :  { %1576 = vrot.lane.b32.xlu0 %v1415_v39, %s8320_s13 }
 0x212   :  { %7825 = vmatmul.mubr.msk.f32.vlgmr.msra.gmra.mxu0 %vm925_vm1, %v1415_v39 }
 0x213   :  { %1744 = vrot.lane.b32.xlu1 %v1327_v36, %s8321_s17  ;;  %7829 = vmatprep.mubr.msk.f32.mxu0 %vm8317_vm0, %v8316_v0 }
 0x214   :  { %v1411_v40 = vpop.f32.mrf.mxu1 }
 0x215   :  { %1742 = vrot.lane.b32.xlu0 %v1415_v39, %s8321_s17 }
 0x216   :  { %v7821_v41 = vpop.f32.mrf.mxu1 }
 0x217   :  { %1909 = vrot.lane.b32.xlu1 %v1327_v36, %s8322_s21 }
 0x219   :  { %1907 = vrot.lane.b32.xlu0 %v1415_v39, %s8322_s21  ;;  %v233_v39 = vld [vmem:[%s8385_s19 + $0x8] sm:$0xff] }
 0x281   :  { %v1579_v42 = vpop.permute.xlu1 %1578 }
 0x282   :  { %7833 = vmatpush3.xpose.msk.msra.mxu1 %vm925_vm1, %v1579_v42 }
 0x283   :  { %v1577_v43 = vpop.permute.xlu0 %1576  ;;  %7842 = vmatprep.subr.mxu1 %v8316_v0 }
 0x285   :  { %v1745_v44 = vpop.permute.xlu1 %1744  ;;  %7835 = vmatmul.mubr.msk.f32.vlgmr.msra.gmra.mxu1 %vm925_vm1, %v1577_v43 }
 0x286   :  { %7843 = vmatpush3.xpose.msk.msra.mxu1 %vm925_vm1, %v1745_v44  ;;  %7844 = vmatprep.mubr.msk.f32.mxu1 %vm8317_vm0, %v8316_v0 }
 0x287   :  { %v1743_v45 = vpop.permute.xlu0 %1742  ;;  %7852 = vmatprep.subr.mxu1 %v8316_v0 }
 0x289   :  { %v1910_v46 = vpop.permute.xlu1 %1909  ;;  %7845 = vmatmul.mubr.msk.f32.vlgmr.msra.gmra.mxu1 %vm925_vm1, %v1743_v45 }
 0x28a   :  { %7853 = vmatpush3.xpose.msk.msra.mxu1 %vm925_vm1, %v1910_v46  ;;  %7854 = vmatprep.mubr.msk.f32.mxu1 %vm8317_vm0, %v8316_v0 }
 0x28b   :  { %v1908_v47 = vpop.permute.xlu0 %1907  ;;  %7862 = vmatprep.subr.mxu1 %v8316_v0 }
 0x28d   :  { %7855 = vmatmul.mubr.msk.f32.vlgmr.msra.gmra.mxu1 %vm925_vm1, %v1908_v47 }
 0x28e   :  { %7870 = vmatprep.mubr.msk.f32.mxu1 %vm8317_vm0, %v8316_v0  ;;  %7863 = vmatpush3.msra.mxu1 %v235_v37  ;;  %v273_v37 = vld [vmem:[%s8395_s30 + $0x120] sm:$0xff] }
 0x28f   :  { %7864 = vmatprep.subr.mxu1 %v8316_v0 }
 0x290   :  { %7865 = vmatpush3.msra.mxu1 %v234_v38  ;;  %v275_v38 = vld [vmem:[%s8395_s30 + $0x130] sm:$0xff] }
 0x291   :  { %7866 = vmatprep.subr.mxu1 %v8316_v0 }
 0x292   :  { %7867 = vmatpush3.msra.mxu1 %v233_v39  ;;  %v258_v39 = vld [vmem:[%s8395_s30 + $0xa8] sm:$0xff] }
 0x293   :  { %7868 = vmatprep.subr.mxu1 %v8316_v0 }
 0x2d2   :  { %v1488_v48 = vpop.f32.mrf.mxu0 }
 0x2d3   :  { %v1492_v49 = vsel %vm925_vm1, %v1488_v48, -inf }
 0x2d4   :  { %1493 = vmax.xlane.f32.xlu1 %v1492_v49  ;;  %v7826_v50 = vpop.f32.mrf.mxu0 }
 0x345   :  { %v1650_v51 = vpop.f32.mrf.mxu1 }
 0x346   :  { %v1654_v52 = vsel %vm925_vm1, %v1650_v51, -inf }
 0x347   :  { %1655 = vmax.xlane.f32.xlu0 %v1654_v52  ;;  %v7836_v53 = vpop.f32.mrf.mxu1 }
 0x348   :  { %v7022_v53 = vld [vmem:[%s8390_s24] ss:$0 sm:$0xff]  ;;  %s9893_s24 = sld [smem:[#allocation13_spill]] }
 0x349   :  { %v1816_v54 = vpop.f32.mrf.mxu1 }
 0x34a   :  { %v1820_v55 = vsel %vm925_vm1, %v1816_v54, -inf }
 0x34b   :  { %1821 = vmax.xlane.f32.xlu0 %v1820_v55  ;;  %v7846_v56 = vpop.f32.mrf.mxu1 }
 0x34d   :  { %v1981_v57 = vpop.f32.mrf.mxu1 }
 0x34e   :  { %v1985_v58 = vsel %vm925_vm1, %v1981_v57, -inf }
 0x34f   :  { %1986 = vmax.xlane.f32.xlu1 %v1985_v58  ;;  %v7856_v59 = vpop.f32.mrf.mxu1 }
 0x35d   :  { %v1494_v60 = vpop.xlane.xlu1 %1493 }
 0x35e   :  { %v1495_v61 = vsub.f32 %v1488_v48, %v1494_v60 }
 0x360   :  { %v1496_v62 = vmul.f32 1.442695, %v1495_v61 }
 0x361   :  { %1342 = vrot.lane.b32.xlu0 %v8594_v11, %s8319_s5 }
 0x362   :  { %8111 = vpow2.f32 %v1496_v62 }
 0x36f   :  { %v8112_v63 = vpop.eup %8111 }
 0x370   :  { %v1498_v1 = vsel %vm925_vm1, %v8112_v63, 0.0 }
 0x371   :  { %1499 = vadd.xlane.f32.xlu1 %v1498_v1  ;;  %v286_v1 = vld [vmem:[%s8395_s30 + $0x188] sm:$0xff] }
 0x3d0   :  { %v1656_v2 = vpop.xlane.xlu0 %1655 }
 0x3d1   :  { %v1657_v3 = vsub.f32 %v1650_v51, %v1656_v2  ;;  %v288_v2 = vld [vmem:[%s8395_s30 + $0x198] sm:$0xff] }
 0x3d3   :  { %v1658_v4 = vmul.f32 1.442695, %v1657_v3  ;;  %v285_v3 = vld [vmem:[%s8395_s30 + $0x180] sm:$0xff] }
 0x3d4   :  { %v1822_v5 = vpop.xlane.xlu0 %1821 }
 0x3d5   :  { %8113 = vpow2.f32 %v1658_v4  ;;  %v1823_v6 = vsub.f32 %v1816_v54, %v1822_v5  ;;  %v287_v4 = vld [vmem:[%s8395_s30 + $0x190] sm:$0xff]  ;;  %v270_v5 = vld [vmem:[%s8395_s30 + $0x108] sm:$0xff] }
 0x3d7   :  { %v1824_v7 = vmul.f32 1.442695, %v1823_v6  ;;  %v272_v6 = vld [vmem:[%s8395_s30 + $0x118] sm:$0xff] }
 0x3d8   :  { %v1343_v8 = vpop.permute.xlu0 %1342  ;;  %v1987_v9 = vpop.xlane.xlu1 %1986 }
 0x3d9   :  { %8115 = vpow2.f32 %v1824_v7  ;;  %v1412_v10 = vadd.f32 %v1411_v40, %v1343_v8  ;;  %v1988_v12 = vsub.f32 %v1981_v57, %v1987_v9  ;;  %v232_v40 = vld [vmem:[%s8385_s19] sm:$0xff]  ;;  %v271_v8 = vld [vmem:[%s8395_s30 + $0x110] sm:$0xff]  ;;  %v254_v9 = vld [vmem:[%s8395_s30 + $0x88] sm:$0xff]  ;;  %s9892_s19 = sld [smem:[#allocation16_spill]] }
 0x3da   :  { %7869 = vmatpush3.msra.mxu1 %v232_v40  ;;  %v269_v7 = vld [vmem:[%s8395_s30 + $0x100] sm:$0xff]  ;;  %v260_v40 = vld [vmem:[%s8395_s30 + $0xb8] sm:$0xff] }
 0x3db   :  { %v1989_v13 = vmul.f32 1.442695, %v1988_v12  ;;  %1831 = vrot.lane.b32.xlu0 %v1412_v10, %s8321_s17  ;;  %7828 = vmatpush3.msra.mxu0 %v1412_v10  ;;  %v253_v12 = vld [vmem:[%s8395_s30 + $0x80] sm:$0xff] }
 0x3dc   :  { %7837 = vmatprep.subr.mxu0 %v8316_v0  ;;  %2377 = vmatprep.subr.mxu1 %v288_v2  ;;  %v297_v2 = vld [vmem:[%s8395_s30 + $0x1e0] sm:$0xff] }
 0x3dd   :  { %8117 = vpow2.f32 %v1989_v13  ;;  %v255_v13 = vld [vmem:[%s8395_s30 + $0x90] sm:$0xff] }
 0x3df   :  { %1996 = vrot.lane.b32.xlu0 %v1412_v10, %s8322_s21 }
 0x3e2   :  { %v8114_v11 = vpop.eup %8113 }
 0x3e3   :  { %v1660_v14 = vsel %vm925_vm1, %v8114_v11, 0.0 }
 0x3e4   :  { %1661 = vadd.xlane.f32.xlu1 %v1660_v14  ;;  %v240_v14 = vld [vmem:[%s8395_s30 + $0x18] sm:$0xff] }
 0x3e6   :  { %v8116_v15 = vpop.eup %8115 }
 0x3e7   :  { %v1826_v16 = vsel %vm925_vm1, %v8116_v15, 0.0 }
 0x3e8   :  { %1827 = vadd.xlane.f32.xlu1 %v1826_v16  ;;  %v239_v16 = vld [vmem:[%s8395_s30 + $0x10] sm:$0xff] }
 0x3ea   :  { %v8118_v17 = vpop.eup %8117 }
 0x3eb   :  { %v1991_v18 = vsel %vm925_vm1, %v8118_v17, 0.0 }
 0x3ec   :  { %1992 = vadd.xlane.f32.xlu1 %v1991_v18  ;;  %v292_v18 = vld [vmem:[%s8395_s30 + $0x1b8] sm:$0xff] }
 0x3fa   :  { %v1500_v19 = vpop.xlane.xlu1 %1499 }
 0x3fb   :  { %8119 = vrcp.f32 %v1500_v19  ;;  %v569_v19 = vld [vmem:[%s9890_s8 + $0x18] sm:$0xff] }
 0x3fd   :  { %1666 = vrot.lane.b32.xlu1 %v1412_v10, %s8320_s13  ;;  %v256_v10 = vld [vmem:[%s8395_s30 + $0x98] sm:$0xff] }
 0x408   :  { %v8120_v20 = vpop.eup %8119 }
 0x409   :  { %v1502_v21 = vmul.f32 %v8120_v20, %v8112_v63  ;;  %v568_v20 = vld [vmem:[%s9890_s8 + $0x10] sm:$0xff] }
 0x40b   :  { %7830 = vmatmul.mubr.msk.f32.vlgmr.msra.gmra.mxu0 %vm925_vm1, %v1502_v21  ;;  %v567_v21 = vld [vmem:[%s9890_s8 + $0x8] sm:$0xff] }
 0x40c   :  { %7839 = vmatprep.mubr.msk.f32.mxu0 %vm8317_vm0, %v8316_v0 }
 0x44d   :  { %v1832_v27 = vpop.permute.xlu0 %1831 }
 0x451   :  { %v1997_v32 = vpop.permute.xlu0 %1996 }
 0x46d   :  { %v1662_v22 = vpop.xlane.xlu1 %1661 }
 0x46e   :  { %8121 = vrcp.f32 %v1662_v22  ;;  %v566_v22 = vld [vmem:[%s9890_s8] sm:$0xff] }
 0x471   :  { %v1828_v23 = vpop.xlane.xlu1 %1827 }
 0x472   :  { %8123 = vrcp.f32 %v1828_v23 }
 0x475   :  { %v1993_v24 = vpop.xlane.xlu1 %1992 }
 0x476   :  { %8125 = vrcp.f32 %v1993_v24 }
 0x479   :  { %v1667_v25 = vpop.permute.xlu1 %1666 }
 0x47a   :  { %7838 = vmatpush3.msra.mxu0 %v1667_v25 }
 0x47b   :  { %v8122_v26 = vpop.eup %8121  ;;  %7847 = vmatprep.subr.mxu0 %v8316_v0 }
 0x47c   :  { %v1664_v28 = vmul.f32 %v8122_v26, %v8114_v11  ;;  %v238_v11 = vld [vmem:[%s8395_s30 + $0x8] sm:$0xff] }
 0x47e   :  { %7840 = vmatmul.mubr.msk.f32.vlgmr.msra.gmra.mxu0 %vm925_vm1, %v1664_v28 }
 0x47f   :  { %v8124_v30 = vpop.eup %8123  ;;  %7848 = vmatpush3.msra.mxu0 %v1832_v27  ;;  %7849 = vmatprep.mubr.msk.f32.mxu0 %vm8317_vm0, %v8316_v0  ;;  %v7024_v27 = vld [vmem:[%s9891_s14] ss:$0 sm:$0xff] }
 0x480   :  { %7857 = vmatprep.subr.mxu0 %v8316_v0  ;;  %v1830_v31 = vmul.f32 %v8124_v30, %v8116_v15  ;;  %v237_v15 = vld [vmem:[%s8395_s30] sm:$0xff] }
 0x481   :  { %v7025_v30 = vld [vmem:[%s9892_s19] ss:$0 sm:$0xff] }
 0x482   :  { %7850 = vmatmul.mubr.msk.f32.vlgmr.msra.gmra.mxu0 %vm925_vm1, %v1830_v31 }
 0x483   :  { %v8126_v33 = vpop.eup %8125  ;;  %7858 = vmatpush3.msra.mxu0 %v1997_v32  ;;  %7859 = vmatprep.mubr.msk.f32.mxu0 %vm8317_vm0, %v8316_v0 }
 0x484   :  { %v1995_v34 = vmul.f32 %v8126_v33, %v8118_v17  ;;  %2306 = vmatprep.subr.mxu0 %v286_v1  ;;  %v290_v17 = vld [vmem:[%s8395_s30 + $0x1a8] sm:$0xff]  ;;  %v289_v33 = vld [vmem:[%s8395_s30 + $0x1a0] sm:$0xff]  ;;  %v300_v1 = vld [vmem:[%s8395_s30 + $0x1f8] sm:$0xff] }
 0x486   :  { %7860 = vmatmul.mubr.msk.f32.vlgmr.msra.gmra.mxu0 %vm925_vm1, %v1995_v34  ;;  %v291_v34 = vld [vmem:[%s8395_s30 + $0x1b0] sm:$0xff] }
 0x487   :  { %2346 = vmatprep.mubr.f32.mxu0 %v8316_v0  ;;  %2307 = vmatpush1.msra.mxu0 %v285_v3  ;;  %v299_v3 = vld [vmem:[%s8395_s30 + $0x1f0] sm:$0xff] }
 0x488   :  { %2308 = vmatprep.subr.mxu0 %v270_v5  ;;  %v284_v5 = vld [vmem:[%s8395_s30 + $0x178] sm:$0xff] }
 0x489   :  { %2309 = vmatpush1.msra.mxu0 %v269_v7  ;;  %v283_v7 = vld [vmem:[%s8395_s30 + $0x170] sm:$0xff] }
 0x48a   :  { %2310 = vmatprep.subr.mxu0 %v254_v9  ;;  %v268_v9 = vld [vmem:[%s8395_s30 + $0xf8] sm:$0xff] }
 0x48b   :  { %2311 = vmatpush1.msra.mxu0 %v253_v12  ;;  %v267_v12 = vld [vmem:[%s8395_s30 + $0xf0] sm:$0xff] }
 0x48c   :  { %2312 = vmatprep.subr.mxu0 %v238_v11  ;;  %v252_v11 = vld [vmem:[%s8395_s30 + $0x78] sm:$0xff] }
 0x48d   :  { %2313 = vmatpush1.msra.mxu0 %v237_v15  ;;  %v251_v15 = vld [vmem:[%s8395_s30 + $0x70] sm:$0xff] }
 0x48e   :  { %2448 = vmatprep.subr.mxu0 %v290_v17  ;;  %v366_v17 = vld [vmem:[%s9893_s24 + $0x1f8] sm:$0xff] }
 0x4cb   :  { %v1572_v35 = vpop.f32.mrf.mxu0 }
 0x4cd   :  { %v7831_v36 = vpop.f32.mrf.mxu0 }
 0x4ce   :  { %v276_v36 = vld [vmem:[%s8395_s30 + $0x138] sm:$0xff] }
 0x53e   :  { %v1738_v41 = vpop.f32.mrf.mxu0 }
 0x53f   :  { %2073 = vrot.lane.b32.xlu0 %v1738_v41, %s8323_s25  ;;  %v257_v41 = vld [vmem:[%s8395_s30 + $0xa0] sm:$0xff] }
 0x540   :  { %v7841_v42 = vpop.f32.mrf.mxu0 }
 0x541   :  { %v259_v42 = vld [vmem:[%s8395_s30 + $0xb0] sm:$0xff] }
 0x542   :  { %v1903_v43 = vpop.f32.mrf.mxu0 }
 0x543   :  { %2077 = vrot.lane.b32.xlu0 %v1903_v43, %s8324_s29  ;;  %v242_v43 = vld [vmem:[%s8395_s30 + $0x28] sm:$0xff] }
 0x544   :  { %v7851_v44 = vpop.f32.mrf.mxu0 }
 0x545   :  { %v244_v44 = vld [vmem:[%s8395_s30 + $0x38] sm:$0xff] }
 0x546   :  { %v2068_v45 = vpop.f32.mrf.mxu0 }
 0x547   :  { %2081 = vrot.lane.b32.xlu1 %v2068_v45, %s8325_s3  ;;  %v241_v45 = vld [vmem:[%s8395_s30 + $0x20] sm:$0xff] }
 0x548   :  { %v7861_v46 = vpop.f32.mrf.mxu0 }
 0x549   :  { %v243_v46 = vld [vmem:[%s8395_s30 + $0x30] sm:$0xff] }
 0x5b1   :  { %v2074_v47 = vpop.permute.xlu0 %2073 }
 0x5b2   :  { %v2084_v49 = vsel %vm925_vm1, %v1572_v35, %v2074_v47  ;;  %v274_v35 = vld [vmem:[%s8395_s30 + $0x128] sm:$0xff] }
 0x5b3   :  { %v294_v47 = vld [vmem:[%s8395_s30 + $0x1c8] sm:$0xff] }
 0x5b5   :  { %v2078_v48 = vpop.permute.xlu0 %2077 }
 0x5b6   :  { %v2086_v50 = vsel %vm2085_vm3, %v2084_v49, %v2078_v48  ;;  %v296_v48 = vld [vmem:[%s8395_s30 + $0x1d8] sm:$0xff]  ;;  %v293_v49 = vld [vmem:[%s8395_s30 + $0x1c0] sm:$0xff] }
 0x5b9   :  { %v2082_v51 = vpop.permute.xlu1 %2081 }
 0x5ba   :  { %v2088_v52 = vsel %vm2087_vm4, %v2086_v50, %v2082_v51  ;;  %v295_v50 = vld [vmem:[%s8395_s30 + $0x1d0] sm:$0xff]  ;;  %v278_v51 = vld [vmem:[%s8395_s30 + $0x148] sm:$0xff] }
 0x5bb   :  { %7871 = vmatmul.mubr.msk.f32.vlgmr.msra.gmra.mxu1 %vm1167_vm2, %v2088_v52  ;;  %v280_v52 = vld [vmem:[%s8395_s30 + $0x158] sm:$0xff] }
 0x5bc   :  { %2417 = vmatprep.mubr.f32.mxu1 %v8316_v0  ;;  %2378 = vmatpush1.msra.mxu1 %v287_v4  ;;  %v282_v4 = vld [vmem:[%s8395_s30 + $0x168] sm:$0xff] }
 0x5bd   :  { %2379 = vmatprep.subr.mxu1 %v272_v6  ;;  %v281_v6 = vld [vmem:[%s8395_s30 + $0x160] sm:$0xff] }
 0x5be   :  { %2380 = vmatpush1.msra.mxu1 %v271_v8  ;;  %v266_v8 = vld [vmem:[%s8395_s30 + $0xe8] sm:$0xff] }
 0x5bf   :  { %2381 = vmatprep.subr.mxu1 %v256_v10  ;;  %v265_v10 = vld [vmem:[%s8395_s30 + $0xe0] sm:$0xff] }
 0x5c0   :  { %2382 = vmatpush1.msra.mxu1 %v255_v13  ;;  %v250_v13 = vld [vmem:[%s8395_s30 + $0x68] sm:$0xff] }
 0x5c1   :  { %2383 = vmatprep.subr.mxu1 %v240_v14  ;;  %v249_v14 = vld [vmem:[%s8395_s30 + $0x60] sm:$0xff] }
 0x5c2   :  { %2384 = vmatpush1.msra.mxu1 %v239_v16  ;;  %v334_v16 = vld [vmem:[%s9893_s24 + $0xf8] sm:$0xff] }
 0x5c3   :  { %2519 = vmatprep.subr.mxu1 %v292_v18  ;;  %v318_v18 = vld [vmem:[%s9893_s24 + $0x78] sm:$0xff] }
 0x67b   :  { %v2164_v54 = vpop.f32.mrf.mxu1 }
 0x67c   :  { %v2165_v55 = vadd.f32 %v7022_v53, %v2164_v54  ;;  %v277_v53 = vld [vmem:[%s8395_s30 + $0x140] sm:$0xff]  ;;  %v279_v54 = vld [vmem:[%s8395_s30 + $0x150] sm:$0xff] }
 0x67d   :  { %v7872_v56 = vpop.f32.mrf.mxu1 }
 0x67e   :  { %v2168_v57 = vadd.f32 %v2165_v55, %v8613_v29  ;;  %v262_v55 = vld [vmem:[%s8395_s30 + $0xc8] sm:$0xff]  ;;  %v264_v56 = vld [vmem:[%s8395_s30 + $0xd8] sm:$0xff] }
 0x680   :  { %v2169_v58 = vsel %vm1167_vm2, %v2168_v57, 0.0 }
 0x681   :  { %2170 = vadd.xlane.f32.xlu0 %v2169_v58  ;;  %v263_v58 = vld [vmem:[%s8395_s30 + $0xd0] sm:$0xff] }
 0x697   :  { %3573 = vrot.lane.b32.xlu0 %v569_v19, %s8318_s9  ;;  %v350_v19 = vld [vmem:[%s9893_s24 + $0x178] sm:$0xff] }
 0x69b   :  { %3569 = vrot.lane.b32.xlu0 %v567_v21, %s8318_s9  ;;  %v365_v21 = vld [vmem:[%s9893_s24 + $0x1f0] sm:$0xff] }
 0x70a   :  { %v2171_v59 = vpop.xlane.xlu0 %2170 }
 0x70b   :  { %v2173_v60 = vmul.f32 0.03125, %v2171_v59  ;;  %v246_v59 = vld [vmem:[%s8395_s30 + $0x48] sm:$0xff] }
 0x70d   :  { %v2174_v61 = vsub.f32 %v2168_v57, %v2173_v60  ;;  %v261_v57 = vld [vmem:[%s8395_s30 + $0xc0] sm:$0xff]  ;;  %v248_v60 = vld [vmem:[%s8395_s30 + $0x58] sm:$0xff] }
 0x70f   :  { %v2175_v62 = vmul.f32 %v2174_v61, %v2174_v61 }
 0x711   :  { %v2176_v63 = vsel %vm1167_vm2, %v2175_v62, 0.0  ;;  %v247_v62 = vld [vmem:[%s8395_s30 + $0x50] sm:$0xff] }
 0x712   :  { %2177 = vadd.xlane.f32.xlu1 %v2176_v63  ;;  %v298_v63 = vld [vmem:[%s8395_s30 + $0x1e8] sm:$0xff] }
 0x723   :  { %3571 = vrot.lane.b32.xlu1 %v568_v20, %s8318_s9  ;;  %v333_v20 = vld [vmem:[%s9893_s24 + $0xf0] sm:$0xff] }
 0x727   :  { %3567 = vrot.lane.b32.xlu1 %v566_v22, %s8318_s9  ;;  %v317_v22 = vld [vmem:[%s9893_s24 + $0x70] sm:$0xff] }
 0x79b   :  { %v2178_v23 = vpop.xlane.xlu1 %2177 }
 0x79c   :  { %v2179_v24 = vmul.f32 0.03125, %v2178_v23  ;;  %v349_v23 = vld [vmem:[%s9893_s24 + $0x170] sm:$0xff] }
 0x79e   :  { %v2180_v25 = vadd.f32 1e-05, %v2179_v24  ;;  %v332_v24 = vld [vmem:[%s9893_s24 + $0xe8] sm:$0xff] }
 0x7a0   :  { %8127 = vrsqrt.f32 %v2180_v25  ;;  %v364_v25 = vld [vmem:[%s9893_s24 + $0x1e8] sm:$0xff] }
 0x7ad   :  { %v8128_v26 = vpop.eup %8127 }
 0x7ae   :  { %v2182_v28 = vmul.f32 %v8128_v26, %v2174_v61  ;;  %v245_v61 = vld [vmem:[%s8395_s30 + $0x40] sm:$0xff]  ;;  %v316_v26 = vld [vmem:[%s9893_s24 + $0x68] sm:$0xff]  ;;  %s9894_s30 = sld [smem:[#allocation22_spill]] }
 0x7b0   :  { %v2189_v31 = vmul.f32 %v7024_v27, %v2182_v28  ;;  %v348_v27 = vld [vmem:[%s9893_s24 + $0x168] sm:$0xff]  ;;  %v331_v28 = vld [vmem:[%s9893_s24 + $0xe0] sm:$0xff] }
 0x7b2   :  { %v8732_v32 = vadd.f32 %v7025_v30, %v2189_v31  ;;  %v363_v30 = vld [vmem:[%s9893_s24 + $0x1e0] sm:$0xff] }
 0x7b3   :  { %v315_v31 = vld [vmem:[%s9893_s24 + $0x60] sm:$0xff] }
 0x7b4   :  { %7026 = vmatmul.mubr.msk.f32.vlgmr.msra.gmra.mxu0 %vm1167_vm2, %v8732_v32  ;;  %7027 = vmatmul.mubr.msk.f32.vlgmr.msra.gmra.mxu1 %vm1167_vm2, %v8732_v32 }
 0x7b5   :  { %2449 = vmatpush1.msra.mxu0 %v289_v33  ;;  %2520 = vmatpush1.msra.mxu1 %v291_v34  ;;  %v347_v33 = vld [vmem:[%s9893_s24 + $0x160] sm:$0xff]  ;;  %v330_v34 = vld [vmem:[%s9893_s24 + $0xd8] sm:$0xff] }
 0x7b6   :  { %2450 = vmatprep.subr.mxu0 %v274_v35  ;;  %2521 = vmatprep.subr.mxu1 %v276_v36  ;;  %v362_v35 = vld [vmem:[%s9893_s24 + $0x1d8] sm:$0xff] }
 0x7b7   :  { %2451 = vmatpush1.msra.mxu0 %v273_v37  ;;  %2522 = vmatpush1.msra.mxu1 %v275_v38  ;;  %v314_v36 = vld [vmem:[%s9893_s24 + $0x58] sm:$0xff]  ;;  %v329_v38 = vld [vmem:[%s9893_s24 + $0xd0] sm:$0xff] }
 0x7b8   :  { %2452 = vmatprep.subr.mxu0 %v258_v39  ;;  %2523 = vmatprep.subr.mxu1 %v260_v40  ;;  %v346_v37 = vld [vmem:[%s9893_s24 + $0x158] sm:$0xff]  ;;  %v361_v39 = vld [vmem:[%s9893_s24 + $0x1d0] sm:$0xff] }
 0x7b9   :  { %2453 = vmatpush1.msra.mxu0 %v257_v41  ;;  %2524 = vmatpush1.msra.mxu1 %v259_v42  ;;  %v313_v40 = vld [vmem:[%s9893_s24 + $0x50] sm:$0xff]  ;;  %v328_v42 = vld [vmem:[%s9893_s24 + $0xc8] sm:$0xff] }
 0x7ba   :  { %2454 = vmatprep.subr.mxu0 %v242_v43  ;;  %2525 = vmatprep.subr.mxu1 %v244_v44  ;;  %v345_v41 = vld [vmem:[%s9893_s24 + $0x150] sm:$0xff]  ;;  %v360_v43 = vld [vmem:[%s9893_s24 + $0x1c8] sm:$0xff] }
 0x7bb   :  { %2455 = vmatpush1.msra.mxu0 %v241_v45  ;;  %2488 = vmatprep.mubr.f32.mxu0 %v8316_v0  ;;  %v312_v44 = vld [vmem:[%s9893_s24 + $0x48] sm:$0xff] }
 0x7bc   :  { %2526 = vmatpush1.msra.mxu1 %v243_v46  ;;  %2559 = vmatprep.mubr.f32.mxu1 %v8316_v0  ;;  %v344_v45 = vld [vmem:[%s9893_s24 + $0x148] sm:$0xff]  ;;  %v327_v46 = vld [vmem:[%s9893_s24 + $0xc0] sm:$0xff] }
 0x7bd   :  { %7028 = vmatmul.mubr.msk.f32.vlgmr.msra.gmra.mxu0 %vm1167_vm2, %v8732_v32  ;;  %7029 = vmatmul.mubr.msk.f32.vlgmr.msra.gmra.mxu1 %vm1167_vm2, %v8732_v32 }
 0x7be   :  { %2590 = vmatprep.subr.mxu0 %v294_v47  ;;  %2661 = vmatprep.subr.mxu1 %v296_v48  ;;  %v359_v47 = vld [vmem:[%s9893_s24 + $0x1c0] sm:$0xff] }
 0x7bf   :  { %2591 = vmatpush1.msra.mxu0 %v293_v49  ;;  %2662 = vmatpush1.msra.mxu1 %v295_v50  ;;  %v311_v48 = vld [vmem:[%s9893_s24 + $0x40] sm:$0xff]  ;;  %v326_v50 = vld [vmem:[%s9893_s24 + $0xb8] sm:$0xff] }
 0x7c0   :  { %2592 = vmatprep.subr.mxu0 %v278_v51  ;;  %2663 = vmatprep.subr.mxu1 %v280_v52  ;;  %v343_v49 = vld [vmem:[%s9893_s24 + $0x140] sm:$0xff]  ;;  %v358_v51 = vld [vmem:[%s9893_s24 + $0x1b8] sm:$0xff] }
 0x7c1   :  { %2593 = vmatpush1.msra.mxu0 %v277_v53  ;;  %2664 = vmatpush1.msra.mxu1 %v279_v54  ;;  %v310_v52 = vld [vmem:[%s9893_s24 + $0x38] sm:$0xff]  ;;  %v325_v54 = vld [vmem:[%s9893_s24 + $0xb0] sm:$0xff] }
 0x7c2   :  { %2594 = vmatprep.subr.mxu0 %v262_v55  ;;  %2665 = vmatprep.subr.mxu1 %v264_v56  ;;  %v342_v53 = vld [vmem:[%s9893_s24 + $0x138] sm:$0xff]  ;;  %v357_v55 = vld [vmem:[%s9893_s24 + $0x1b0] sm:$0xff] }
 0x7c3   :  { %2595 = vmatpush1.msra.mxu0 %v261_v57  ;;  %2666 = vmatpush1.msra.mxu1 %v263_v58  ;;  %v309_v56 = vld [vmem:[%s9893_s24 + $0x30] sm:$0xff]  ;;  %v324_v58 = vld [vmem:[%s9893_s24 + $0xa8] sm:$0xff] }
 0x7c4   :  { %2596 = vmatprep.subr.mxu0 %v246_v59  ;;  %2667 = vmatprep.subr.mxu1 %v248_v60  ;;  %v341_v57 = vld [vmem:[%s9893_s24 + $0x130] sm:$0xff]  ;;  %v356_v59 = vld [vmem:[%s9893_s24 + $0x1a8] sm:$0xff] }
 0x7c5   :  { %2597 = vmatpush1.msra.mxu0 %v245_v61  ;;  %2630 = vmatprep.mubr.f32.mxu0 %v8316_v0  ;;  %v308_v60 = vld [vmem:[%s9893_s24 + $0x28] sm:$0xff] }
 0x7c6   :  { %2668 = vmatpush1.msra.mxu1 %v247_v62  ;;  %2701 = vmatprep.mubr.f32.mxu1 %v8316_v0  ;;  %v340_v61 = vld [vmem:[%s9893_s24 + $0x128] sm:$0xff]  ;;  %v323_v62 = vld [vmem:[%s9893_s24 + $0xa0] sm:$0xff] }
 0x7c7   :  { %7030 = vmatmul.mubr.msk.f32.vlgmr.msra.gmra.mxu0 %vm1167_vm2, %v8732_v32  ;;  %7031 = vmatmul.mubr.msk.f32.vlgmr.msra.gmra.mxu1 %vm1167_vm2, %v8732_v32 }
 0x7c8   :  { %2732 = vmatprep.subr.mxu0 %v298_v63  ;;  %2803 = vmatprep.subr.mxu1 %v300_v1  ;;  %v355_v63 = vld [vmem:[%s9893_s24 + $0x1a0] sm:$0xff] }
 0x7c9   :  { %2733 = vmatpush1.msra.mxu0 %v297_v2  ;;  %2804 = vmatpush1.msra.mxu1 %v299_v3  ;;  %v307_v1 = vld [vmem:[%s9893_s24 + $0x20] sm:$0xff]  ;;  %v322_v3 = vld [vmem:[%s9893_s24 + $0x98] sm:$0xff] }
 0x7ca   :  { %2734 = vmatprep.subr.mxu0 %v282_v4  ;;  %2805 = vmatprep.subr.mxu1 %v284_v5  ;;  %v339_v2 = vld [vmem:[%s9893_s24 + $0x120] sm:$0xff]  ;;  %v354_v4 = vld [vmem:[%s9893_s24 + $0x198] sm:$0xff] }
 0x7cb   :  { %2735 = vmatpush1.msra.mxu0 %v281_v6  ;;  %2806 = vmatpush1.msra.mxu1 %v283_v7  ;;  %v306_v5 = vld [vmem:[%s9893_s24 + $0x18] sm:$0xff]  ;;  %v321_v7 = vld [vmem:[%s9893_s24 + $0x90] sm:$0xff] }
 0x7cc   :  { %2736 = vmatprep.subr.mxu0 %v266_v8  ;;  %2807 = vmatprep.subr.mxu1 %v268_v9  ;;  %v338_v6 = vld [vmem:[%s9893_s24 + $0x118] sm:$0xff]  ;;  %v353_v8 = vld [vmem:[%s9893_s24 + $0x190] sm:$0xff] }
 0x7cd   :  { %2737 = vmatpush1.msra.mxu0 %v265_v10  ;;  %2808 = vmatpush1.msra.mxu1 %v267_v12  ;;  %v305_v9 = vld [vmem:[%s9893_s24 + $0x10] sm:$0xff]  ;;  %v320_v12 = vld [vmem:[%s9893_s24 + $0x88] sm:$0xff] }
 0x7ce   :  { %2738 = vmatprep.subr.mxu0 %v250_v13  ;;  %2809 = vmatprep.subr.mxu1 %v252_v11  ;;  %v337_v10 = vld [vmem:[%s9893_s24 + $0x110] sm:$0xff]  ;;  %v352_v13 = vld [vmem:[%s9893_s24 + $0x188] sm:$0xff] }
 0x7cf   :  { %2739 = vmatpush1.msra.mxu0 %v249_v14  ;;  %2772 = vmatprep.mubr.f32.mxu0 %v8316_v0  ;;  %v304_v11 = vld [vmem:[%s9893_s24 + $0x8] sm:$0xff] }
 0x7d0   :  { %2810 = vmatpush1.msra.mxu1 %v251_v15  ;;  %2843 = vmatprep.mubr.f32.mxu1 %v8316_v0  ;;  %v336_v14 = vld [vmem:[%s9893_s24 + $0x108] sm:$0xff]  ;;  %v319_v15 = vld [vmem:[%s9893_s24 + $0x80] sm:$0xff] }
 0x7d1   :  { %7032 = vmatmul.mubr.msk.f32.vlgmr.msra.gmra.mxu0 %vm1167_vm2, %v8732_v32  ;;  %7033 = vmatmul.mubr.msk.f32.vlgmr.msra.gmra.mxu1 %vm1167_vm2, %v8732_v32 }
 0x7d2   :  { %7137 = vmatprep.subr.mxu0 %v334_v16  ;;  %7172 = vmatprep.subr.mxu1 %v366_v17  ;;  %v351_v16 = vld [vmem:[%s9893_s24 + $0x180] sm:$0xff] }
 0x7d3   :  { %7138 = vmatpush3.msra.mxu0 %v318_v18  ;;  %7173 = vmatpush3.msra.mxu1 %v350_v19  ;;  %v303_v17 = vld [vmem:[%s9893_s24] sm:$0xff]  ;;  %v398_v19 = vld [vmem:[%s9893_s24 + $0x2f8] sm:$0xff] }
 0x7d4   :  { %7139 = vmatprep.subr.mxu0 %v333_v20  ;;  %7174 = vmatprep.subr.mxu1 %v365_v21  ;;  %v335_v18 = vld [vmem:[%s9893_s24 + $0x100] sm:$0xff]  ;;  %v430_v20 = vld [vmem:[%s9893_s24 + $0x3f8] sm:$0xff]  ;;  %v2199_v21 = vlaneseq }
 0x7d5   :  { %7140 = vmatpush3.msra.mxu0 %v317_v22  ;;  %7175 = vmatpush3.msra.mxu1 %v349_v23  ;;  %v7039_v23 = vld [vmem:[%s9894_s30] ss:$0 sm:$0xff] }
 0x7d6   :  { %7141 = vmatprep.subr.mxu0 %v332_v24  ;;  %7176 = vmatprep.subr.mxu1 %v364_v25  ;;  %v8869_v22 = vshrl.u32 %v2199_v21, 7 }
 0x7d7   :  { %7142 = vmatpush3.msra.mxu0 %v316_v26  ;;  %7177 = vmatpush3.msra.mxu1 %v348_v27  ;;  %v8880_v26 = vld [vmem:[%s9895_s12] sm:$0xff] }
 0x7d8   :  { %7143 = vmatprep.subr.mxu0 %v331_v28  ;;  %7178 = vmatprep.subr.mxu1 %v363_v30  ;;  %v8874_v24 = vsub.s32 0, %v8869_v22  ;;  %v8877_v25 = vsub.s32 2, %v8869_v22  ;;  %v8883_v27 = vsub.s32 1, %v8869_v22  ;;  %v8886_v28 = vsub.s32 3, %v8869_v22 }
 0x7d9   :  { %7144 = vmatpush3.msra.mxu0 %v315_v31  ;;  %7179 = vmatpush3.msra.mxu1 %v347_v33 }
 0x7da   :  { %7145 = vmatprep.subr.mxu0 %v330_v34  ;;  %7180 = vmatprep.subr.mxu1 %v362_v35  ;;  %v2202_v30 = vrot.slane %v8880_v26, %v8874_v24  ;;  %v2210_v31 = vrot.slane %v8880_v26, %v8877_v25  ;;  %v2206_v33 = vrot.slane %v8880_v26, %v8883_v27 }
 0x7db   :  { %7146 = vmatpush3.msra.mxu0 %v314_v36  ;;  %7181 = vmatpush3.msra.mxu1 %v346_v37  ;;  %v2214_v34 = vrot.slane %v8880_v26, %v8886_v28 }
 0x7dc   :  { %7147 = vmatprep.subr.mxu0 %v329_v38  ;;  %7182 = vmatprep.subr.mxu1 %v361_v39 }
 0x7dd   :  { %7148 = vmatpush3.msra.mxu0 %v313_v40  ;;  %7183 = vmatpush3.msra.mxu1 %v345_v41 }
 0x7de   :  { %7149 = vmatprep.subr.mxu0 %v328_v42  ;;  %7184 = vmatprep.subr.mxu1 %v360_v43  ;;  %v8897_v43 = vsub.s32 5, %v8869_v22 }
 0x7df   :  { %7150 = vmatpush3.msra.mxu0 %v312_v44  ;;  %7185 = vmatpush3.msra.mxu1 %v344_v45  ;;  %v8900_v44 = vsub.s32 7, %v8869_v22 }
 0x7e0   :  { %7151 = vmatprep.subr.mxu0 %v327_v46  ;;  %7186 = vmatprep.subr.mxu1 %v359_v47 }
 0x7e1   :  { %7152 = vmatpush3.msra.mxu0 %v311_v48  ;;  %7187 = vmatpush3.msra.mxu1 %v343_v49  ;;  %v382_v49 = vld [vmem:[%s9893_s24 + $0x278] sm:$0xff] }
 0x7e2   :  { %7153 = vmatprep.subr.mxu0 %v326_v50  ;;  %7188 = vmatprep.subr.mxu1 %v358_v51  ;;  %v414_v50 = vld [vmem:[%s9893_s24 + $0x378] sm:$0xff]  ;;  %v397_v51 = vld [vmem:[%s9893_s24 + $0x2f0] sm:$0xff] }
 0x7e3   :  { %7154 = vmatpush3.msra.mxu0 %v310_v52  ;;  %7189 = vmatpush3.msra.mxu1 %v342_v53  ;;  %v429_v52 = vld [vmem:[%s9893_s24 + $0x3f0] sm:$0xff]  ;;  %v2222_v53 = vrot.slane %v8880_v26, %v8897_v43 }
 0x7e4   :  { %7155 = vmatprep.subr.mxu0 %v325_v54  ;;  %7190 = vmatprep.subr.mxu1 %v357_v55  ;;  %v2230_v54 = vrot.slane %v8880_v26, %v8900_v44  ;;  %v381_v55 = vld [vmem:[%s9893_s24 + $0x270] sm:$0xff] }
 0x7e5   :  { %7156 = vmatpush3.msra.mxu0 %v309_v56  ;;  %7191 = vmatpush3.msra.mxu1 %v341_v57  ;;  %v413_v56 = vld [vmem:[%s9893_s24 + $0x370] sm:$0xff] }
 0x7e6   :  { %7157 = vmatprep.subr.mxu0 %v324_v58  ;;  %7192 = vmatprep.subr.mxu1 %v356_v59  ;;  %v396_v59 = vld [vmem:[%s9893_s24 + $0x2e8] sm:$0xff] }
 0x7e7   :  { %7158 = vmatpush3.msra.mxu0 %v308_v60  ;;  %7193 = vmatpush3.msra.mxu1 %v340_v61  ;;  %v428_v60 = vld [vmem:[%s9893_s24 + $0x3e8] sm:$0xff] }
 0x7e8   :  { %7159 = vmatprep.subr.mxu0 %v323_v62  ;;  %7194 = vmatprep.subr.mxu1 %v355_v63  ;;  %v380_v61 = vld [vmem:[%s9893_s24 + $0x268] sm:$0xff] }
 0x7e9   :  { %7160 = vmatpush3.msra.mxu0 %v307_v1  ;;  %7195 = vmatpush3.msra.mxu1 %v339_v2  ;;  %v412_v62 = vld [vmem:[%s9893_s24 + $0x368] sm:$0xff]  ;;  %v395_v2 = vld [vmem:[%s9893_s24 + $0x2e0] sm:$0xff] }
 0x7ea   :  { %7161 = vmatprep.subr.mxu0 %v322_v3  ;;  %7196 = vmatprep.subr.mxu1 %v354_v4  ;;  %v427_v3 = vld [vmem:[%s9893_s24 + $0x3e0] sm:$0xff] }
 0x7eb   :  { %7162 = vmatpush3.msra.mxu0 %v306_v5  ;;  %7197 = vmatpush3.msra.mxu1 %v338_v6  ;;  %v379_v6 = vld [vmem:[%s9893_s24 + $0x260] sm:$0xff] }
 0x7ec   :  { %7163 = vmatprep.subr.mxu0 %v321_v7  ;;  %7198 = vmatprep.subr.mxu1 %v353_v8  ;;  %v411_v7 = vld [vmem:[%s9893_s24 + $0x360] sm:$0xff] }
 0x7ed   :  { %7164 = vmatpush3.msra.mxu0 %v305_v9  ;;  %7199 = vmatpush3.msra.mxu1 %v337_v10  ;;  %v394_v10 = vld [vmem:[%s9893_s24 + $0x2d8] sm:$0xff] }
 0x7ee   :  { %7165 = vmatprep.subr.mxu0 %v320_v12  ;;  %7200 = vmatprep.subr.mxu1 %v352_v13  ;;  %v426_v12 = vld [vmem:[%s9893_s24 + $0x3d8] sm:$0xff] }
 0x7ef   :  { %7166 = vmatpush3.msra.mxu0 %v304_v11  ;;  %7201 = vmatpush3.msra.mxu1 %v336_v14  ;;  %v378_v13 = vld [vmem:[%s9893_s24 + $0x258] sm:$0xff]  ;;  %v393_v14 = vld [vmem:[%s9893_s24 + $0x2d0] sm:$0xff] }
 0x7f0   :  { %7167 = vmatprep.subr.mxu0 %v319_v15  ;;  %7202 = vmatprep.subr.mxu1 %v351_v16  ;;  %v410_v11 = vld [vmem:[%s9893_s24 + $0x358] sm:$0xff]  ;;  %v425_v15 = vld [vmem:[%s9893_s24 + $0x3d0] sm:$0xff] }
 0x7f1   :  { %7168 = vmatpush3.msra.mxu0 %v303_v17  ;;  %7203 = vmatpush3.msra.mxu1 %v335_v18  ;;  %v377_v16 = vld [vmem:[%s9893_s24 + $0x250] sm:$0xff]  ;;  %v392_v18 = vld [vmem:[%s9893_s24 + $0x2c8] sm:$0xff] }
 0x7f2   :  { %7207 = vmatprep.subr.mxu0 %v398_v19  ;;  %7242 = vmatprep.subr.mxu1 %v430_v20  ;;  %v409_v17 = vld [vmem:[%s9893_s24 + $0x350] sm:$0xff]  ;;  %v424_v19 = vld [vmem:[%s9893_s24 + $0x3c8] sm:$0xff] }
 0x7f3   :  { %3579 = vrot.lane.b32.xlu0 %v7039_v23, %s8318_s9  ;;  %v376_v20 = vld [vmem:[%s9893_s24 + $0x248] sm:$0xff] }
 0x7f4   :  { %v408_v23 = vld [vmem:[%s9893_s24 + $0x348] sm:$0xff] }
 0x874   :  { %v2348_v35 = vpop.f32.mrf.mxu0  ;;  %v2419_v36 = vpop.f32.mrf.mxu1 }
 0x875   :  { %v2349_v37 = vadd.f32 %v2348_v35, %v2202_v30  ;;  %v2420_v38 = vadd.f32 %v2419_v36, %v2210_v31  ;;  %v391_v30 = vld [vmem:[%s9893_s24 + $0x2c0] sm:$0xff]  ;;  %v390_v35 = vld [vmem:[%s9893_s24 + $0x2b8] sm:$0xff] }
 0x876   :  { %v2350_v39 = vpop.f32.mrf.mxu0  ;;  %v2421_v40 = vpop.f32.mrf.mxu1  ;;  %v423_v31 = vld [vmem:[%s9893_s24 + $0x3c0] sm:$0xff]  ;;  %v422_v36 = vld [vmem:[%s9893_s24 + $0x3b8] sm:$0xff] }
 0x877   :  { %v2351_v41 = vadd.f32 %v2350_v39, %v2206_v33  ;;  %v2422_v42 = vadd.f32 %v2421_v40, %v2214_v34  ;;  %v2850_v47 = vmax.f32 %v2349_v37, 0.0  ;;  %v2852_v48 = vmax.f32 %v2420_v38, 0.0  ;;  %v375_v33 = vld [vmem:[%s9893_s24 + $0x240] sm:$0xff]  ;;  %v374_v37 = vld [vmem:[%s9893_s24 + $0x238] sm:$0xff]  ;;  %v389_v39 = vld [vmem:[%s9893_s24 + $0x2b0] sm:$0xff] }
 0x878   :  { %v407_v34 = vld [vmem:[%s9893_s24 + $0x340] sm:$0xff]  ;;  %v406_v38 = vld [vmem:[%s9893_s24 + $0x338] sm:$0xff]  ;;  %v421_v40 = vld [vmem:[%s9893_s24 + $0x3b0] sm:$0xff] }
 0x879   :  { %v2851_v45 = vmax.f32 %v2351_v41, 0.0  ;;  %v2853_v46 = vmax.f32 %v2422_v42, 0.0  ;;  %v373_v41 = vld [vmem:[%s9893_s24 + $0x230] sm:$0xff] }
 0x87a   :  { %v405_v42 = vld [vmem:[%s9893_s24 + $0x330] sm:$0xff] }
 0x87b   :  { %2936 = vmatprep.mubr.f32.mxu0 %v2851_v45  ;;  %3006 = vmatprep.mubr.f32.mxu1 %v2853_v46  ;;  %v388_v45 = vld [vmem:[%s9893_s24 + $0x2a8] sm:$0xff] }
 0x87c   :  { %2937 = vmatmul.mubr.f32.vlgmr.msra.gmra.mxu0 %v2850_v47  ;;  %3007 = vmatmul.mubr.f32.vlgmr.msra.gmra.mxu1 %v2852_v48  ;;  %v420_v46 = vld [vmem:[%s9893_s24 + $0x3a8] sm:$0xff]  ;;  %v8951_v47 = vsub.s32 4, %v8869_v22  ;;  %v8954_v48 = vsub.s32 6, %v8869_v22 }
 0x87d   :  { %v8912_v57 = vpop.f32.mrf.mxu0  ;;  %v8914_v58 = vpop.f32.mrf.mxu1  ;;  %7208 = vmatpush3.msra.mxu0 %v382_v49  ;;  %7243 = vmatpush3.msra.mxu1 %v414_v50  ;;  %v372_v49 = vld [vmem:[%s9893_s24 + $0x228] sm:$0xff] }
 0x87e   :  { %7209 = vmatprep.subr.mxu0 %v397_v51  ;;  %7244 = vmatprep.subr.mxu1 %v429_v52  ;;  %v404_v50 = vld [vmem:[%s9893_s24 + $0x328] sm:$0xff]  ;;  %v387_v51 = vld [vmem:[%s9893_s24 + $0x2a0] sm:$0xff] }
 0x87f   :  { %v2492_v63 = vpop.f32.mrf.mxu0  ;;  %v2563_v1 = vpop.f32.mrf.mxu1  ;;  %7210 = vmatpush3.msra.mxu0 %v381_v55  ;;  %7245 = vmatpush3.msra.mxu1 %v413_v56  ;;  %v419_v52 = vld [vmem:[%s9893_s24 + $0x3a0] sm:$0xff]  ;;  %v386_v55 = vld [vmem:[%s9893_s24 + $0x298] sm:$0xff] }
 0x880   :  { %v2493_v4 = vadd.f32 %v2492_v63, %v2222_v53  ;;  %v2564_v5 = vadd.f32 %v2563_v1, %v2230_v54  ;;  %7211 = vmatprep.subr.mxu0 %v396_v59  ;;  %7246 = vmatprep.subr.mxu1 %v428_v60  ;;  %v371_v53 = vld [vmem:[%s9893_s24 + $0x220] sm:$0xff]  ;;  %v418_v56 = vld [vmem:[%s9893_s24 + $0x398] sm:$0xff]  ;;  %v2218_v59 = vrot.slane %v8880_v26, %v8951_v47  ;;  %v8975_v1 = vld [vmem:[%s9895_s12 + $0x8] sm:$0xff] }
 0x881   :  { %7212 = vmatpush3.msra.mxu0 %v380_v61  ;;  %7247 = vmatpush3.msra.mxu1 %v412_v62  ;;  %v403_v54 = vld [vmem:[%s9893_s24 + $0x320] sm:$0xff]  ;;  %v2226_v60 = vrot.slane %v8880_v26, %v8954_v48  ;;  %v370_v62 = vld [vmem:[%s9893_s24 + $0x218] sm:$0xff]  ;;  %v369_v26 = vld [vmem:[%s9893_s24 + $0x210] sm:$0xff] }
 0x882   :  { %v2855_v8 = vmax.f32 %v2493_v4, 0.0  ;;  %v2857_v9 = vmax.f32 %v2564_v5, 0.0  ;;  %7213 = vmatprep.subr.mxu0 %v395_v2  ;;  %7248 = vmatprep.subr.mxu1 %v427_v3  ;;  %v402_v63 = vld [vmem:[%s9893_s24 + $0x318] sm:$0xff]  ;;  %v385_v2 = vld [vmem:[%s9893_s24 + $0x290] sm:$0xff]  ;;  %v2238_v4 = vrot.slane %v8975_v1, %v8883_v27 }
 0x883   :  { %7214 = vmatpush3.msra.mxu0 %v379_v6  ;;  %7249 = vmatpush3.msra.mxu1 %v411_v7  ;;  %v417_v3 = vld [vmem:[%s9893_s24 + $0x390] sm:$0xff]  ;;  %v2246_v7 = vrot.slane %v8975_v1, %v8886_v28 }
 0x884   :  { %3076 = vmatprep.mubr.f32.mxu0 %v2855_v8  ;;  %3146 = vmatprep.mubr.f32.mxu1 %v2857_v9  ;;  %v401_v5 = vld [vmem:[%s9893_s24 + $0x310] sm:$0xff]  ;;  %v384_v8 = vld [vmem:[%s9893_s24 + $0x288] sm:$0xff] }
 0x885   :  { %7215 = vmatprep.subr.mxu0 %v394_v10  ;;  %7250 = vmatprep.subr.mxu1 %v426_v12  ;;  %v416_v9 = vld [vmem:[%s9893_s24 + $0x388] sm:$0xff]  ;;  %v2491_v10 = vadd.f32 %v8912_v57, %v2218_v59  ;;  %v2562_v12 = vadd.f32 %v8914_v58, %v2226_v60  ;;  %v489_v59 = vld [vmem:[%s9893_s24 + $0x5d0] sm:$0xff] }
 0x886   :  { %7216 = vmatpush3.msra.mxu0 %v378_v13  ;;  %7251 = vmatpush3.msra.mxu1 %v410_v11  ;;  %v368_v11 = vld [vmem:[%s9893_s24 + $0x208] sm:$0xff]  ;;  %v441_v60 = vld [vmem:[%s9893_s24 + $0x450] sm:$0xff] }
 0x887   :  { %7217 = vmatprep.subr.mxu0 %v393_v14  ;;  %7252 = vmatprep.subr.mxu1 %v425_v15  ;;  %v8962_v22 = vpop.f32.mrf.mxu0  ;;  %v8970_v61 = vpop.f32.mrf.mxu1  ;;  %v400_v14 = vld [vmem:[%s9893_s24 + $0x308] sm:$0xff]  ;;  %v383_v15 = vld [vmem:[%s9893_s24 + $0x280] sm:$0xff]  ;;  %v2854_v58 = vmax.f32 %v2491_v10, 0.0  ;;  %v438_v10 = vld [vmem:[%s9893_s24 + $0x438] sm:$0xff] }
 0x888   :  { %7218 = vmatpush3.msra.mxu0 %v377_v16  ;;  %7253 = vmatpush3.msra.mxu1 %v409_v17  ;;  %v415_v16 = vld [vmem:[%s9893_s24 + $0x380] sm:$0xff] }
 0x889   :  { %7219 = vmatprep.subr.mxu0 %v392_v18  ;;  %7254 = vmatprep.subr.mxu1 %v424_v19  ;;  %v2634_v6 = vpop.f32.mrf.mxu0  ;;  %v2705_v13 = vpop.f32.mrf.mxu1  ;;  %v367_v18 = vld [vmem:[%s9893_s24 + $0x200] sm:$0xff] }
 0x88a   :  { %7220 = vmatpush3.msra.mxu0 %v376_v20  ;;  %7255 = vmatpush3.msra.mxu1 %v408_v23  ;;  %v2635_v17 = vadd.f32 %v2634_v6, %v2238_v4  ;;  %v399_v19 = vld [vmem:[%s9893_s24 + $0x300] sm:$0xff]  ;;  %v2706_v57 = vadd.f32 %v2705_v13, %v2246_v7  ;;  %v2856_v20 = vmax.f32 %v2562_v12, 0.0  ;;  %v462_v23 = vld [vmem:[%s9893_s24 + $0x4f8] sm:$0xff]  ;;  %v472_v4 = vld [vmem:[%s9893_s24 + $0x548] sm:$0xff] }
 0x88b   :  { %7221 = vmatprep.subr.mxu0 %v391_v30  ;;  %7256 = vmatprep.subr.mxu1 %v423_v31  ;;  %v494_v30 = vld [vmem:[%s9893_s24 + $0x5f8] sm:$0xff]  ;;  %v439_v6 = vld [vmem:[%s9893_s24 + $0x440] sm:$0xff]  ;;  %v453_v13 = vld [vmem:[%s9893_s24 + $0x4b0] sm:$0xff] }
 0x88c   :  { %7222 = vmatpush3.msra.mxu0 %v375_v33  ;;  %7257 = vmatpush3.msra.mxu1 %v407_v34  ;;  %v446_v31 = vld [vmem:[%s9893_s24 + $0x478] sm:$0xff]  ;;  %v2859_v33 = vmax.f32 %v2635_v17, 0.0  ;;  %v471_v7 = vld [vmem:[%s9893_s24 + $0x540] sm:$0xff]  ;;  %v484_v17 = vld [vmem:[%s9893_s24 + $0x5a8] sm:$0xff] }
 0x88d   :  { %7223 = vmatprep.subr.mxu0 %v390_v35  ;;  %7258 = vmatprep.subr.mxu1 %v422_v36  ;;  %v478_v34 = vld [vmem:[%s9893_s24 + $0x578] sm:$0xff]  ;;  %v2861_v35 = vmax.f32 %v2706_v57, 0.0  ;;  %v461_v36 = vld [vmem:[%s9893_s24 + $0x4f0] sm:$0xff]  ;;  %v451_v57 = vld [vmem:[%s9893_s24 + $0x4a0] sm:$0xff] }
 0x88e   :  { %7224 = vmatpush3.msra.mxu0 %v374_v37  ;;  %7259 = vmatpush3.msra.mxu1 %v406_v38  ;;  %v493_v37 = vld [vmem:[%s9893_s24 + $0x5f0] sm:$0xff]  ;;  %v470_v12 = vld [vmem:[%s9893_s24 + $0x538] sm:$0xff] }
 0x88f   :  { %7225 = vmatprep.subr.mxu0 %v389_v39  ;;  %7260 = vmatprep.subr.mxu1 %v421_v40  ;;  %v445_v38 = vld [vmem:[%s9893_s24 + $0x470] sm:$0xff]  ;;  %v460_v40 = vld [vmem:[%s9893_s24 + $0x4e8] sm:$0xff] }
 0x890   :  { %7226 = vmatpush3.msra.mxu0 %v373_v41  ;;  %7261 = vmatpush3.msra.mxu1 %v405_v42  ;;  %v477_v39 = vld [vmem:[%s9893_s24 + $0x570] sm:$0xff]  ;;  %v492_v41 = vld [vmem:[%s9893_s24 + $0x5e8] sm:$0xff] }
 0x891   :  { %7227 = vmatprep.subr.mxu0 %v388_v45  ;;  %7262 = vmatprep.subr.mxu1 %v420_v46  ;;  %v444_v42 = vld [vmem:[%s9893_s24 + $0x468] sm:$0xff]  ;;  %v459_v46 = vld [vmem:[%s9893_s24 + $0x4e0] sm:$0xff] }
 0x892   :  { %7228 = vmatpush3.msra.mxu0 %v372_v49  ;;  %7263 = vmatpush3.msra.mxu1 %v404_v50  ;;  %v476_v45 = vld [vmem:[%s9893_s24 + $0x568] sm:$0xff]  ;;  %v491_v49 = vld [vmem:[%s9893_s24 + $0x5e0] sm:$0xff] }
 0x893   :  { %7229 = vmatprep.subr.mxu0 %v387_v51  ;;  %7264 = vmatprep.subr.mxu1 %v419_v52  ;;  %v443_v50 = vld [vmem:[%s9893_s24 + $0x460] sm:$0xff]  ;;  %v458_v52 = vld [vmem:[%s9893_s24 + $0x4d8] sm:$0xff] }
 0x894   :  { %7230 = vmatpush3.msra.mxu0 %v371_v53  ;;  %7265 = vmatpush3.msra.mxu1 %v403_v54  ;;  %v475_v51 = vld [vmem:[%s9893_s24 + $0x560] sm:$0xff]  ;;  %v490_v53 = vld [vmem:[%s9893_s24 + $0x5d8] sm:$0xff] }
 0x895   :  { %7231 = vmatprep.subr.mxu0 %v386_v55  ;;  %7266 = vmatprep.subr.mxu1 %v418_v56  ;;  %v442_v54 = vld [vmem:[%s9893_s24 + $0x458] sm:$0xff]  ;;  %v457_v56 = vld [vmem:[%s9893_s24 + $0x4d0] sm:$0xff] }
 0x896   :  { %7232 = vmatpush3.msra.mxu0 %v370_v62  ;;  %7267 = vmatpush3.msra.mxu1 %v402_v63  ;;  %v474_v55 = vld [vmem:[%s9893_s24 + $0x558] sm:$0xff]  ;;  %v473_v62 = vld [vmem:[%s9893_s24 + $0x550] sm:$0xff]  ;;  %v456_v63 = vld [vmem:[%s9893_s24 + $0x4c8] sm:$0xff] }
 0x897   :  { %7233 = vmatprep.subr.mxu0 %v385_v2  ;;  %7268 = vmatprep.subr.mxu1 %v417_v3  ;;  %v488_v2 = vld [vmem:[%s9893_s24 + $0x5c8] sm:$0xff] }
 0x898   :  { %7234 = vmatpush3.msra.mxu0 %v369_v26  ;;  %7269 = vmatpush3.msra.mxu1 %v401_v5  ;;  %v440_v3 = vld [vmem:[%s9893_s24 + $0x448] sm:$0xff]  ;;  %v455_v26 = vld [vmem:[%s9893_s24 + $0x4c0] sm:$0xff] }
 0x899   :  { %7235 = vmatprep.subr.mxu0 %v384_v8  ;;  %7270 = vmatprep.subr.mxu1 %v416_v9  ;;  %v487_v5 = vld [vmem:[%s9893_s24 + $0x5c0] sm:$0xff]  ;;  %v454_v8 = vld [vmem:[%s9893_s24 + $0x4b8] sm:$0xff] }
 0x89a   :  { %7236 = vmatpush3.msra.mxu0 %v368_v11  ;;  %7271 = vmatpush3.msra.mxu1 %v400_v14  ;;  %v486_v9 = vld [vmem:[%s9893_s24 + $0x5b8] sm:$0xff]  ;;  %v485_v11 = vld [vmem:[%s9893_s24 + $0x5b0] sm:$0xff] }
 0x89b   :  { %7237 = vmatprep.subr.mxu0 %v383_v15  ;;  %7272 = vmatprep.subr.mxu1 %v415_v16  ;;  %v437_v14 = vld [vmem:[%s9893_s24 + $0x430] sm:$0xff]  ;;  %v452_v16 = vld [vmem:[%s9893_s24 + $0x4a8] sm:$0xff] }
 0x89c   :  { %7238 = vmatpush3.msra.mxu0 %v367_v18  ;;  %7273 = vmatpush3.msra.mxu1 %v399_v19  ;;  %v469_v15 = vld [vmem:[%s9893_s24 + $0x530] sm:$0xff]  ;;  %v436_v18 = vld [vmem:[%s9893_s24 + $0x428] sm:$0xff] }
 0x89d   :  { %3077 = vmatmul.mubr.f32.vlgmr.msra.gmra.mxu0 %v2854_v58  ;;  %3147 = vmatmul.mubr.f32.vlgmr.msra.gmra.mxu1 %v2856_v20  ;;  %v468_v19 = vld [vmem:[%s9893_s24 + $0x528] sm:$0xff]  ;;  %v483_v58 = vld [vmem:[%s9893_s24 + $0x5a0] sm:$0xff] }
 0x89e   :  { %7277 = vmatprep.subr.mxu0 %v462_v23  ;;  %7312 = vmatprep.subr.mxu1 %v494_v30  ;;  %v435_v20 = vld [vmem:[%s9893_s24 + $0x420] sm:$0xff]  ;;  %v9043_v30 = vpop.f32.mrf.mxu0 }
 0x89f   :  { %7278 = vmatpush3.msra.mxu0 %v446_v31  ;;  %3216 = vmatprep.mubr.f32.mxu0 %v2859_v33  ;;  %v467_v23 = vld [vmem:[%s9893_s24 + $0x520] sm:$0xff]  ;;  %v450_v31 = vld [vmem:[%s9893_s24 + $0x498] sm:$0xff] }
 0x8a0   :  { %7313 = vmatpush3.msra.mxu1 %v478_v34  ;;  %3286 = vmatprep.mubr.f32.mxu1 %v2861_v35  ;;  %v482_v33 = vld [vmem:[%s9893_s24 + $0x598] sm:$0xff]  ;;  %v2234_v34 = vrot.slane %v8975_v1, %v8874_v24  ;;  %v2242_v35 = vrot.slane %v8975_v1, %v8877_v25 }
 0x8a1   :  { %7279 = vmatprep.subr.mxu0 %v461_v36  ;;  %7314 = vmatprep.subr.mxu1 %v493_v37  ;;  %v9051_v36 = vpop.f32.mrf.mxu1  ;;  %v434_v37 = vld [vmem:[%s9893_s24 + $0x418] sm:$0xff] }
 0x8a2   :  { %7280 = vmatpush3.msra.mxu0 %v445_v38  ;;  %7315 = vmatpush3.msra.mxu1 %v477_v39  ;;  %v466_v38 = vld [vmem:[%s9893_s24 + $0x518] sm:$0xff]  ;;  %v449_v39 = vld [vmem:[%s9893_s24 + $0x490] sm:$0xff] }
 0x8a3   :  { %7281 = vmatprep.subr.mxu0 %v460_v40  ;;  %7316 = vmatprep.subr.mxu1 %v492_v41  ;;  %v481_v40 = vld [vmem:[%s9893_s24 + $0x590] sm:$0xff]  ;;  %v2254_v41 = vrot.slane %v8975_v1, %v8897_v43 }
 0x8a4   :  { %7282 = vmatpush3.msra.mxu0 %v444_v42  ;;  %7317 = vmatpush3.msra.mxu1 %v476_v45  ;;  %v433_v42 = vld [vmem:[%s9893_s24 + $0x410] sm:$0xff] }
 0x8a5   :  { %7283 = vmatprep.subr.mxu0 %v459_v46  ;;  %7318 = vmatprep.subr.mxu1 %v491_v49  ;;  %v465_v45 = vld [vmem:[%s9893_s24 + $0x510] sm:$0xff]  ;;  %v2776_v46 = vpop.f32.mrf.mxu0  ;;  %v2262_v49 = vrot.slane %v8975_v1, %v8900_v44 }
 0x8a6   :  { %7284 = vmatpush3.msra.mxu0 %v443_v50  ;;  %7319 = vmatpush3.msra.mxu1 %v475_v51  ;;  %v448_v50 = vld [vmem:[%s9893_s24 + $0x488] sm:$0xff] }
 0x8a7   :  { %7285 = vmatprep.subr.mxu0 %v458_v52  ;;  %7320 = vmatprep.subr.mxu1 %v490_v53  ;;  %v480_v51 = vld [vmem:[%s9893_s24 + $0x588] sm:$0xff]  ;;  %v2633_v52 = vadd.f32 %v8962_v22, %v2234_v34  ;;  %v2704_v53 = vadd.f32 %v8970_v61, %v2242_v35  ;;  %v553_v34 = vld [vmem:[%s9893_s24 + $0x7d0] sm:$0xff] }
 0x8a8   :  { %7286 = vmatpush3.msra.mxu0 %v442_v54  ;;  %7321 = vmatpush3.msra.mxu1 %v474_v55  ;;  %v2847_v54 = vpop.f32.mrf.mxu1  ;;  %v432_v55 = vld [vmem:[%s9893_s24 + $0x408] sm:$0xff]  ;;  %v505_v35 = vld [vmem:[%s9893_s24 + $0x650] sm:$0xff] }
 0x8a9   :  { %7287 = vmatprep.subr.mxu0 %v457_v56  ;;  %7322 = vmatprep.subr.mxu1 %v489_v59  ;;  %v464_v56 = vld [vmem:[%s9893_s24 + $0x508] sm:$0xff]  ;;  %v447_v59 = vld [vmem:[%s9893_s24 + $0x480] sm:$0xff]  ;;  %v2848_v22 = vadd.f32 %v2847_v54, %v2262_v49  ;;  %v2858_v61 = vmax.f32 %v2633_v52, 0.0  ;;  %v502_v52 = vld [vmem:[%s9893_s24 + $0x638] sm:$0xff] }
 0x8aa   :  { %7288 = vmatpush3.msra.mxu0 %v441_v60  ;;  %7323 = vmatpush3.msra.mxu1 %v473_v62  ;;  %v479_v60 = vld [vmem:[%s9893_s24 + $0x580] sm:$0xff]  ;;  %v2777_v62 = vadd.f32 %v2776_v46, %v2254_v41  ;;  %v536_v41 = vld [vmem:[%s9893_s24 + $0x748] sm:$0xff]  ;;  %v517_v54 = vld [vmem:[%s9893_s24 + $0x6b0] sm:$0xff] }
 0x8ab   :  { %7289 = vmatprep.subr.mxu0 %v456_v63  ;;  %7324 = vmatprep.subr.mxu1 %v488_v2  ;;  %v431_v63 = vld [vmem:[%s9893_s24 + $0x400] sm:$0xff] }
 0x8ac   :  { %7290 = vmatpush3.msra.mxu0 %v440_v3  ;;  %7325 = vmatpush3.msra.mxu1 %v472_v4  ;;  %v463_v2 = vld [vmem:[%s9893_s24 + $0x500] sm:$0xff]  ;;  %v2860_v3 = vmax.f32 %v2704_v53, 0.0  ;;  %v526_v4 = vld [vmem:[%s9893_s24 + $0x6f8] sm:$0xff] }
 0x8ad   :  { %7291 = vmatprep.subr.mxu0 %v455_v26  ;;  %7326 = vmatprep.subr.mxu1 %v487_v5  ;;  %v558_v26 = vld [vmem:[%s9893_s24 + $0x7f8] sm:$0xff]  ;;  %v503_v46 = vld [vmem:[%s9893_s24 + $0x640] sm:$0xff] }
 0x8ae   :  { %7292 = vmatpush3.msra.mxu0 %v439_v6  ;;  %7327 = vmatpush3.msra.mxu1 %v471_v7  ;;  %v510_v5 = vld [vmem:[%s9893_s24 + $0x678] sm:$0xff]  ;;  %v2863_v6 = vmax.f32 %v2777_v62, 0.0  ;;  %v535_v49 = vld [vmem:[%s9893_s24 + $0x740] sm:$0xff]  ;;  %v548_v62 = vld [vmem:[%s9893_s24 + $0x7a8] sm:$0xff] }
 0x8af   :  { %7293 = vmatprep.subr.mxu0 %v454_v8  ;;  %7328 = vmatprep.subr.mxu1 %v486_v9  ;;  %v542_v7 = vld [vmem:[%s9893_s24 + $0x778] sm:$0xff]  ;;  %v2865_v8 = vmax.f32 %v2848_v22, 0.0  ;;  %v525_v9 = vld [vmem:[%s9893_s24 + $0x6f0] sm:$0xff]  ;;  %v515_v22 = vld [vmem:[%s9893_s24 + $0x6a0] sm:$0xff] }
 0x8b0   :  { %7294 = vmatpush3.msra.mxu0 %v438_v10  ;;  %7329 = vmatpush3.msra.mxu1 %v470_v12  ;;  %v557_v10 = vld [vmem:[%s9893_s24 + $0x7f0] sm:$0xff]  ;;  %v534_v53 = vld [vmem:[%s9893_s24 + $0x738] sm:$0xff] }
 0x8b1   :  { %7295 = vmatprep.subr.mxu0 %v453_v13  ;;  %7330 = vmatprep.subr.mxu1 %v485_v11  ;;  %v509_v12 = vld [vmem:[%s9893_s24 + $0x670] sm:$0xff]  ;;  %v524_v11 = vld [vmem:[%s9893_s24 + $0x6e8] sm:$0xff] }
 0x8b2   :  { %7296 = vmatpush3.msra.mxu0 %v437_v14  ;;  %7331 = vmatpush3.msra.mxu1 %v469_v15  ;;  %v541_v13 = vld [vmem:[%s9893_s24 + $0x770] sm:$0xff]  ;;  %v556_v14 = vld [vmem:[%s9893_s24 + $0x7e8] sm:$0xff] }
 0x8b3   :  { %7297 = vmatprep.subr.mxu0 %v452_v16  ;;  %7332 = vmatprep.subr.mxu1 %v484_v17  ;;  %v508_v15 = vld [vmem:[%s9893_s24 + $0x668] sm:$0xff]  ;;  %v523_v17 = vld [vmem:[%s9893_s24 + $0x6e0] sm:$0xff] }
 0x8b4   :  { %7298 = vmatpush3.msra.mxu0 %v436_v18  ;;  %7333 = vmatpush3.msra.mxu1 %v468_v19  ;;  %v540_v16 = vld [vmem:[%s9893_s24 + $0x768] sm:$0xff]  ;;  %v555_v18 = vld [vmem:[%s9893_s24 + $0x7e0] sm:$0xff] }
 0x8b5   :  { %7299 = vmatprep.subr.mxu0 %v451_v57  ;;  %7334 = vmatprep.subr.mxu1 %v483_v58  ;;  %v507_v19 = vld [vmem:[%s9893_s24 + $0x660] sm:$0xff]  ;;  %v522_v58 = vld [vmem:[%s9893_s24 + $0x6d8] sm:$0xff] }
 0x8b6   :  { %7300 = vmatpush3.msra.mxu0 %v435_v20  ;;  %7335 = vmatpush3.msra.mxu1 %v467_v23  ;;  %v539_v57 = vld [vmem:[%s9893_s24 + $0x760] sm:$0xff]  ;;  %v554_v20 = vld [vmem:[%s9893_s24 + $0x7d8] sm:$0xff] }
 0x8b7   :  { %7301 = vmatprep.subr.mxu0 %v450_v31  ;;  %7336 = vmatprep.subr.mxu1 %v482_v33  ;;  %v506_v23 = vld [vmem:[%s9893_s24 + $0x658] sm:$0xff]  ;;  %v521_v33 = vld [vmem:[%s9893_s24 + $0x6d0] sm:$0xff] }
 0x8b8   :  { %7302 = vmatpush3.msra.mxu0 %v434_v37  ;;  %7337 = vmatpush3.msra.mxu1 %v466_v38  ;;  %v538_v31 = vld [vmem:[%s9893_s24 + $0x758] sm:$0xff]  ;;  %v537_v37 = vld [vmem:[%s9893_s24 + $0x750] sm:$0xff]  ;;  %v520_v38 = vld [vmem:[%s9893_s24 + $0x6c8] sm:$0xff] }
 0x8b9   :  { %7303 = vmatprep.subr.mxu0 %v449_v39  ;;  %7338 = vmatprep.subr.mxu1 %v481_v40  ;;  %v552_v39 = vld [vmem:[%s9893_s24 + $0x7c8] sm:$0xff] }
 0x8ba   :  { %7304 = vmatpush3.msra.mxu0 %v433_v42  ;;  %7339 = vmatpush3.msra.mxu1 %v465_v45  ;;  %v504_v40 = vld [vmem:[%s9893_s24 + $0x648] sm:$0xff]  ;;  %v519_v42 = vld [vmem:[%s9893_s24 + $0x6c0] sm:$0xff] }
 0x8bb   :  { %7305 = vmatprep.subr.mxu0 %v448_v50  ;;  %7340 = vmatprep.subr.mxu1 %v480_v51  ;;  %v551_v45 = vld [vmem:[%s9893_s24 + $0x7c0] sm:$0xff]  ;;  %v518_v50 = vld [vmem:[%s9893_s24 + $0x6b8] sm:$0xff] }
 0x8bc   :  { %7306 = vmatpush3.msra.mxu0 %v432_v55  ;;  %7341 = vmatpush3.msra.mxu1 %v464_v56  ;;  %v550_v51 = vld [vmem:[%s9893_s24 + $0x7b8] sm:$0xff]  ;;  %v549_v55 = vld [vmem:[%s9893_s24 + $0x7b0] sm:$0xff] }
 0x8bd   :  { %7307 = vmatprep.subr.mxu0 %v447_v59  ;;  %7342 = vmatprep.subr.mxu1 %v479_v60  ;;  %v501_v56 = vld [vmem:[%s9893_s24 + $0x630] sm:$0xff]  ;;  %v516_v60 = vld [vmem:[%s9893_s24 + $0x6a8] sm:$0xff] }
 0x8be   :  { %7308 = vmatpush3.msra.mxu0 %v431_v63  ;;  %7343 = vmatpush3.msra.mxu1 %v463_v2  ;;  %v533_v59 = vld [vmem:[%s9893_s24 + $0x730] sm:$0xff]  ;;  %v500_v63 = vld [vmem:[%s9893_s24 + $0x628] sm:$0xff] }
 0x8bf   :  { %3217 = vmatmul.mubr.f32.vlgmr.msra.gmra.mxu0 %v2858_v61  ;;  %3287 = vmatmul.mubr.f32.vlgmr.msra.gmra.mxu1 %v2860_v3  ;;  %v532_v2 = vld [vmem:[%s9893_s24 + $0x728] sm:$0xff]  ;;  %v547_v61 = vld [vmem:[%s9893_s24 + $0x7a0] sm:$0xff] }
 0x8c0   :  { %7347 = vmatprep.subr.mxu0 %v526_v4  ;;  %7382 = vmatprep.subr.mxu1 %v558_v26  ;;  %v499_v3 = vld [vmem:[%s9893_s24 + $0x620] sm:$0xff]  ;;  %v514_v26 = vld [vmem:[%s9893_s24 + $0x698] sm:$0xff] }
 0x8c1   :  { %7348 = vmatpush3.msra.mxu0 %v510_v5  ;;  %3356 = vmatprep.mubr.f32.mxu0 %v2863_v6  ;;  %v531_v4 = vld [vmem:[%s9893_s24 + $0x720] sm:$0xff]  ;;  %v546_v5 = vld [vmem:[%s9893_s24 + $0x798] sm:$0xff]  ;;  %v2250_v6 = vrot.slane %v8975_v1, %v8951_v47 }
 0x8c2   :  { %7383 = vmatpush3.msra.mxu1 %v542_v7  ;;  %3426 = vmatprep.mubr.f32.mxu1 %v2865_v8  ;;  %v498_v7 = vld [vmem:[%s9893_s24 + $0x618] sm:$0xff] }
 0x8c3   :  { %7349 = vmatprep.subr.mxu0 %v525_v9  ;;  %7384 = vmatprep.subr.mxu1 %v557_v10  ;;  %v530_v8 = vld [vmem:[%s9893_s24 + $0x718] sm:$0xff]  ;;  %v2258_v9 = vrot.slane %v8975_v1, %v8954_v48  ;;  %v513_v10 = vld [vmem:[%s9893_s24 + $0x690] sm:$0xff]  ;;  %v2775_v1 = vadd.f32 %v9043_v30, %v2250_v6 }
 0x8c4   :  { %7350 = vmatpush3.msra.mxu0 %v509_v12  ;;  %7385 = vmatpush3.msra.mxu1 %v541_v13  ;;  %v545_v12 = vld [vmem:[%s9893_s24 + $0x790] sm:$0xff] }
 0x8c5   :  { %7351 = vmatprep.subr.mxu0 %v524_v11  ;;  %7386 = vmatprep.subr.mxu1 %v556_v14  ;;  %v497_v13 = vld [vmem:[%s9893_s24 + $0x610] sm:$0xff]  ;;  %v512_v14 = vld [vmem:[%s9893_s24 + $0x688] sm:$0xff] }
 0x8c6   :  { %7352 = vmatpush3.msra.mxu0 %v508_v15  ;;  %7387 = vmatpush3.msra.mxu1 %v540_v16  ;;  %v529_v11 = vld [vmem:[%s9893_s24 + $0x710] sm:$0xff]  ;;  %v544_v15 = vld [vmem:[%s9893_s24 + $0x788] sm:$0xff] }
 0x8c7   :  { %7353 = vmatprep.subr.mxu0 %v523_v17  ;;  %7388 = vmatprep.subr.mxu1 %v555_v18  ;;  %v496_v16 = vld [vmem:[%s9893_s24 + $0x608] sm:$0xff]  ;;  %v2846_v18 = vadd.f32 %v9051_v36, %v2258_v9  ;;  %v3572_v36 = vpop.permute.xlu1 %3571 }
 0x8c8   :  { %7354 = vmatpush3.msra.mxu0 %v507_v19  ;;  %7389 = vmatpush3.msra.mxu1 %v539_v57  ;;  %v528_v17 = vld [vmem:[%s9893_s24 + $0x708] sm:$0xff]  ;;  %v511_v19 = vld [vmem:[%s9893_s24 + $0x680] sm:$0xff] }
 0x8c9   :  { %7355 = vmatprep.subr.mxu0 %v522_v58  ;;  %7390 = vmatprep.subr.mxu1 %v554_v20  ;;  %v543_v57 = vld [vmem:[%s9893_s24 + $0x780] sm:$0xff]  ;;  %v2864_v30 = vmax.f32 %v2846_v18, 0.0 }
 0x8ca   :  { %7356 = vmatpush3.msra.mxu0 %v506_v23  ;;  %7391 = vmatpush3.msra.mxu1 %v538_v31  ;;  %v495_v58 = vld [vmem:[%s9893_s24 + $0x600] sm:$0xff]  ;;  %v3574_v23 = vpop.permute.xlu0 %3573  ;;  %v2862_v31 = vmax.f32 %v2775_v1, 0.0 }
 0x8cb   :  { %7357 = vmatprep.subr.mxu0 %v521_v33  ;;  %7392 = vmatprep.subr.mxu1 %v553_v34  ;;  %v527_v20 = vld [vmem:[%s9893_s24 + $0x700] sm:$0xff]  ;;  %v9146_v33 = vld [vmem:[%s9890_s8 + $0x18] sm:$0xff] }
 0x8cc   :  { %7358 = vmatpush3.msra.mxu0 %v505_v35  ;;  %7393 = vmatpush3.msra.mxu1 %v537_v37  ;;  %v9152_v35 = vld [vmem:[%s9890_s8 + $0x10] sm:$0xff]  ;;  %v9158_v37 = vld [vmem:[%s9890_s8 + $0x8] sm:$0xff] }
 0x8cd   :  { %7359 = vmatprep.subr.mxu0 %v520_v38  ;;  %7394 = vmatprep.subr.mxu1 %v552_v39  ;;  %v3568_v38 = vpop.permute.xlu1 %3567  ;;  %v9164_v39 = vld [vmem:[%s9890_s8] sm:$0xff] }
 0x8ce   :  { %7360 = vmatpush3.msra.mxu0 %v504_v40  ;;  %7395 = vmatpush3.msra.mxu1 %v536_v41  ;;  %v3570_v34 = vpop.permute.xlu0 %3569 }
 0x8cf   :  { %7361 = vmatprep.subr.mxu0 %v519_v42  ;;  %7396 = vmatprep.subr.mxu1 %v551_v45  ;;  %v7034_v42 = vld [vmem:[%s9896_s20] ss:$0 sm:$0xff] }
 0x8d0   :  { %7362 = vmatpush3.msra.mxu0 %v503_v46  ;;  %7397 = vmatpush3.msra.mxu1 %v535_v49 }
 0x8d1   :  { %7363 = vmatprep.subr.mxu0 %v518_v50  ;;  %7398 = vmatprep.subr.mxu1 %v550_v51 }
 0x8d2   :  { %7364 = vmatpush3.msra.mxu0 %v502_v52  ;;  %7399 = vmatpush3.msra.mxu1 %v534_v53 }
 0x8d3   :  { %7365 = vmatprep.subr.mxu0 %v517_v54  ;;  %7400 = vmatprep.subr.mxu1 %v549_v55 }
 0x8d4   :  { %7366 = vmatpush3.msra.mxu0 %v501_v56  ;;  %7401 = vmatpush3.msra.mxu1 %v533_v59 }
 0x8d5   :  { %7367 = vmatprep.subr.mxu0 %v516_v60  ;;  %7402 = vmatprep.subr.mxu1 %v548_v62 }
 0x8d6   :  { %7368 = vmatpush3.msra.mxu0 %v500_v63  ;;  %7403 = vmatpush3.msra.mxu1 %v532_v2 }
 0x8d7   :  { %7369 = vmatprep.subr.mxu0 %v515_v22  ;;  %7404 = vmatprep.subr.mxu1 %v547_v61 }
 0x8d8   :  { %7370 = vmatpush3.msra.mxu0 %v499_v3  ;;  %7405 = vmatpush3.msra.mxu1 %v531_v4 }
 0x8d9   :  { %7371 = vmatprep.subr.mxu0 %v514_v26  ;;  %7406 = vmatprep.subr.mxu1 %v546_v5 }
 0x8da   :  { %7372 = vmatpush3.msra.mxu0 %v498_v7  ;;  %7407 = vmatpush3.msra.mxu1 %v530_v8 }
 0x8db   :  { %7373 = vmatprep.subr.mxu0 %v513_v10  ;;  %7408 = vmatprep.subr.mxu1 %v545_v12 }
 0x8dc   :  { %7374 = vmatpush3.msra.mxu0 %v497_v13  ;;  %7409 = vmatpush3.msra.mxu1 %v529_v11 }
 0x8dd   :  { %7375 = vmatprep.subr.mxu0 %v512_v14  ;;  %7410 = vmatprep.subr.mxu1 %v544_v15  ;;  %v3580_v15 = vpop.permute.xlu0 %3579 }
 0x8de   :  { %7376 = vmatpush3.msra.mxu0 %v496_v16  ;;  %7411 = vmatpush3.msra.mxu1 %v528_v17  ;;  %v9185_v17 = vld [vmem:[%s9894_s30] ss:$0 sm:$0xff] }
 0x8df   :  { %7377 = vmatprep.subr.mxu0 %v511_v19  ;;  %7412 = vmatprep.subr.mxu1 %v543_v57 }
 0x8e0   :  { %7378 = vmatpush3.msra.mxu0 %v495_v58  ;;  %7413 = vmatpush3.msra.mxu1 %v527_v20 }
 0x8e1   :  { %3357 = vmatmul.mubr.f32.vlgmr.msra.gmra.mxu0 %v2862_v31  ;;  %7873 = vmatprep.subr.mxu0 %v8316_v0 }
 0x8e2   :  { %3427 = vmatmul.mubr.f32.vlgmr.msra.gmra.mxu1 %v2864_v30  ;;  %7884 = vmatprep.subr.mxu1 %v8316_v0 }
 0x8e3   :  { %7874 = vmatpush3.msra.mxu0 %v9146_v33  ;;  %7885 = vmatpush3.msra.mxu1 %v3574_v23 }
 0x8e4   :  { %7875 = vmatprep.subr.mxu0 %v8316_v0  ;;  %7886 = vmatprep.subr.mxu1 %v8316_v0 }
 0x8e5   :  { %7876 = vmatpush3.msra.mxu0 %v9152_v35  ;;  %7887 = vmatpush3.msra.mxu1 %v3572_v36 }
 0x8e6   :  { %7877 = vmatprep.subr.mxu0 %v8316_v0  ;;  %7888 = vmatprep.subr.mxu1 %v8316_v0 }
 0x8e7   :  { %7878 = vmatpush3.msra.mxu0 %v9158_v37  ;;  %7889 = vmatpush3.msra.mxu1 %v3570_v34 }
 0x8e8   :  { %7879 = vmatprep.subr.mxu0 %v8316_v0  ;;  %7890 = vmatprep.subr.mxu1 %v8316_v0 }
 0x8e9   :  { %7880 = vmatpush3.msra.mxu0 %v9164_v39  ;;  %7881 = vmatprep.mubr.msk.f32.mxu0 %vm8317_vm0, %v8316_v0 }
 0x8ea   :  { %7891 = vmatpush3.msra.mxu1 %v3568_v38  ;;  %7892 = vmatprep.mubr.msk.f32.mxu1 %vm8317_vm0, %v8316_v0 }
 0x8eb   :  { %7882 = vmatmul.mubr.msk.f32.vlgmr.msra.gmra.mxu0 %vm1167_vm2, %v8613_v29  ;;  %7893 = vmatmul.mubr.msk.f32.vlgmr.msra.gmra.mxu1 %vm1167_vm2, %v8613_v29 }
 0x8ec   :  { %7906 = vmatprep.subr.mxu1 %v8316_v0  ;;  %7908 = vmatprep.mubr.msk.f32.mxu1 %vm8317_vm0, %v8316_v0 }
 0x8ed   :  { %7895 = vmatprep.subr.mxu0 %v8316_v0  ;;  %7903 = vmatprep.mubr.msk.f32.mxu0 %vm8317_vm0, %v8316_v0 }
 0x93c   :  { %v7169_v40 = vpop.f32.mrf.mxu0  ;;  %v7204_v41 = vpop.f32.mrf.mxu1 }
 0x93e   :  { %v7170_v45 = vpop.f32.mrf.mxu0  ;;  %v7205_v46 = vpop.f32.mrf.mxu1 }
 0x93f   :  { %v7171_v49 = vadd.f32 %v7170_v45, %v7169_v40  ;;  %v7206_v50 = vadd.f32 %v7205_v46, %v7204_v41 }
 0x941   :  { %v2939_v51 = vadd.f32 %v7171_v49, %v7034_v42 }
 0x943   :  { %v3009_v52 = vadd.f32 %v7206_v50, %v2939_v51 }
 0x95d   :  { %v7239_v53 = vpop.f32.mrf.mxu0  ;;  %v7274_v54 = vpop.f32.mrf.mxu1 }
 0x95f   :  { %v7240_v55 = vpop.f32.mrf.mxu0  ;;  %v7275_v56 = vpop.f32.mrf.mxu1 }
 0x960   :  { %v7241_v59 = vadd.f32 %v7240_v55, %v7239_v53  ;;  %v7276_v60 = vadd.f32 %v7275_v56, %v7274_v54 }
 0x962   :  { %v3079_v62 = vadd.f32 %v7241_v59, %v3009_v52 }
 0x964   :  { %v3149_v63 = vadd.f32 %v7276_v60, %v3079_v62 }
 0x97f   :  { %v7309_v2 = vpop.f32.mrf.mxu0  ;;  %v7344_v22 = vpop.f32.mrf.mxu1 }
 0x981   :  { %v7310_v61 = vpop.f32.mrf.mxu0  ;;  %v7345_v3 = vpop.f32.mrf.mxu1 }
 0x982   :  { %v7311_v4 = vadd.f32 %v7310_v61, %v7309_v2  ;;  %v7346_v26 = vadd.f32 %v7345_v3, %v7344_v22 }
 0x984   :  { %v3219_v5 = vadd.f32 %v7311_v4, %v3149_v63 }
 0x986   :  { %v3289_v6 = vadd.f32 %v7346_v26, %v3219_v5 }
 0x9a1   :  { %v7379_v7 = vpop.f32.mrf.mxu0 }
 0x9a2   :  { %v7414_v8 = vpop.f32.mrf.mxu1 }
 0x9a3   :  { %v7380_v9 = vpop.f32.mrf.mxu0 }
 0x9a4   :  { %v7381_v10 = vadd.f32 %v7380_v9, %v7379_v7  ;;  %v7415_v12 = vpop.f32.mrf.mxu1 }
 0x9a5   :  { %v7416_v13 = vadd.f32 %v7415_v12, %v7414_v8 }
 0x9a6   :  { %v3359_v11 = vadd.f32 %v7381_v10, %v3289_v6 }
 0x9a8   :  { %v9182_v14 = vadd.f32 %v7416_v13, %v3359_v11 }
 0x9ab   :  { %v3559_v1 = vpop.f32.mrf.mxu0  ;;  %v3648_v16 = vpop.f32.mrf.mxu1 }
 0x9ac   :  { %v3560_v18 = vadd.f32 %v9185_v17, %v3559_v1  ;;  %v3649_v19 = vadd.f32 %v3648_v16, %v3580_v15 }
 0x9ad   :  { %v7883_v57 = vpop.f32.mrf.mxu0  ;;  %v7894_v58 = vpop.f32.mrf.mxu1 }
 0x9ae   :  { %v3737_v20 = vmul.f32 0.35355338, %v3560_v18  ;;  %3900 = vrot.lane.b32.xlu1 %v3649_v19, %s8320_s13  ;;  %7907 = vmatpush3.xpose.msk.msra.mxu1 %vm925_vm1, %v3649_v19 }
 0x9af   :  { %7916 = vmatprep.subr.mxu1 %v8316_v0 }
 0x9b0   :  { %3898 = vrot.lane.b32.xlu0 %v3737_v20, %s8320_s13 }
 0x9b1   :  { %7909 = vmatmul.mubr.msk.f32.vlgmr.msra.gmra.mxu1 %vm925_vm1, %v3737_v20 }
 0x9b2   :  { %4066 = vrot.lane.b32.xlu1 %v3649_v19, %s8321_s17  ;;  %7918 = vmatprep.mubr.msk.f32.mxu1 %vm8317_vm0, %v8316_v0 }
 0x9b4   :  { %4064 = vrot.lane.b32.xlu0 %v3737_v20, %s8321_s17 }
 0x9b6   :  { %4231 = vrot.lane.b32.xlu1 %v3649_v19, %s8322_s21 }
 0x9b8   :  { %4229 = vrot.lane.b32.xlu0 %v3737_v20, %s8322_s21 }
 0x9ba   :  { %3658 = vrot.lane.b32.xlu1 %v9146_v33, %s8319_s5 }
 0x9bc   :  { %3656 = vrot.lane.b32.xlu0 %v9152_v35, %s8319_s5 }
 0x9be   :  { %3654 = vrot.lane.b32.xlu1 %v9158_v37, %s8319_s5 }
 0x9c0   :  { %3652 = vrot.lane.b32.xlu0 %v9164_v39, %s8319_s5 }
 0xa20   :  { %v3901_v23 = vpop.permute.xlu1 %3900 }
 0xa21   :  { %7917 = vmatpush3.xpose.msk.msra.mxu1 %vm925_vm1, %v3901_v23 }
 0xa22   :  { %v3899_v31 = vpop.permute.xlu0 %3898  ;;  %7926 = vmatprep.subr.mxu1 %v8316_v0 }
 0xa24   :  { %v4067_v30 = vpop.permute.xlu1 %4066  ;;  %7919 = vmatmul.mubr.msk.f32.vlgmr.msra.gmra.mxu1 %vm925_vm1, %v3899_v31 }
 0xa25   :  { %7927 = vmatpush3.xpose.msk.msra.mxu1 %vm925_vm1, %v4067_v30  ;;  %7928 = vmatprep.mubr.msk.f32.mxu1 %vm8317_vm0, %v8316_v0 }
 0xa26   :  { %v4065_v36 = vpop.permute.xlu0 %4064  ;;  %7936 = vmatprep.subr.mxu1 %v8316_v0 }
 0xa28   :  { %v4232_v33 = vpop.permute.xlu1 %4231  ;;  %7929 = vmatmul.mubr.msk.f32.vlgmr.msra.gmra.mxu1 %vm925_vm1, %v4065_v36 }
 0xa29   :  { %7937 = vmatpush3.xpose.msk.msra.mxu1 %vm925_vm1, %v4232_v33  ;;  %7938 = vmatprep.mubr.msk.f32.mxu1 %vm8317_vm0, %v8316_v0 }
 0xa2a   :  { %v4230_v34 = vpop.permute.xlu0 %4229  ;;  %7946 = vmatprep.subr.mxu1 %v8316_v0 }
 0xa2c   :  { %v3659_v35 = vpop.permute.xlu1 %3658  ;;  %7939 = vmatmul.mubr.msk.f32.vlgmr.msra.gmra.mxu1 %vm925_vm1, %v4230_v34 }
 0xa2d   :  { %7896 = vmatpush3.msra.mxu0 %v3659_v35  ;;  %7954 = vmatprep.mubr.msk.f32.mxu1 %vm8317_vm0, %v8316_v0 }
 0xa2e   :  { %v3657_v37 = vpop.permute.xlu0 %3656  ;;  %7897 = vmatprep.subr.mxu0 %v8316_v0 }
 0xa2f   :  { %7898 = vmatpush3.msra.mxu0 %v3657_v37 }
 0xa30   :  { %7899 = vmatprep.subr.mxu0 %v8316_v0  ;;  %v3655_v38 = vpop.permute.xlu1 %3654 }
 0xa31   :  { %7900 = vmatpush3.msra.mxu0 %v3655_v38 }
 0xa32   :  { %v3653_v39 = vpop.permute.xlu0 %3652  ;;  %7901 = vmatprep.subr.mxu0 %v8316_v0 }
 0xa33   :  { %7902 = vmatpush3.msra.mxu0 %v3653_v39 }
 0xa34   :  { %7904 = vmatmul.mubr.msk.f32.vlgmr.msra.gmra.mxu0 %vm1167_vm2, %v8613_v29  ;;  %7911 = vmatprep.subr.mxu0 %v8316_v0 }
 0xa35   :  { %7913 = vmatprep.mubr.msk.f32.mxu0 %vm8317_vm0, %v8316_v0 }
 0xa71   :  { %v3810_v40 = vpop.f32.mrf.mxu1 }
 0xa72   :  { %v3814_v41 = vsel %vm925_vm1, %v3810_v40, -inf }
 0xa73   :  { %3815 = vmax.xlane.f32.xlu1 %v3814_v41  ;;  %v7910_v42 = vpop.f32.mrf.mxu1 }
 0xa74   :  { %v574_v42 = vld [vmem:[%s9897_s4 + $0x18] sm:$0xff] }
 0xa75   :  { %7947 = vmatpush3.msra.mxu1 %v574_v42 }
 0xa76   :  { %7948 = vmatprep.subr.mxu1 %v8316_v0 }
 0xae4   :  { %v3972_v45 = vpop.f32.mrf.mxu1 }
 0xae5   :  { %v3976_v46 = vsel %vm925_vm1, %v3972_v45, -inf }
 0xae6   :  { %3977 = vmax.xlane.f32.xlu0 %v3976_v46  ;;  %v7920_v49 = vpop.f32.mrf.mxu1  ;;  %v572_v46 = vld [vmem:[%s9897_s4 + $0x8] sm:$0xff] }
 0xae7   :  { %v571_v49 = vld [vmem:[%s9897_s4] sm:$0xff] }
 0xae8   :  { %v4138_v50 = vpop.f32.mrf.mxu1 }
 0xae9   :  { %v4142_v51 = vsel %vm925_vm1, %v4138_v50, -inf }
 0xaea   :  { %4143 = vmax.xlane.f32.xlu0 %v4142_v51  ;;  %v7930_v52 = vpop.f32.mrf.mxu1 }
 0xaec   :  { %v4303_v53 = vpop.f32.mrf.mxu1 }
 0xaed   :  { %v4307_v54 = vsel %vm925_vm1, %v4303_v53, -inf }
 0xaee   :  { %4308 = vmax.xlane.f32.xlu1 %v4307_v54  ;;  %v7940_v55 = vpop.f32.mrf.mxu1 }
 0xaf4   :  { %v3733_v56 = vpop.f32.mrf.mxu0 }
 0xaf6   :  { %v7905_v59 = vpop.f32.mrf.mxu0 }
 0xafc   :  { %v3816_v60 = vpop.xlane.xlu1 %3815 }
 0xafd   :  { %v3817_v62 = vsub.f32 %v3810_v40, %v3816_v60 }
 0xaff   :  { %v3818_v63 = vmul.f32 1.442695, %v3817_v62 }
 0xb00   :  { %3664 = vrot.lane.b32.xlu0 %v9185_v17, %s8319_s5 }
 0xb01   :  { %8129 = vpow2.f32 %v3818_v63 }
 0xb0e   :  { %v8130_v2 = vpop.eup %8129 }
 0xb0f   :  { %v3820_v22 = vsel %vm925_vm1, %v8130_v2, 0.0 }
 0xb10   :  { %3821 = vadd.xlane.f32.xlu1 %v3820_v22 }
 0xb6f   :  { %v3978_v61 = vpop.xlane.xlu0 %3977 }
 0xb70   :  { %v3979_v3 = vsub.f32 %v3972_v45, %v3978_v61  ;;  %v573_v45 = vld [vmem:[%s9897_s4 + $0x10] sm:$0xff] }
 0xb71   :  { %7949 = vmatpush3.msra.mxu1 %v573_v45 }
 0xb72   :  { %v3980_v4 = vmul.f32 1.442695, %v3979_v3  ;;  %7950 = vmatprep.subr.mxu1 %v8316_v0 }
 0xb73   :  { %v4144_v26 = vpop.xlane.xlu0 %4143  ;;  %7951 = vmatpush3.msra.mxu1 %v572_v46 }
 0xb74   :  { %8131 = vpow2.f32 %v3980_v4  ;;  %v4145_v5 = vsub.f32 %v4138_v50, %v4144_v26  ;;  %7952 = vmatprep.subr.mxu1 %v8316_v0 }
 0xb75   :  { %7953 = vmatpush3.msra.mxu1 %v571_v49 }
 0xb76   :  { %v4146_v6 = vmul.f32 1.442695, %v4145_v5  ;;  %7968 = vmatprep.subr.mxu1 %v8316_v0 }
 0xb77   :  { %v3665_v7 = vpop.permute.xlu0 %3664  ;;  %v4309_v8 = vpop.xlane.xlu1 %4308 }
 0xb78   :  { %8133 = vpow2.f32 %v4146_v6  ;;  %v3734_v9 = vadd.f32 %v3733_v56, %v3665_v7  ;;  %v4310_v10 = vsub.f32 %v4303_v53, %v4309_v8  ;;  %v3432_v56 = vadd.f32 %v9182_v14, %v8732_v32 }
 0xb7a   :  { %v4311_v12 = vmul.f32 1.442695, %v4310_v10  ;;  %4153 = vrot.lane.b32.xlu0 %v3734_v9, %s8321_s17  ;;  %7912 = vmatpush3.msra.mxu0 %v3734_v9  ;;  %v3433_v59 = vsel %vm1167_vm2, %v3432_v56, 0.0 }
 0xb7b   :  { %7921 = vmatprep.subr.mxu0 %v8316_v0 }
 0xb7c   :  { %8135 = vpow2.f32 %v4311_v12  ;;  %v7055_v12 = vld [vmem:[%s9898_s2] ss:$0 sm:$0xff] }
 0xb7e   :  { %4318 = vrot.lane.b32.xlu0 %v3734_v9, %s8322_s21 }
 0xb81   :  { %v8132_v13 = vpop.eup %8131 }
 0xb82   :  { %v3982_v11 = vsel %vm925_vm1, %v8132_v13, 0.0 }
 0xb83   :  { %3983 = vadd.xlane.f32.xlu1 %v3982_v11 }
 0xb85   :  { %v8134_v15 = vpop.eup %8133 }
 0xb86   :  { %v4148_v1 = vsel %vm925_vm1, %v8134_v15, 0.0 }
 0xb87   :  { %4149 = vadd.xlane.f32.xlu1 %v4148_v1 }
 0xb89   :  { %v8136_v16 = vpop.eup %8135 }
 0xb8a   :  { %v4313_v17 = vsel %vm925_vm1, %v8136_v16, 0.0 }
 0xb8b   :  { %4314 = vadd.xlane.f32.xlu1 %v4313_v17 }
 0xb99   :  { %v3822_v18 = vpop.xlane.xlu1 %3821 }
 0xb9a   :  { %8137 = vrcp.f32 %v3822_v18 }
 0xb9c   :  { %3988 = vrot.lane.b32.xlu1 %v3734_v9, %s8320_s13 }
 0xba7   :  { %v8138_v19 = vpop.eup %8137 }
 0xba8   :  { %v3824_v57 = vmul.f32 %v8138_v19, %v8130_v2 }
 0xbaa   :  { %7914 = vmatmul.mubr.msk.f32.vlgmr.msra.gmra.mxu0 %vm925_vm1, %v3824_v57 }
 0xbab   :  { %7923 = vmatprep.mubr.msk.f32.mxu0 %vm8317_vm0, %v8316_v0 }
 0xbec   :  { %v4154_v36 = vpop.permute.xlu0 %4153 }
 0xbf0   :  { %v4319_v37 = vpop.permute.xlu0 %4318 }
 0xc0c   :  { %v3984_v58 = vpop.xlane.xlu1 %3983 }
 0xc0d   :  { %8139 = vrcp.f32 %v3984_v58  ;;  %v9287_v58 = vld [vmem:[%s9901_s11 + $0x18] sm:$0xff] }
 0xc10   :  { %v4150_v20 = vpop.xlane.xlu1 %4149 }
 0xc11   :  { %8141 = vrcp.f32 %v4150_v20  ;;  %v9292_v20 = vld [vmem:[%s9901_s11 + $0x10] sm:$0xff] }
 0xc14   :  { %v4315_v23 = vpop.xlane.xlu1 %4314 }
 0xc15   :  { %8143 = vrcp.f32 %v4315_v23  ;;  %v9296_v23 = vld [vmem:[%s9901_s11 + $0x8] sm:$0xff] }
 0xc18   :  { %v3989_v31 = vpop.permute.xlu1 %3988 }
 0xc19   :  { %7922 = vmatpush3.msra.mxu0 %v3989_v31 }
 0xc1a   :  { %v8140_v30 = vpop.eup %8139  ;;  %7931 = vmatprep.subr.mxu0 %v8316_v0 }
 0xc1b   :  { %v3986_v33 = vmul.f32 %v8140_v30, %v8132_v13  ;;  %v7035_v13 = vld [vmem:[%s9899_s7] ss:$0 sm:$0xff] }
 0xc1d   :  { %7924 = vmatmul.mubr.msk.f32.vlgmr.msra.gmra.mxu0 %vm925_vm1, %v3986_v33 }
 0xc1e   :  { %v8142_v34 = vpop.eup %8141  ;;  %7932 = vmatpush3.msra.mxu0 %v4154_v36  ;;  %7933 = vmatprep.mubr.msk.f32.mxu0 %vm8317_vm0, %v8316_v0 }
 0xc1f   :  { %7941 = vmatprep.subr.mxu0 %v8316_v0  ;;  %v4152_v35 = vmul.f32 %v8142_v34, %v8134_v15  ;;  %v7036_v15 = vld [vmem:[%s9900_s10] ss:$0 sm:$0xff] }
 0xc21   :  { %7934 = vmatmul.mubr.msk.f32.vlgmr.msra.gmra.mxu0 %vm925_vm1, %v4152_v35 }
 0xc22   :  { %v8144_v38 = vpop.eup %8143  ;;  %7942 = vmatpush3.msra.mxu0 %v4319_v37  ;;  %7943 = vmatprep.mubr.msk.f32.mxu0 %vm8317_vm0, %v8316_v0 }
 0xc23   :  { %v4317_v39 = vmul.f32 %v8144_v38, %v8136_v16  ;;  %7957 = vmatprep.subr.mxu0 %v8316_v0 }
 0xc25   :  { %7944 = vmatmul.mubr.msk.f32.vlgmr.msra.gmra.mxu0 %vm925_vm1, %v4317_v39 }
 0xc26   :  { %7965 = vmatprep.mubr.msk.f32.mxu0 %vm8317_vm0, %v8316_v0  ;;  %7958 = vmatpush3.msra.mxu0 %v9287_v58 }
 0xc27   :  { %7959 = vmatprep.subr.mxu0 %v8316_v0 }
 0xc28   :  { %7960 = vmatpush3.msra.mxu0 %v9292_v20 }
 0xc29   :  { %7961 = vmatprep.subr.mxu0 %v8316_v0 }
 0xc2a   :  { %7962 = vmatpush3.msra.mxu0 %v9296_v23 }
 0xc2b   :  { %7963 = vmatprep.subr.mxu0 %v8316_v0 }
 0xc6a   :  { %v3894_v40 = vpop.f32.mrf.mxu0 }
 0xc6c   :  { %v7915_v41 = vpop.f32.mrf.mxu0 }
 0xc6d   :  { %v9317_v41 = vld [vmem:[%s9902_s16] ss:$0 sm:$0xff] }
 0xcdd   :  { %v4060_v50 = vpop.f32.mrf.mxu0 }
 0xcde   :  { %4395 = vrot.lane.b32.xlu0 %v4060_v50, %s8323_s25 }
 0xcdf   :  { %v7925_v51 = vpop.f32.mrf.mxu0 }
 0xce1   :  { %v4225_v52 = vpop.f32.mrf.mxu0 }
 0xce2   :  { %4399 = vrot.lane.b32.xlu0 %v4225_v52, %s8324_s29 }
 0xce3   :  { %v7935_v53 = vpop.f32.mrf.mxu0 }
 0xce5   :  { %v4390_v54 = vpop.f32.mrf.mxu0 }
 0xce6   :  { %4403 = vrot.lane.b32.xlu1 %v4390_v54, %s8325_s3 }
 0xce7   :  { %v7945_v55 = vpop.f32.mrf.mxu0 }
 0xd01   :  { %3434 = vadd.xlane.f32.xlu0 %v3433_v59  ;;  %v7037_v59 = vld [vmem:[%s9903_s15] ss:$0 sm:$0xff] }
 0xd50   :  { %v4396_v60 = vpop.permute.xlu0 %4395 }
 0xd51   :  { %v4406_v63 = vsel %vm925_vm1, %v3894_v40, %v4396_v60 }
 0xd54   :  { %v4400_v62 = vpop.permute.xlu0 %4399 }
 0xd55   :  { %v4407_v2 = vsel %vm2085_vm3, %v4406_v63, %v4400_v62  ;;  %v7038_v62 = vld [vmem:[%s9904_s18] ss:$0 sm:$0xff] }
 0xd58   :  { %v4404_v22 = vpop.permute.xlu1 %4403 }
 0xd59   :  { %v4408_v61 = vsel %vm2087_vm4, %v4407_v2, %v4404_v22  ;;  %v7057_v22 = vld [vmem:[%s9905_s0] ss:$0 sm:$0xff] }
 0xd5a   :  { %7955 = vmatmul.mubr.msk.f32.vlgmr.msra.gmra.mxu1 %vm1167_vm2, %v4408_v61 }
 0xd5b   :  { %7976 = vmatprep.mubr.msk.f32.mxu1 %vm8317_vm0, %v8316_v0 }
 0xd8a   :  { %v3435_v32 = vpop.xlane.xlu0 %3434 }
 0xd8b   :  { %v3436_v14 = vmul.f32 0.03125, %v3435_v32 }
 0xd8d   :  { %v3437_v3 = vsub.f32 %v3432_v56, %v3436_v14  ;;  %v7058_v14 = vld [vmem:[%s9906_s23] ss:$0 sm:$0xff] }
 0xd8f   :  { %v3438_v4 = vmul.f32 %v3437_v3, %v3437_v3 }
 0xd91   :  { %v3439_v26 = vsel %vm1167_vm2, %v3438_v4, 0.0 }
 0xd92   :  { %3440 = vadd.xlane.f32.xlu1 %v3439_v26 }
 0xe1a   :  { %v4484_v5 = vpop.f32.mrf.mxu1 }
 0xe1b   :  { %v3441_v6 = vpop.xlane.xlu1 %3440  ;;  %v4485_v1 = vadd.f32 %v7055_v12, %v4484_v5 }
 0xe1c   :  { %v3442_v7 = vmul.f32 0.03125, %v3441_v6  ;;  %v7956_v8 = vpop.f32.mrf.mxu1 }
 0xe1d   :  { %v4488_v19 = vadd.f32 %v4485_v1, %v8613_v29  ;;  %v9302_v29 = vld [vmem:[%s9901_s11] sm:$0xff] }
 0xe1e   :  { %v3443_v9 = vadd.f32 1e-05, %v3442_v7  ;;  %7964 = vmatpush3.msra.mxu0 %v9302_v29 }
 0xe1f   :  { %v4489_v57 = vsel %vm1167_vm2, %v4488_v19, 0.0  ;;  %7979 = vmatprep.subr.mxu0 %v8316_v0 }
 0xe20   :  { %8145 = vrsqrt.f32 %v3443_v9 }
 0xe2d   :  { %v8146_v10 = vpop.eup %8145 }
 0xe2e   :  { %v3445_v11 = vmul.f32 %v8146_v10, %v3437_v3 }
 0xe30   :  { %v3452_v16 = vmul.f32 %v7035_v13, %v3445_v11 }
 0xe32   :  { %v3459_v17 = vadd.f32 %v7036_v15, %v3452_v16 }
 0xe34   :  { %v3460_v18 = vsel %vm1167_vm2, %v3459_v17, 0.0 }
 0xe35   :  { %3461 = vadd.xlane.f32.xlu0 %v3460_v18 }
 0xe39   :  { %4490 = vadd.xlane.f32.xlu0 %v4489_v57 }
 0xebe   :  { %v3462_v31 = vpop.xlane.xlu0 %3461 }
 0xebf   :  { %v3463_v30 = vmul.f32 0.03125, %v3462_v31 }
 0xec1   :  { %v3464_v36 = vsub.f32 %v3459_v17, %v3463_v30 }
 0xec2   :  { %v4491_v33 = vpop.xlane.xlu0 %4490 }
 0xec3   :  { %v4492_v34 = vmul.f32 0.03125, %v4491_v33  ;;  %v3465_v35 = vmul.f32 %v3464_v36, %v3464_v36 }
 0xec5   :  { %v4493_v37 = vsub.f32 %v4488_v19, %v4492_v34  ;;  %v3466_v38 = vsel %vm1167_vm2, %v3465_v35, 0.0 }
 0xec6   :  { %3467 = vadd.xlane.f32.xlu1 %v3466_v38 }
 0xec7   :  { %v4494_v39 = vmul.f32 %v4493_v37, %v4493_v37 }
 0xec9   :  { %v4495_v40 = vsel %vm1167_vm2, %v4494_v39, 0.0 }
 0xeca   :  { %4496 = vadd.xlane.f32.xlu0 %v4495_v40 }
 0xed7   :  { %4605 = vrot.lane.b32.xlu1 %v9287_v58, %s8318_s9 }
 0xedb   :  { %4601 = vrot.lane.b32.xlu1 %v9296_v23, %s8318_s9 }
 0xedf   :  { %4599 = vrot.lane.b32.xlu1 %v9302_v29, %s8318_s9 }
 0xee0   :  { %4603 = vrot.lane.b32.xlu0 %v9292_v20, %s8318_s9 }
 0xee4   :  { %4611 = vrot.lane.b32.xlu0 %v9317_v41, %s8318_s9  ;;  %s9911_s9 = sld [smem:[#allocation36_spill]] }
 0xf4f   :  { %v3468_v42 = vpop.xlane.xlu1 %3467 }
 0xf50   :  { %v3469_v45 = vmul.f32 0.03125, %v3468_v42 }
 0xf52   :  { %v3470_v46 = vadd.f32 1e-05, %v3469_v45 }
 0xf53   :  { %v4497_v49 = vpop.xlane.xlu0 %4496  ;;  %v4606_v50 = vpop.permute.xlu1 %4605 }
 0xf54   :  { %8147 = vrsqrt.f32 %v3470_v46  ;;  %v4498_v51 = vmul.f32 0.03125, %v4497_v49  ;;  %7969 = vmatpush3.msra.mxu1 %v4606_v50 }
 0xf55   :  { %7970 = vmatprep.subr.mxu1 %v8316_v0 }
 0xf56   :  { %v4499_v52 = vadd.f32 1e-05, %v4498_v51 }
 0xf57   :  { %v4602_v53 = vpop.permute.xlu1 %4601  ;;  %v4604_v54 = vpop.permute.xlu0 %4603 }
 0xf58   :  { %8149 = vrsqrt.f32 %v4499_v52  ;;  %7971 = vmatpush3.msra.mxu1 %v4604_v54 }
 0xf59   :  { %7972 = vmatprep.subr.mxu1 %v8316_v0 }
 0xf5a   :  { %7973 = vmatpush3.msra.mxu1 %v4602_v53 }
 0xf5b   :  { %v4600_v55 = vpop.permute.xlu1 %4599  ;;  %7974 = vmatprep.subr.mxu1 %v8316_v0  ;;  %v4612_v26 = vpop.permute.xlu0 %4611 }
 0xf5c   :  { %7975 = vmatpush3.msra.mxu1 %v4600_v55 }
 0xf5d   :  { %7990 = vmatprep.subr.mxu1 %v8316_v0 }
 0xf61   :  { %v8148_v56 = vpop.eup %8147 }
 0xf62   :  { %v3472_v60 = vmul.f32 %v8148_v56, %v3464_v36 }
 0xf64   :  { %v3479_v63 = vmul.f32 %v7037_v59, %v3472_v60 }
 0xf65   :  { %v8150_v2 = vpop.eup %8149 }
 0xf66   :  { %v4501_v61 = vmul.f32 %v8150_v2, %v4493_v37  ;;  %v3486_v32 = vadd.f32 %v7038_v62, %v3479_v63 }
 0xf68   :  { %7977 = vmatmul.mubr.msk.f32.vlgmr.msra.gmra.mxu1 %vm1167_vm2, %v3486_v32  ;;  %v4508_v3 = vmul.f32 %v7057_v22, %v4501_v61 }
 0xf69   :  { %7992 = vmatprep.mubr.msk.f32.mxu1 %vm8317_vm0, %v8316_v0 }
 0xf6a   :  { %v9332_v4 = vadd.f32 %v7058_v14, %v4508_v3 }
 0xf6c   :  { %7966 = vmatmul.mubr.msk.f32.vlgmr.msra.gmra.mxu0 %vm1167_vm2, %v9332_v4 }
 0xf6d   :  { %7987 = vmatprep.mubr.msk.f32.mxu0 %vm8317_vm0, %v8316_v0 }
0x1028   :  { %v4683_v5 = vpop.f32.mrf.mxu1 }
0x1029   :  { %v4684_v6 = vadd.f32 %v4683_v5, %v4612_v26 }
0x102a   :  { %v7978_v7 = vpop.f32.mrf.mxu1 }
0x102b   :  { %4935 = vrot.lane.b32.xlu1 %v4684_v6, %s8320_s13  ;;  %7991 = vmatpush3.xpose.msk.msra.mxu1 %vm925_vm1, %v4684_v6 }
0x102c   :  { %v4591_v8 = vpop.f32.mrf.mxu0  ;;  %8000 = vmatprep.subr.mxu1 %v8316_v0 }
0x102d   :  { %v4592_v9 = vadd.f32 %v9317_v41, %v4591_v8 }
0x102e   :  { %v7967_v10 = vpop.f32.mrf.mxu0 }
0x102f   :  { %v4772_v12 = vmul.f32 0.35355338, %v4592_v9  ;;  %5101 = vrot.lane.b32.xlu1 %v4684_v6, %s8321_s17 }
0x1031   :  { %4933 = vrot.lane.b32.xlu0 %v4772_v12, %s8320_s13  ;;  %7993 = vmatmul.mubr.msk.f32.vlgmr.msra.gmra.mxu1 %vm925_vm1, %v4772_v12 }
0x1032   :  { %8002 = vmatprep.mubr.msk.f32.mxu1 %vm8317_vm0, %v8316_v0 }
0x1033   :  { %5266 = vrot.lane.b32.xlu1 %v4684_v6, %s8322_s21 }
0x1035   :  { %5099 = vrot.lane.b32.xlu0 %v4772_v12, %s8321_s17 }
0x1037   :  { %4693 = vrot.lane.b32.xlu1 %v9287_v58, %s8319_s5 }
0x1039   :  { %5264 = vrot.lane.b32.xlu0 %v4772_v12, %s8322_s21 }
0x103b   :  { %4689 = vrot.lane.b32.xlu1 %v9296_v23, %s8319_s5 }
0x103d   :  { %4691 = vrot.lane.b32.xlu0 %v9292_v20, %s8319_s5 }
0x1041   :  { %4687 = vrot.lane.b32.xlu0 %v9302_v29, %s8319_s5 }
0x109d   :  { %v4936_v13 = vpop.permute.xlu1 %4935 }
0x109e   :  { %8001 = vmatpush3.xpose.msk.msra.mxu1 %vm925_vm1, %v4936_v13 }
0x109f   :  { %8010 = vmatprep.subr.mxu1 %v8316_v0 }
0x10a1   :  { %v5102_v11 = vpop.permute.xlu1 %5101 }
0x10a3   :  { %v4934_v15 = vpop.permute.xlu0 %4933 }
0x10a4   :  { %8003 = vmatmul.mubr.msk.f32.vlgmr.msra.gmra.mxu1 %vm925_vm1, %v4934_v15 }
0x10a5   :  { %8011 = vmatpush3.xpose.msk.msra.mxu1 %vm925_vm1, %v5102_v11  ;;  %v5267_v1 = vpop.permute.xlu1 %5266  ;;  %8012 = vmatprep.mubr.msk.f32.mxu1 %vm8317_vm0, %v8316_v0 }
0x10a6   :  { %8020 = vmatprep.subr.mxu1 %v8316_v0 }
0x10a7   :  { %v5100_v16 = vpop.permute.xlu0 %5099 }
0x10a8   :  { %8013 = vmatmul.mubr.msk.f32.vlgmr.msra.gmra.mxu1 %vm925_vm1, %v5100_v16 }
0x10a9   :  { %8021 = vmatpush3.xpose.msk.msra.mxu1 %vm925_vm1, %v5267_v1  ;;  %8022 = vmatprep.mubr.msk.f32.mxu1 %vm8317_vm0, %v8316_v0  ;;  %v4694_v17 = vpop.permute.xlu1 %4693 }
0x10aa   :  { %7980 = vmatpush3.msra.mxu0 %v4694_v17  ;;  %8030 = vmatprep.subr.mxu1 %v8316_v0 }
0x10ab   :  { %v5265_v18 = vpop.permute.xlu0 %5264  ;;  %7981 = vmatprep.subr.mxu0 %v8316_v0 }
0x10ac   :  { %8023 = vmatmul.mubr.msk.f32.vlgmr.msra.gmra.mxu1 %vm925_vm1, %v5265_v18 }
0x10ad   :  { %8038 = vmatprep.mubr.msk.f32.mxu1 %vm8317_vm0, %v8316_v0  ;;  %v4690_v57 = vpop.permute.xlu1 %4689 }
0x10af   :  { %v4692_v19 = vpop.permute.xlu0 %4691 }
0x10b0   :  { %7982 = vmatpush3.msra.mxu0 %v4692_v19 }
0x10b1   :  { %7983 = vmatprep.subr.mxu0 %v8316_v0 }
0x10b2   :  { %7984 = vmatpush3.msra.mxu0 %v4690_v57 }
0x10b3   :  { %7985 = vmatprep.subr.mxu0 %v8316_v0  ;;  %v4688_v58 = vpop.permute.xlu0 %4687 }
0x10b4   :  { %7986 = vmatpush3.msra.mxu0 %v4688_v58 }
0x10b5   :  { %7988 = vmatmul.mubr.msk.f32.vlgmr.msra.gmra.mxu0 %vm1167_vm2, %v3486_v32  ;;  %7995 = vmatprep.subr.mxu0 %v8316_v0 }
0x10b6   :  { %7997 = vmatprep.mubr.msk.f32.mxu0 %vm8317_vm0, %v8316_v0 }
0x10f1   :  { %v4845_v20 = vpop.f32.mrf.mxu1 }
0x10f2   :  { %v4849_v23 = vsel %vm925_vm1, %v4845_v20, -inf }
0x10f3   :  { %4850 = vmax.xlane.f32.xlu1 %v4849_v23  ;;  %v7994_v29 = vpop.f32.mrf.mxu1  ;;  %v583_v23 = vld [vmem:[%s9907_s22 + $0x10] sm:$0xff] }
0x10f4   :  { %v582_v29 = vld [vmem:[%s9907_s22 + $0x8] sm:$0xff] }
0x1164   :  { %v5007_v31 = vpop.f32.mrf.mxu1 }
0x1165   :  { %v5011_v30 = vsel %vm925_vm1, %v5007_v31, -inf }
0x1166   :  { %5012 = vmax.xlane.f32.xlu0 %v5011_v30  ;;  %v8004_v36 = vpop.f32.mrf.mxu1 }
0x1168   :  { %v5173_v33 = vpop.f32.mrf.mxu1 }
0x1169   :  { %v5177_v34 = vsel %vm925_vm1, %v5173_v33, -inf }
0x116a   :  { %5178 = vmax.xlane.f32.xlu0 %v5177_v34  ;;  %v8014_v35 = vpop.f32.mrf.mxu1 }
0x116c   :  { %v5338_v37 = vpop.f32.mrf.mxu1 }
0x116d   :  { %v5342_v38 = vsel %vm925_vm1, %v5338_v37, -inf }
0x116e   :  { %5343 = vmax.xlane.f32.xlu1 %v5342_v38  ;;  %v8024_v39 = vpop.f32.mrf.mxu1 }
0x1175   :  { %v4768_v40 = vpop.f32.mrf.mxu0 }
0x1177   :  { %v7989_v42 = vpop.f32.mrf.mxu0 }
0x117c   :  { %v4851_v45 = vpop.xlane.xlu1 %4850 }
0x117d   :  { %v4852_v46 = vsub.f32 %v4845_v20, %v4851_v45  ;;  %v584_v20 = vld [vmem:[%s9907_s22 + $0x18] sm:$0xff] }
0x117e   :  { %8031 = vmatpush3.msra.mxu1 %v584_v20  ;;  %v638_v20 = vld [vmem:[%s9909_s1 + $0x1a0] sm:$0xff] }
0x117f   :  { %v4853_v49 = vmul.f32 1.442695, %v4852_v46  ;;  %8032 = vmatprep.subr.mxu1 %v8316_v0 }
0x1180   :  { %4699 = vrot.lane.b32.xlu0 %v9317_v41, %s8319_s5  ;;  %8033 = vmatpush3.msra.mxu1 %v583_v23  ;;  %v640_v23 = vld [vmem:[%s9909_s1 + $0x1b0] sm:$0xff]  ;;  %s9912_s5 = sld [smem:[#allocation31_spill]] }
0x1181   :  { %8151 = vpow2.f32 %v4853_v49  ;;  %8034 = vmatprep.subr.mxu1 %v8316_v0  ;;  %v7075_v49 = vld [vmem:[%s9908_s26] ss:$0 sm:$0xff] }
0x1182   :  { %8035 = vmatpush3.msra.mxu1 %v582_v29  ;;  %v623_v29 = vld [vmem:[%s9909_s1 + $0x128] sm:$0xff] }
0x1183   :  { %8036 = vmatprep.subr.mxu1 %v8316_v0 }
0x118e   :  { %v8152_v50 = vpop.eup %8151 }
0x118f   :  { %v4855_v51 = vsel %vm925_vm1, %v8152_v50, 0.0 }
0x1190   :  { %4856 = vadd.xlane.f32.xlu1 %v4855_v51 }
0x11ef   :  { %v5013_v52 = vpop.xlane.xlu0 %5012 }
0x11f0   :  { %v5014_v53 = vsub.f32 %v5007_v31, %v5013_v52  ;;  %v581_v31 = vld [vmem:[%s9907_s22] sm:$0xff] }
0x11f1   :  { %8037 = vmatpush3.msra.mxu1 %v581_v31  ;;  %v625_v31 = vld [vmem:[%s9909_s1 + $0x138] sm:$0xff] }
0x11f2   :  { %v5015_v54 = vmul.f32 1.442695, %v5014_v53 }
0x11f3   :  { %v5179_v55 = vpop.xlane.xlu0 %5178 }
0x11f4   :  { %8153 = vpow2.f32 %v5015_v54  ;;  %v5180_v56 = vsub.f32 %v5173_v33, %v5179_v55 }
0x11f6   :  { %v5181_v59 = vmul.f32 1.442695, %v5180_v56 }
0x11f7   :  { %v5344_v60 = vpop.xlane.xlu1 %5343  ;;  %v4700_v62 = vpop.permute.xlu0 %4699 }
0x11f8   :  { %8155 = vpow2.f32 %v5181_v59  ;;  %v5345_v63 = vsub.f32 %v5338_v37, %v5344_v60  ;;  %v4769_v2 = vadd.f32 %v4768_v40, %v4700_v62 }
0x11fa   :  { %v5346_v22 = vmul.f32 1.442695, %v5345_v63  ;;  %5188 = vrot.lane.b32.xlu0 %v4769_v2, %s8321_s17  ;;  %7996 = vmatpush3.msra.mxu0 %v4769_v2  ;;  %v635_v63 = vld [vmem:[%s9909_s1 + $0x188] sm:$0xff]  ;;  %s9914_s17 = sld [smem:[#allocation32_spill]] }
0x11fb   :  { %8005 = vmatprep.subr.mxu0 %v8316_v0 }
0x11fc   :  { %8157 = vpow2.f32 %v5346_v22  ;;  %v636_v22 = vld [vmem:[%s9909_s1 + $0x190] sm:$0xff] }
0x11fe   :  { %5353 = vrot.lane.b32.xlu0 %v4769_v2, %s8322_s21  ;;  %s9915_s21 = sld [smem:[#allocation37_spill]] }
0x1201   :  { %v8154_v41 = vpop.eup %8153 }
0x1202   :  { %v5017_v61 = vsel %vm925_vm1, %v8154_v41, 0.0 }
0x1203   :  { %5018 = vadd.xlane.f32.xlu1 %v5017_v61  ;;  %v621_v61 = vld [vmem:[%s9909_s1 + $0x118] sm:$0xff] }
0x1205   :  { %v8156_v32 = vpop.eup %8155 }
0x1206   :  { %v5183_v14 = vsel %vm925_vm1, %v8156_v32, 0.0 }
0x1207   :  { %5184 = vadd.xlane.f32.xlu1 %v5183_v14  ;;  %v620_v14 = vld [vmem:[%s9909_s1 + $0x110] sm:$0xff] }
0x1209   :  { %v8158_v3 = vpop.eup %8157 }
0x120a   :  { %v5348_v26 = vsel %vm925_vm1, %v8158_v3, 0.0 }
0x120b   :  { %5349 = vadd.xlane.f32.xlu1 %v5348_v26  ;;  %v605_v26 = vld [vmem:[%s9909_s1 + $0x98] sm:$0xff] }
0x1219   :  { %v4857_v5 = vpop.xlane.xlu1 %4856 }
0x121a   :  { %8159 = vrcp.f32 %v4857_v5  ;;  %v602_v5 = vld [vmem:[%s9909_s1 + $0x80] sm:$0xff] }
0x121c   :  { %5023 = vrot.lane.b32.xlu1 %v4769_v2, %s8320_s13  ;;  %v637_v2 = vld [vmem:[%s9909_s1 + $0x198] sm:$0xff]  ;;  %s9913_s13 = sld [smem:[#allocation30_spill]] }
0x121d   :  { %5731 = vmatprep.subr.mxu1 %v637_v2  ;;  %v594_v2 = vld [vmem:[%s9909_s1 + $0x40] sm:$0xff] }
0x1227   :  { %v8160_v6 = vpop.eup %8159 }
0x1228   :  { %v4859_v7 = vmul.f32 %v8160_v6, %v8152_v50  ;;  %v604_v6 = vld [vmem:[%s9909_s1 + $0x90] sm:$0xff] }
0x122a   :  { %7998 = vmatmul.mubr.msk.f32.vlgmr.msra.gmra.mxu0 %vm925_vm1, %v4859_v7  ;;  %v587_v7 = vld [vmem:[%s9909_s1 + $0x8] sm:$0xff] }
0x122b   :  { %8007 = vmatprep.mubr.msk.f32.mxu0 %vm8317_vm0, %v8316_v0 }
0x126c   :  { %v5189_v11 = vpop.permute.xlu0 %5188 }
0x1270   :  { %v5354_v17 = vpop.permute.xlu0 %5353 }
0x128c   :  { %v5019_v8 = vpop.xlane.xlu1 %5018 }
0x128d   :  { %8161 = vrcp.f32 %v5019_v8  ;;  %v589_v8 = vld [vmem:[%s9909_s1 + $0x18] sm:$0xff] }
0x1290   :  { %v5185_v9 = vpop.xlane.xlu1 %5184 }
0x1291   :  { %8163 = vrcp.f32 %v5185_v9  ;;  %v586_v9 = vld [vmem:[%s9909_s1] sm:$0xff] }
0x1294   :  { %v5350_v10 = vpop.xlane.xlu1 %5349 }
0x1295   :  { %8165 = vrcp.f32 %v5350_v10  ;;  %v588_v10 = vld [vmem:[%s9909_s1 + $0x10] sm:$0xff] }
0x1298   :  { %v5024_v12 = vpop.permute.xlu1 %5023 }
0x1299   :  { %8006 = vmatpush3.msra.mxu0 %v5024_v12  ;;  %v639_v12 = vld [vmem:[%s9909_s1 + $0x1a8] sm:$0xff] }
0x129a   :  { %v8162_v13 = vpop.eup %8161  ;;  %8015 = vmatprep.subr.mxu0 %v8316_v0 }
0x129b   :  { %v5021_v15 = vmul.f32 %v8162_v13, %v8154_v41  ;;  %v619_v41 = vld [vmem:[%s9909_s1 + $0x108] sm:$0xff]  ;;  %v641_v13 = vld [vmem:[%s9909_s1 + $0x1b8] sm:$0xff] }
0x129d   :  { %8008 = vmatmul.mubr.msk.f32.vlgmr.msra.gmra.mxu0 %vm925_vm1, %v5021_v15 }
0x129e   :  { %v8164_v1 = vpop.eup %8163  ;;  %8016 = vmatpush3.msra.mxu0 %v5189_v11  ;;  %8017 = vmatprep.mubr.msk.f32.mxu0 %vm8317_vm0, %v8316_v0 }
0x129f   :  { %8025 = vmatprep.subr.mxu0 %v8316_v0  ;;  %v5187_v16 = vmul.f32 %v8164_v1, %v8156_v32  ;;  %v618_v32 = vld [vmem:[%s9909_s1 + $0x100] sm:$0xff] }
0x12a1   :  { %8018 = vmatmul.mubr.msk.f32.vlgmr.msra.gmra.mxu0 %vm925_vm1, %v5187_v16 }
0x12a2   :  { %v8166_v18 = vpop.eup %8165  ;;  %8026 = vmatpush3.msra.mxu0 %v5354_v17  ;;  %8027 = vmatprep.mubr.msk.f32.mxu0 %vm8317_vm0, %v8316_v0  ;;  %v7077_v17 = vld [vmem:[%s9910_s28] ss:$0 sm:$0xff] }
0x12a3   :  { %v5352_v19 = vmul.f32 %v8166_v18, %v8158_v3  ;;  %5660 = vmatprep.subr.mxu0 %v635_v63  ;;  %v603_v3 = vld [vmem:[%s9909_s1 + $0x88] sm:$0xff]  ;;  %v597_v63 = vld [vmem:[%s9909_s1 + $0x58] sm:$0xff] }
0x12a5   :  { %8028 = vmatmul.mubr.msk.f32.vlgmr.msra.gmra.mxu0 %vm925_vm1, %v5352_v19  ;;  %v7078_v19 = vld [vmem:[%s9911_s9] ss:$0 sm:$0xff] }
0x12a6   :  { %5700 = vmatprep.mubr.f32.mxu0 %v8316_v0 }
0x12ea   :  { %v4929_v57 = vpop.f32.mrf.mxu0 }
0x12ec   :  { %v7999_v58 = vpop.f32.mrf.mxu0 }
0x135d   :  { %v5095_v30 = vpop.f32.mrf.mxu0 }
0x135e   :  { %5430 = vrot.lane.b32.xlu0 %v5095_v30, %s8323_s25  ;;  %v622_v30 = vld [vmem:[%s9909_s1 + $0x120] sm:$0xff]  ;;  %s9916_s25 = sld [smem:[#allocation38_spill]] }
0x135f   :  { %v8009_v36 = vpop.f32.mrf.mxu0 }
0x1360   :  { %v624_v36 = vld [vmem:[%s9909_s1 + $0x130] sm:$0xff] }
0x1361   :  { %v5260_v33 = vpop.f32.mrf.mxu0 }
0x1362   :  { %5434 = vrot.lane.b32.xlu0 %v5260_v33, %s8324_s29  ;;  %v607_v33 = vld [vmem:[%s9909_s1 + $0xa8] sm:$0xff]  ;;  %s9917_s29 = sld [smem:[#allocation39_spill]] }
0x1363   :  { %v8019_v34 = vpop.f32.mrf.mxu0 }
0x1364   :  { %v609_v34 = vld [vmem:[%s9909_s1 + $0xb8] sm:$0xff] }
0x1365   :  { %v5425_v35 = vpop.f32.mrf.mxu0 }
0x1366   :  { %5438 = vrot.lane.b32.xlu1 %v5425_v35, %s8325_s3  ;;  %v606_v35 = vld [vmem:[%s9909_s1 + $0xa0] sm:$0xff] }
0x1367   :  { %v8029_v37 = vpop.f32.mrf.mxu0 }
0x1368   :  { %v608_v37 = vld [vmem:[%s9909_s1 + $0xb0] sm:$0xff] }
0x13d0   :  { %v5431_v38 = vpop.permute.xlu0 %5430 }
0x13d1   :  { %v5441_v40 = vsel %vm925_vm1, %v4929_v57, %v5431_v38  ;;  %v591_v38 = vld [vmem:[%s9909_s1 + $0x28] sm:$0xff] }
0x13d4   :  { %v5435_v39 = vpop.permute.xlu0 %5434 }
0x13d5   :  { %v5442_v42 = vsel %vm2085_vm3, %v5441_v40, %v5435_v39  ;;  %v593_v39 = vld [vmem:[%s9909_s1 + $0x38] sm:$0xff]  ;;  %v590_v40 = vld [vmem:[%s9909_s1 + $0x20] sm:$0xff] }
0x13d8   :  { %v5439_v45 = vpop.permute.xlu1 %5438 }
0x13d9   :  { %v5443_v46 = vsel %vm2087_vm4, %v5442_v42, %v5439_v45  ;;  %v592_v42 = vld [vmem:[%s9909_s1 + $0x30] sm:$0xff]  ;;  %v643_v45 = vld [vmem:[%s9909_s1 + $0x1c8] sm:$0xff] }
0x13da   :  { %8039 = vmatmul.mubr.msk.f32.vlgmr.msra.gmra.mxu1 %vm1167_vm2, %v5443_v46  ;;  %v645_v46 = vld [vmem:[%s9909_s1 + $0x1d8] sm:$0xff] }
0x13db   :  { %5771 = vmatprep.mubr.f32.mxu1 %v8316_v0  ;;  %5732 = vmatpush1.msra.mxu1 %v636_v22  ;;  %v647_v22 = vld [vmem:[%s9909_s1 + $0x1e8] sm:$0xff] }
0x13dc   :  { %5733 = vmatprep.subr.mxu1 %v621_v61  ;;  %v646_v61 = vld [vmem:[%s9909_s1 + $0x1e0] sm:$0xff] }
0x13dd   :  { %5734 = vmatpush1.msra.mxu1 %v620_v14  ;;  %v631_v14 = vld [vmem:[%s9909_s1 + $0x168] sm:$0xff] }
0x13de   :  { %5735 = vmatprep.subr.mxu1 %v605_v26  ;;  %v630_v26 = vld [vmem:[%s9909_s1 + $0x160] sm:$0xff] }
0x13df   :  { %5736 = vmatpush1.msra.mxu1 %v604_v6  ;;  %v615_v6 = vld [vmem:[%s9909_s1 + $0xe8] sm:$0xff] }
0x13e0   :  { %5737 = vmatprep.subr.mxu1 %v589_v8  ;;  %v614_v8 = vld [vmem:[%s9909_s1 + $0xe0] sm:$0xff] }
0x13e1   :  { %5738 = vmatpush1.msra.mxu1 %v588_v10  ;;  %v599_v10 = vld [vmem:[%s9909_s1 + $0x68] sm:$0xff] }
0x13e2   :  { %5873 = vmatprep.subr.mxu1 %v641_v13  ;;  %v598_v13 = vld [vmem:[%s9909_s1 + $0x60] sm:$0xff] }
0x149a   :  { %v5519_v50 = vpop.f32.mrf.mxu1 }
0x149b   :  { %v5520_v51 = vadd.f32 %v7075_v49, %v5519_v50  ;;  %v642_v49 = vld [vmem:[%s9909_s1 + $0x1c0] sm:$0xff]  ;;  %v644_v50 = vld [vmem:[%s9909_s1 + $0x1d0] sm:$0xff] }
0x149c   :  { %v8040_v52 = vpop.f32.mrf.mxu1 }
0x149d   :  { %v5523_v53 = vadd.f32 %v5520_v51, %v9332_v4  ;;  %v634_v4 = vld [vmem:[%s9909_s1 + $0x180] sm:$0xff]  ;;  %v627_v51 = vld [vmem:[%s9909_s1 + $0x148] sm:$0xff]  ;;  %v629_v52 = vld [vmem:[%s9909_s1 + $0x158] sm:$0xff] }
0x149e   :  { %5661 = vmatpush1.msra.mxu0 %v634_v4  ;;  %v596_v4 = vld [vmem:[%s9909_s1 + $0x50] sm:$0xff] }
0x149f   :  { %v5524_v54 = vsel %vm1167_vm2, %v5523_v53, 0.0  ;;  %5662 = vmatprep.subr.mxu0 %v619_v41  ;;  %v649_v41 = vld [vmem:[%s9909_s1 + $0x1f8] sm:$0xff] }
0x14a0   :  { %5525 = vadd.xlane.f32.xlu0 %v5524_v54  ;;  %5663 = vmatpush1.msra.mxu0 %v618_v32  ;;  %v628_v54 = vld [vmem:[%s9909_s1 + $0x150] sm:$0xff] }
0x14a1   :  { %5664 = vmatprep.subr.mxu0 %v603_v3  ;;  %v648_v32 = vld [vmem:[%s9909_s1 + $0x1f0] sm:$0xff]  ;;  %v633_v3 = vld [vmem:[%s9909_s1 + $0x178] sm:$0xff] }
0x14a2   :  { %5665 = vmatpush1.msra.mxu0 %v602_v5  ;;  %v632_v5 = vld [vmem:[%s9909_s1 + $0x170] sm:$0xff] }
0x14a3   :  { %5666 = vmatprep.subr.mxu0 %v587_v7  ;;  %v617_v7 = vld [vmem:[%s9909_s1 + $0xf8] sm:$0xff] }
0x14a4   :  { %5667 = vmatpush1.msra.mxu0 %v586_v9  ;;  %v616_v9 = vld [vmem:[%s9909_s1 + $0xf0] sm:$0xff] }
0x14a5   :  { %5802 = vmatprep.subr.mxu0 %v639_v12  ;;  %v601_v12 = vld [vmem:[%s9909_s1 + $0x78] sm:$0xff] }
0x1529   :  { %v5526_v55 = vpop.xlane.xlu0 %5525 }
0x152a   :  { %v5527_v56 = vmul.f32 0.03125, %v5526_v55  ;;  %v611_v55 = vld [vmem:[%s9909_s1 + $0xc8] sm:$0xff] }
0x152c   :  { %v5528_v59 = vsub.f32 %v5523_v53, %v5527_v56  ;;  %v626_v53 = vld [vmem:[%s9909_s1 + $0x140] sm:$0xff]  ;;  %v613_v56 = vld [vmem:[%s9909_s1 + $0xd8] sm:$0xff] }
0x152e   :  { %v5529_v60 = vmul.f32 %v5528_v59, %v5528_v59 }
0x1530   :  { %v5530_v62 = vsel %vm1167_vm2, %v5529_v60, 0.0  ;;  %v612_v60 = vld [vmem:[%s9909_s1 + $0xd0] sm:$0xff] }
0x1531   :  { %5531 = vadd.xlane.f32.xlu1 %v5530_v62  ;;  %v595_v62 = vld [vmem:[%s9909_s1 + $0x48] sm:$0xff] }
0x15ba   :  { %v5532_v11 = vpop.xlane.xlu1 %5531 }
0x15bb   :  { %v5533_v15 = vmul.f32 0.03125, %v5532_v11  ;;  %v600_v11 = vld [vmem:[%s9909_s1 + $0x70] sm:$0xff] }
0x15bd   :  { %v5534_v1 = vadd.f32 1e-05, %v5533_v15  ;;  %v683_v15 = vld [vmem:[%s9912_s5 + $0xf8] sm:$0xff] }
0x15bf   :  { %8167 = vrsqrt.f32 %v5534_v1  ;;  %v715_v1 = vld [vmem:[%s9912_s5 + $0x1f8] sm:$0xff] }
0x15cc   :  { %v8168_v16 = vpop.eup %8167 }
0x15cd   :  { %v5536_v18 = vmul.f32 %v8168_v16, %v5528_v59  ;;  %v610_v59 = vld [vmem:[%s9909_s1 + $0xc0] sm:$0xff]  ;;  %v667_v16 = vld [vmem:[%s9912_s5 + $0x78] sm:$0xff] }
0x15cf   :  { %v5543_v57 = vmul.f32 %v7077_v17, %v5536_v18  ;;  %v699_v17 = vld [vmem:[%s9912_s5 + $0x178] sm:$0xff]  ;;  %v682_v18 = vld [vmem:[%s9912_s5 + $0xf0] sm:$0xff] }
0x15d1   :  { %v9446_v58 = vadd.f32 %v7078_v19, %v5543_v57  ;;  %v714_v19 = vld [vmem:[%s9912_s5 + $0x1f0] sm:$0xff] }
0x15d2   :  { %v666_v57 = vld [vmem:[%s9912_s5 + $0x70] sm:$0xff] }
0x15d3   :  { %7079 = vmatmul.mubr.msk.f32.vlgmr.msra.gmra.mxu0 %vm1167_vm2, %v9446_v58  ;;  %7080 = vmatmul.mubr.msk.f32.vlgmr.msra.gmra.mxu1 %vm1167_vm2, %v9446_v58 }
0x15d4   :  { %5803 = vmatpush1.msra.mxu0 %v638_v20  ;;  %5874 = vmatpush1.msra.mxu1 %v640_v23  ;;  %v698_v20 = vld [vmem:[%s9912_s5 + $0x170] sm:$0xff]  ;;  %v681_v23 = vld [vmem:[%s9912_s5 + $0xe8] sm:$0xff] }
0x15d5   :  { %5804 = vmatprep.subr.mxu0 %v623_v29  ;;  %5875 = vmatprep.subr.mxu1 %v625_v31  ;;  %v713_v29 = vld [vmem:[%s9912_s5 + $0x1e8] sm:$0xff] }
0x15d6   :  { %5805 = vmatpush1.msra.mxu0 %v622_v30  ;;  %5876 = vmatpush1.msra.mxu1 %v624_v36  ;;  %v665_v31 = vld [vmem:[%s9912_s5 + $0x68] sm:$0xff]  ;;  %v680_v36 = vld [vmem:[%s9912_s5 + $0xe0] sm:$0xff] }
0x15d7   :  { %5806 = vmatprep.subr.mxu0 %v607_v33  ;;  %5877 = vmatprep.subr.mxu1 %v609_v34  ;;  %v697_v30 = vld [vmem:[%s9912_s5 + $0x168] sm:$0xff]  ;;  %v712_v33 = vld [vmem:[%s9912_s5 + $0x1e0] sm:$0xff] }
0x15d8   :  { %5807 = vmatpush1.msra.mxu0 %v606_v35  ;;  %5878 = vmatpush1.msra.mxu1 %v608_v37  ;;  %v664_v34 = vld [vmem:[%s9912_s5 + $0x60] sm:$0xff]  ;;  %v679_v37 = vld [vmem:[%s9912_s5 + $0xd8] sm:$0xff] }
0x15d9   :  { %5808 = vmatprep.subr.mxu0 %v591_v38  ;;  %5879 = vmatprep.subr.mxu1 %v593_v39  ;;  %v696_v35 = vld [vmem:[%s9912_s5 + $0x160] sm:$0xff]  ;;  %v711_v38 = vld [vmem:[%s9912_s5 + $0x1d8] sm:$0xff] }
0x15da   :  { %5809 = vmatpush1.msra.mxu0 %v590_v40  ;;  %5842 = vmatprep.mubr.f32.mxu0 %v8316_v0  ;;  %v663_v39 = vld [vmem:[%s9912_s5 + $0x58] sm:$0xff] }
0x15db   :  { %5880 = vmatpush1.msra.mxu1 %v592_v42  ;;  %5913 = vmatprep.mubr.f32.mxu1 %v8316_v0  ;;  %v695_v40 = vld [vmem:[%s9912_s5 + $0x158] sm:$0xff]  ;;  %v678_v42 = vld [vmem:[%s9912_s5 + $0xd0] sm:$0xff] }
0x15dc   :  { %7081 = vmatmul.mubr.msk.f32.vlgmr.msra.gmra.mxu0 %vm1167_vm2, %v9446_v58  ;;  %7082 = vmatmul.mubr.msk.f32.vlgmr.msra.gmra.mxu1 %vm1167_vm2, %v9446_v58 }
0x15dd   :  { %5944 = vmatprep.subr.mxu0 %v643_v45  ;;  %6015 = vmatprep.subr.mxu1 %v645_v46  ;;  %v710_v45 = vld [vmem:[%s9912_s5 + $0x1d0] sm:$0xff] }
0x15de   :  { %5945 = vmatpush1.msra.mxu0 %v642_v49  ;;  %6016 = vmatpush1.msra.mxu1 %v644_v50  ;;  %v662_v46 = vld [vmem:[%s9912_s5 + $0x50] sm:$0xff]  ;;  %v677_v50 = vld [vmem:[%s9912_s5 + $0xc8] sm:$0xff] }
0x15df   :  { %5946 = vmatprep.subr.mxu0 %v627_v51  ;;  %6017 = vmatprep.subr.mxu1 %v629_v52  ;;  %v694_v49 = vld [vmem:[%s9912_s5 + $0x150] sm:$0xff]  ;;  %v709_v51 = vld [vmem:[%s9912_s5 + $0x1c8] sm:$0xff] }
0x15e0   :  { %5947 = vmatpush1.msra.mxu0 %v626_v53  ;;  %6018 = vmatpush1.msra.mxu1 %v628_v54  ;;  %v661_v52 = vld [vmem:[%s9912_s5 + $0x48] sm:$0xff]  ;;  %v676_v54 = vld [vmem:[%s9912_s5 + $0xc0] sm:$0xff] }
0x15e1   :  { %5948 = vmatprep.subr.mxu0 %v611_v55  ;;  %6019 = vmatprep.subr.mxu1 %v613_v56  ;;  %v693_v53 = vld [vmem:[%s9912_s5 + $0x148] sm:$0xff]  ;;  %v708_v55 = vld [vmem:[%s9912_s5 + $0x1c0] sm:$0xff] }
0x15e2   :  { %5949 = vmatpush1.msra.mxu0 %v610_v59  ;;  %6020 = vmatpush1.msra.mxu1 %v612_v60  ;;  %v660_v56 = vld [vmem:[%s9912_s5 + $0x40] sm:$0xff]  ;;  %v675_v60 = vld [vmem:[%s9912_s5 + $0xb8] sm:$0xff] }
0x15e3   :  { %5950 = vmatprep.subr.mxu0 %v595_v62  ;;  %6021 = vmatprep.subr.mxu1 %v597_v63  ;;  %v692_v59 = vld [vmem:[%s9912_s5 + $0x140] sm:$0xff]  ;;  %v707_v62 = vld [vmem:[%s9912_s5 + $0x1b8] sm:$0xff] }
0x15e4   :  { %5951 = vmatpush1.msra.mxu0 %v594_v2  ;;  %5984 = vmatprep.mubr.f32.mxu0 %v8316_v0  ;;  %v659_v63 = vld [vmem:[%s9912_s5 + $0x38] sm:$0xff] }
0x15e5   :  { %6022 = vmatpush1.msra.mxu1 %v596_v4  ;;  %6055 = vmatprep.mubr.f32.mxu1 %v8316_v0  ;;  %v691_v2 = vld [vmem:[%s9912_s5 + $0x138] sm:$0xff]  ;;  %v674_v4 = vld [vmem:[%s9912_s5 + $0xb0] sm:$0xff] }
0x15e6   :  { %7083 = vmatmul.mubr.msk.f32.vlgmr.msra.gmra.mxu0 %vm1167_vm2, %v9446_v58  ;;  %7084 = vmatmul.mubr.msk.f32.vlgmr.msra.gmra.mxu1 %vm1167_vm2, %v9446_v58 }
0x15e7   :  { %6086 = vmatprep.subr.mxu0 %v647_v22  ;;  %6157 = vmatprep.subr.mxu1 %v649_v41  ;;  %v706_v22 = vld [vmem:[%s9912_s5 + $0x1b0] sm:$0xff] }
0x15e8   :  { %6087 = vmatpush1.msra.mxu0 %v646_v61  ;;  %6158 = vmatpush1.msra.mxu1 %v648_v32  ;;  %v658_v41 = vld [vmem:[%s9912_s5 + $0x30] sm:$0xff]  ;;  %v673_v32 = vld [vmem:[%s9912_s5 + $0xa8] sm:$0xff] }
0x15e9   :  { %6088 = vmatprep.subr.mxu0 %v631_v14  ;;  %6159 = vmatprep.subr.mxu1 %v633_v3  ;;  %v690_v61 = vld [vmem:[%s9912_s5 + $0x130] sm:$0xff]  ;;  %v705_v14 = vld [vmem:[%s9912_s5 + $0x1a8] sm:$0xff] }
0x15ea   :  { %6089 = vmatpush1.msra.mxu0 %v630_v26  ;;  %6160 = vmatpush1.msra.mxu1 %v632_v5  ;;  %v657_v3 = vld [vmem:[%s9912_s5 + $0x28] sm:$0xff]  ;;  %v672_v5 = vld [vmem:[%s9912_s5 + $0xa0] sm:$0xff] }
0x15eb   :  { %6090 = vmatprep.subr.mxu0 %v615_v6  ;;  %6161 = vmatprep.subr.mxu1 %v617_v7  ;;  %v689_v26 = vld [vmem:[%s9912_s5 + $0x128] sm:$0xff]  ;;  %v704_v6 = vld [vmem:[%s9912_s5 + $0x1a0] sm:$0xff] }
0x15ec   :  { %6091 = vmatpush1.msra.mxu0 %v614_v8  ;;  %6162 = vmatpush1.msra.mxu1 %v616_v9  ;;  %v656_v7 = vld [vmem:[%s9912_s5 + $0x20] sm:$0xff]  ;;  %v671_v9 = vld [vmem:[%s9912_s5 + $0x98] sm:$0xff] }
0x15ed   :  { %6092 = vmatprep.subr.mxu0 %v599_v10  ;;  %6163 = vmatprep.subr.mxu1 %v601_v12  ;;  %v688_v8 = vld [vmem:[%s9912_s5 + $0x120] sm:$0xff]  ;;  %v703_v10 = vld [vmem:[%s9912_s5 + $0x198] sm:$0xff] }
0x15ee   :  { %6093 = vmatpush1.msra.mxu0 %v598_v13  ;;  %6126 = vmatprep.mubr.f32.mxu0 %v8316_v0  ;;  %v655_v12 = vld [vmem:[%s9912_s5 + $0x18] sm:$0xff] }
0x15ef   :  { %6164 = vmatpush1.msra.mxu1 %v600_v11  ;;  %6197 = vmatprep.mubr.f32.mxu1 %v8316_v0  ;;  %v687_v13 = vld [vmem:[%s9912_s5 + $0x118] sm:$0xff]  ;;  %v670_v11 = vld [vmem:[%s9912_s5 + $0x90] sm:$0xff] }
0x15f0   :  { %7085 = vmatmul.mubr.msk.f32.vlgmr.msra.gmra.mxu0 %vm1167_vm2, %v9446_v58  ;;  %7086 = vmatmul.mubr.msk.f32.vlgmr.msra.gmra.mxu1 %vm1167_vm2, %v9446_v58 }
0x15f1   :  { %7489 = vmatprep.subr.mxu0 %v683_v15  ;;  %7524 = vmatprep.subr.mxu1 %v715_v1  ;;  %v702_v15 = vld [vmem:[%s9912_s5 + $0x190] sm:$0xff] }
0x15f2   :  { %7490 = vmatpush3.msra.mxu0 %v667_v16  ;;  %7525 = vmatpush3.msra.mxu1 %v699_v17  ;;  %v654_v1 = vld [vmem:[%s9912_s5 + $0x10] sm:$0xff]  ;;  %v669_v17 = vld [vmem:[%s9912_s5 + $0x88] sm:$0xff] }
0x15f3   :  { %7491 = vmatprep.subr.mxu0 %v682_v18  ;;  %7526 = vmatprep.subr.mxu1 %v714_v19  ;;  %v686_v16 = vld [vmem:[%s9912_s5 + $0x110] sm:$0xff]  ;;  %v701_v18 = vld [vmem:[%s9912_s5 + $0x188] sm:$0xff] }
0x15f4   :  { %7492 = vmatpush3.msra.mxu0 %v666_v57  ;;  %7527 = vmatpush3.msra.mxu1 %v698_v20  ;;  %v653_v19 = vld [vmem:[%s9912_s5 + $0x8] sm:$0xff]  ;;  %v668_v20 = vld [vmem:[%s9912_s5 + $0x80] sm:$0xff] }
0x15f5   :  { %7493 = vmatprep.subr.mxu0 %v681_v23  ;;  %7528 = vmatprep.subr.mxu1 %v713_v29  ;;  %v685_v57 = vld [vmem:[%s9912_s5 + $0x108] sm:$0xff]  ;;  %v700_v23 = vld [vmem:[%s9912_s5 + $0x180] sm:$0xff] }
0x15f6   :  { %7494 = vmatpush3.msra.mxu0 %v665_v31  ;;  %7529 = vmatpush3.msra.mxu1 %v697_v30  ;;  %v652_v29 = vld [vmem:[%s9912_s5] sm:$0xff]  ;;  %v747_v30 = vld [vmem:[%s9912_s5 + $0x2f8] sm:$0xff] }
0x15f7   :  { %7495 = vmatprep.subr.mxu0 %v680_v36  ;;  %7530 = vmatprep.subr.mxu1 %v712_v33  ;;  %v684_v31 = vld [vmem:[%s9912_s5 + $0x100] sm:$0xff]  ;;  %v779_v36 = vld [vmem:[%s9912_s5 + $0x3f8] sm:$0xff] }
0x15f8   :  { %7496 = vmatpush3.msra.mxu0 %v664_v34  ;;  %7531 = vmatpush3.msra.mxu1 %v696_v35  ;;  %v9583_v33 = vld [vmem:[%s9913_s13] sm:$0xff] }
0x15f9   :  { %7497 = vmatprep.subr.mxu0 %v679_v37  ;;  %7532 = vmatprep.subr.mxu1 %v711_v38  ;;  %v5556_v34 = vrot.slane %v9583_v33, %v8874_v24  ;;  %v5564_v35 = vrot.slane %v9583_v33, %v8877_v25  ;;  %v5560_v37 = vrot.slane %v9583_v33, %v8883_v27 }
0x15fa   :  { %7498 = vmatpush3.msra.mxu0 %v663_v39  ;;  %7533 = vmatpush3.msra.mxu1 %v695_v40  ;;  %v5568_v38 = vrot.slane %v9583_v33, %v8886_v28 }
0x15fb   :  { %7499 = vmatprep.subr.mxu0 %v678_v42  ;;  %7534 = vmatprep.subr.mxu1 %v710_v45 }
0x15fc   :  { %7500 = vmatpush3.msra.mxu0 %v662_v46  ;;  %7535 = vmatpush3.msra.mxu1 %v694_v49 }
0x15fd   :  { %7501 = vmatprep.subr.mxu0 %v677_v50  ;;  %7536 = vmatprep.subr.mxu1 %v709_v51 }
0x15fe   :  { %7502 = vmatpush3.msra.mxu0 %v661_v52  ;;  %7537 = vmatpush3.msra.mxu1 %v693_v53 }
0x15ff   :  { %7503 = vmatprep.subr.mxu0 %v676_v54  ;;  %7538 = vmatprep.subr.mxu1 %v708_v55 }
0x1600   :  { %7504 = vmatpush3.msra.mxu0 %v660_v56  ;;  %7539 = vmatpush3.msra.mxu1 %v692_v59  ;;  %v731_v56 = vld [vmem:[%s9912_s5 + $0x278] sm:$0xff] }
0x1601   :  { %7505 = vmatprep.subr.mxu0 %v675_v60  ;;  %7540 = vmatprep.subr.mxu1 %v707_v62  ;;  %v763_v59 = vld [vmem:[%s9912_s5 + $0x378] sm:$0xff]  ;;  %v746_v60 = vld [vmem:[%s9912_s5 + $0x2f0] sm:$0xff] }
0x1602   :  { %7506 = vmatpush3.msra.mxu0 %v659_v63  ;;  %7541 = vmatpush3.msra.mxu1 %v691_v2  ;;  %v778_v62 = vld [vmem:[%s9912_s5 + $0x3f0] sm:$0xff]  ;;  %v5576_v63 = vrot.slane %v9583_v33, %v8897_v43  ;;  %v5584_v2 = vrot.slane %v9583_v33, %v8900_v44 }
0x1603   :  { %7507 = vmatprep.subr.mxu0 %v674_v4  ;;  %7542 = vmatprep.subr.mxu1 %v706_v22  ;;  %v730_v4 = vld [vmem:[%s9912_s5 + $0x270] sm:$0xff] }
0x1604   :  { %7508 = vmatpush3.msra.mxu0 %v658_v41  ;;  %7543 = vmatpush3.msra.mxu1 %v690_v61  ;;  %v762_v22 = vld [vmem:[%s9912_s5 + $0x370] sm:$0xff] }
0x1605   :  { %7509 = vmatprep.subr.mxu0 %v673_v32  ;;  %7544 = vmatprep.subr.mxu1 %v705_v14  ;;  %v745_v32 = vld [vmem:[%s9912_s5 + $0x2e8] sm:$0xff] }
0x1606   :  { %7510 = vmatpush3.msra.mxu0 %v657_v3  ;;  %7545 = vmatpush3.msra.mxu1 %v689_v26  ;;  %v777_v14 = vld [vmem:[%s9912_s5 + $0x3e8] sm:$0xff] }
0x1607   :  { %7511 = vmatprep.subr.mxu0 %v672_v5  ;;  %7546 = vmatprep.subr.mxu1 %v704_v6  ;;  %v729_v3 = vld [vmem:[%s9912_s5 + $0x268] sm:$0xff] }
0x1608   :  { %7512 = vmatpush3.msra.mxu0 %v656_v7  ;;  %7547 = vmatpush3.msra.mxu1 %v688_v8  ;;  %v761_v26 = vld [vmem:[%s9912_s5 + $0x368] sm:$0xff]  ;;  %v744_v7 = vld [vmem:[%s9912_s5 + $0x2e0] sm:$0xff] }
0x1609   :  { %7513 = vmatprep.subr.mxu0 %v671_v9  ;;  %7548 = vmatprep.subr.mxu1 %v703_v10  ;;  %v776_v8 = vld [vmem:[%s9912_s5 + $0x3e0] sm:$0xff] }
0x160a   :  { %7514 = vmatpush3.msra.mxu0 %v655_v12  ;;  %7549 = vmatpush3.msra.mxu1 %v687_v13  ;;  %v728_v12 = vld [vmem:[%s9912_s5 + $0x260] sm:$0xff] }
0x160b   :  { %7515 = vmatprep.subr.mxu0 %v670_v11  ;;  %7550 = vmatprep.subr.mxu1 %v702_v15  ;;  %v760_v13 = vld [vmem:[%s9912_s5 + $0x360] sm:$0xff] }
0x160c   :  { %7516 = vmatpush3.msra.mxu0 %v654_v1  ;;  %7551 = vmatpush3.msra.mxu1 %v686_v16  ;;  %v743_v1 = vld [vmem:[%s9912_s5 + $0x2d8] sm:$0xff] }
0x160d   :  { %7517 = vmatprep.subr.mxu0 %v669_v17  ;;  %7552 = vmatprep.subr.mxu1 %v701_v18  ;;  %v775_v16 = vld [vmem:[%s9912_s5 + $0x3d8] sm:$0xff] }
0x160e   :  { %7518 = vmatpush3.msra.mxu0 %v653_v19  ;;  %7553 = vmatpush3.msra.mxu1 %v685_v57  ;;  %v727_v17 = vld [vmem:[%s9912_s5 + $0x258] sm:$0xff]  ;;  %v742_v19 = vld [vmem:[%s9912_s5 + $0x2d0] sm:$0xff] }
0x160f   :  { %7519 = vmatprep.subr.mxu0 %v668_v20  ;;  %7554 = vmatprep.subr.mxu1 %v700_v23  ;;  %v759_v18 = vld [vmem:[%s9912_s5 + $0x358] sm:$0xff]  ;;  %v774_v57 = vld [vmem:[%s9912_s5 + $0x3d0] sm:$0xff] }
0x1610   :  { %7520 = vmatpush3.msra.mxu0 %v652_v29  ;;  %7555 = vmatpush3.msra.mxu1 %v684_v31  ;;  %v726_v20 = vld [vmem:[%s9912_s5 + $0x250] sm:$0xff]  ;;  %v741_v29 = vld [vmem:[%s9912_s5 + $0x2c8] sm:$0xff] }
0x1611   :  { %7559 = vmatprep.subr.mxu0 %v747_v30  ;;  %7594 = vmatprep.subr.mxu1 %v779_v36  ;;  %v758_v23 = vld [vmem:[%s9912_s5 + $0x350] sm:$0xff]  ;;  %v773_v31 = vld [vmem:[%s9912_s5 + $0x3c8] sm:$0xff] }
0x1612   :  { %v725_v30 = vld [vmem:[%s9912_s5 + $0x248] sm:$0xff] }
0x1613   :  { %v757_v36 = vld [vmem:[%s9912_s5 + $0x348] sm:$0xff] }
0x1693   :  { %v5702_v39 = vpop.f32.mrf.mxu0  ;;  %v5773_v40 = vpop.f32.mrf.mxu1 }
0x1694   :  { %v5703_v42 = vadd.f32 %v5702_v39, %v5556_v34  ;;  %v5774_v45 = vadd.f32 %v5773_v40, %v5564_v35  ;;  %v740_v34 = vld [vmem:[%s9912_s5 + $0x2c0] sm:$0xff]  ;;  %v739_v39 = vld [vmem:[%s9912_s5 + $0x2b8] sm:$0xff] }
0x1695   :  { %v5704_v46 = vpop.f32.mrf.mxu0  ;;  %v5775_v49 = vpop.f32.mrf.mxu1  ;;  %v772_v35 = vld [vmem:[%s9912_s5 + $0x3c0] sm:$0xff]  ;;  %v771_v40 = vld [vmem:[%s9912_s5 + $0x3b8] sm:$0xff] }
0x1696   :  { %v5705_v50 = vadd.f32 %v5704_v46, %v5560_v37  ;;  %v5776_v51 = vadd.f32 %v5775_v49, %v5568_v38  ;;  %v6204_v54 = vmax.f32 %v5703_v42, 0.0  ;;  %v6206_v55 = vmax.f32 %v5774_v45, 0.0  ;;  %v724_v37 = vld [vmem:[%s9912_s5 + $0x240] sm:$0xff]  ;;  %v723_v42 = vld [vmem:[%s9912_s5 + $0x238] sm:$0xff]  ;;  %v738_v46 = vld [vmem:[%s9912_s5 + $0x2b0] sm:$0xff] }
0x1697   :  { %v756_v38 = vld [vmem:[%s9912_s5 + $0x340] sm:$0xff]  ;;  %v755_v45 = vld [vmem:[%s9912_s5 + $0x338] sm:$0xff]  ;;  %v770_v49 = vld [vmem:[%s9912_s5 + $0x3b0] sm:$0xff] }
0x1698   :  { %v6205_v52 = vmax.f32 %v5705_v50, 0.0  ;;  %v6207_v53 = vmax.f32 %v5776_v51, 0.0  ;;  %v722_v50 = vld [vmem:[%s9912_s5 + $0x230] sm:$0xff] }
0x1699   :  { %v754_v51 = vld [vmem:[%s9912_s5 + $0x330] sm:$0xff] }
0x169a   :  { %6290 = vmatprep.mubr.f32.mxu0 %v6205_v52  ;;  %6360 = vmatprep.mubr.f32.mxu1 %v6207_v53  ;;  %v737_v52 = vld [vmem:[%s9912_s5 + $0x2a8] sm:$0xff] }
0x169b   :  { %6291 = vmatmul.mubr.f32.vlgmr.msra.gmra.mxu0 %v6204_v54  ;;  %6361 = vmatmul.mubr.f32.vlgmr.msra.gmra.mxu1 %v6206_v55  ;;  %v769_v53 = vld [vmem:[%s9912_s5 + $0x3a8] sm:$0xff] }
0x169c   :  { %v9603_v41 = vpop.f32.mrf.mxu0  ;;  %v9605_v61 = vpop.f32.mrf.mxu1  ;;  %7560 = vmatpush3.msra.mxu0 %v731_v56  ;;  %7595 = vmatpush3.msra.mxu1 %v763_v59  ;;  %v721_v54 = vld [vmem:[%s9912_s5 + $0x228] sm:$0xff]  ;;  %v736_v56 = vld [vmem:[%s9912_s5 + $0x2a0] sm:$0xff] }
0x169d   :  { %7561 = vmatprep.subr.mxu0 %v746_v60  ;;  %7596 = vmatprep.subr.mxu1 %v778_v62  ;;  %v753_v55 = vld [vmem:[%s9912_s5 + $0x328] sm:$0xff]  ;;  %v768_v59 = vld [vmem:[%s9912_s5 + $0x3a0] sm:$0xff] }
0x169e   :  { %v5846_v5 = vpop.f32.mrf.mxu0  ;;  %v5917_v6 = vpop.f32.mrf.mxu1  ;;  %7562 = vmatpush3.msra.mxu0 %v730_v4  ;;  %7597 = vmatpush3.msra.mxu1 %v762_v22  ;;  %v720_v60 = vld [vmem:[%s9912_s5 + $0x220] sm:$0xff]  ;;  %v767_v4 = vld [vmem:[%s9912_s5 + $0x398] sm:$0xff]  ;;  %v5572_v22 = vrot.slane %v9583_v33, %v8951_v47 }
0x169f   :  { %v5847_v9 = vadd.f32 %v5846_v5, %v5576_v63  ;;  %v5918_v10 = vadd.f32 %v5917_v6, %v5584_v2  ;;  %7563 = vmatprep.subr.mxu0 %v745_v32  ;;  %7598 = vmatprep.subr.mxu1 %v777_v14  ;;  %v752_v62 = vld [vmem:[%s9912_s5 + $0x320] sm:$0xff]  ;;  %v735_v2 = vld [vmem:[%s9912_s5 + $0x298] sm:$0xff]  ;;  %v5580_v32 = vrot.slane %v9583_v33, %v8954_v48  ;;  %v9660_v5 = vld [vmem:[%s9913_s13 + $0x8] sm:$0xff] }
0x16a0   :  { %7564 = vmatpush3.msra.mxu0 %v729_v3  ;;  %7599 = vmatpush3.msra.mxu1 %v761_v26  ;;  %v719_v3 = vld [vmem:[%s9912_s5 + $0x218] sm:$0xff]  ;;  %v734_v6 = vld [vmem:[%s9912_s5 + $0x290] sm:$0xff] }
0x16a1   :  { %v6209_v11 = vmax.f32 %v5847_v9, 0.0  ;;  %v6211_v15 = vmax.f32 %v5918_v10, 0.0  ;;  %7565 = vmatprep.subr.mxu0 %v744_v7  ;;  %7600 = vmatprep.subr.mxu1 %v776_v8  ;;  %v751_v26 = vld [vmem:[%s9912_s5 + $0x318] sm:$0xff]  ;;  %v766_v7 = vld [vmem:[%s9912_s5 + $0x390] sm:$0xff]  ;;  %v5592_v8 = vrot.slane %v9660_v5, %v8883_v27  ;;  %v5845_v27 = vadd.f32 %v9603_v41, %v5572_v22  ;;  %v805_v22 = vld [vmem:[%s9912_s5 + $0x4c8] sm:$0xff] }
0x16a2   :  { %7566 = vmatpush3.msra.mxu0 %v728_v12  ;;  %7601 = vmatpush3.msra.mxu1 %v760_v13  ;;  %v718_v33 = vld [vmem:[%s9912_s5 + $0x210] sm:$0xff]  ;;  %v5600_v12 = vrot.slane %v9660_v5, %v8886_v28  ;;  %v733_v13 = vld [vmem:[%s9912_s5 + $0x288] sm:$0xff]  ;;  %v732_v28 = vld [vmem:[%s9912_s5 + $0x280] sm:$0xff] }
0x16a3   :  { %6430 = vmatprep.mubr.f32.mxu0 %v6209_v11  ;;  %6500 = vmatprep.mubr.f32.mxu1 %v6211_v15  ;;  %v750_v9 = vld [vmem:[%s9912_s5 + $0x310] sm:$0xff]  ;;  %v765_v11 = vld [vmem:[%s9912_s5 + $0x388] sm:$0xff]  ;;  %v5916_v15 = vadd.f32 %v9605_v61, %v5580_v32  ;;  %v6208_v61 = vmax.f32 %v5845_v27, 0.0 }
0x16a4   :  { %7567 = vmatprep.subr.mxu0 %v743_v1  ;;  %7602 = vmatprep.subr.mxu1 %v775_v16  ;;  %v717_v16 = vld [vmem:[%s9912_s5 + $0x208] sm:$0xff]  ;;  %v834_v27 = vld [vmem:[%s9912_s5 + $0x5b0] sm:$0xff] }
0x16a5   :  { %7568 = vmatpush3.msra.mxu0 %v727_v17  ;;  %7603 = vmatpush3.msra.mxu1 %v759_v18  ;;  %v749_v17 = vld [vmem:[%s9912_s5 + $0x308] sm:$0xff]  ;;  %v764_v18 = vld [vmem:[%s9912_s5 + $0x380] sm:$0xff] }
0x16a6   :  { %7569 = vmatprep.subr.mxu0 %v742_v19  ;;  %7604 = vmatprep.subr.mxu1 %v774_v57  ;;  %v9647_v63 = vpop.f32.mrf.mxu0  ;;  %v9655_v14 = vpop.f32.mrf.mxu1  ;;  %v716_v57 = vld [vmem:[%s9912_s5 + $0x200] sm:$0xff]  ;;  %v837_v32 = vld [vmem:[%s9912_s5 + $0x5c8] sm:$0xff] }
0x16a7   :  { %7570 = vmatpush3.msra.mxu0 %v726_v20  ;;  %7605 = vmatpush3.msra.mxu1 %v758_v23  ;;  %v748_v20 = vld [vmem:[%s9912_s5 + $0x300] sm:$0xff]  ;;  %v6210_v23 = vmax.f32 %v5916_v15, 0.0  ;;  %v786_v15 = vld [vmem:[%s9912_s5 + $0x430] sm:$0xff] }
0x16a8   :  { %7571 = vmatprep.subr.mxu0 %v741_v29  ;;  %7606 = vmatprep.subr.mxu1 %v773_v31  ;;  %v5988_v10 = vpop.f32.mrf.mxu0  ;;  %v6059_v1 = vpop.f32.mrf.mxu1  ;;  %v811_v29 = vld [vmem:[%s9912_s5 + $0x4f8] sm:$0xff] }
0x16a9   :  { %7572 = vmatpush3.msra.mxu0 %v725_v30  ;;  %7607 = vmatpush3.msra.mxu1 %v757_v36  ;;  %v5989_v19 = vadd.f32 %v5988_v10, %v5592_v8  ;;  %v6060_v41 = vadd.f32 %v6059_v1, %v5600_v12  ;;  %v843_v31 = vld [vmem:[%s9912_s5 + $0x5f8] sm:$0xff]  ;;  %v788_v8 = vld [vmem:[%s9912_s5 + $0x440] sm:$0xff]  ;;  %v818_v1 = vld [vmem:[%s9912_s5 + $0x530] sm:$0xff] }
0x16aa   :  { %7573 = vmatprep.subr.mxu0 %v740_v34  ;;  %7608 = vmatprep.subr.mxu1 %v772_v35  ;;  %v795_v30 = vld [vmem:[%s9912_s5 + $0x478] sm:$0xff] }
0x16ab   :  { %7574 = vmatpush3.msra.mxu0 %v724_v37  ;;  %7609 = vmatpush3.msra.mxu1 %v756_v38  ;;  %v6213_v36 = vmax.f32 %v5989_v19, 0.0  ;;  %v827_v34 = vld [vmem:[%s9912_s5 + $0x578] sm:$0xff]  ;;  %v6215_v35 = vmax.f32 %v6060_v41, 0.0  ;;  %v810_v37 = vld [vmem:[%s9912_s5 + $0x4f0] sm:$0xff]  ;;  %v800_v19 = vld [vmem:[%s9912_s5 + $0x4a0] sm:$0xff] }
0x16ac   :  { %7575 = vmatprep.subr.mxu0 %v739_v39  ;;  %7610 = vmatprep.subr.mxu1 %v771_v40  ;;  %v842_v38 = vld [vmem:[%s9912_s5 + $0x5f0] sm:$0xff]  ;;  %v835_v10 = vld [vmem:[%s9912_s5 + $0x5b8] sm:$0xff]  ;;  %v816_v41 = vld [vmem:[%s9912_s5 + $0x520] sm:$0xff] }
0x16ad   :  { %7576 = vmatpush3.msra.mxu0 %v723_v42  ;;  %7611 = vmatpush3.msra.mxu1 %v755_v45  ;;  %v794_v39 = vld [vmem:[%s9912_s5 + $0x470] sm:$0xff]  ;;  %v809_v42 = vld [vmem:[%s9912_s5 + $0x4e8] sm:$0xff]  ;;  %v787_v12 = vld [vmem:[%s9912_s5 + $0x438] sm:$0xff] }
0x16ae   :  { %7577 = vmatprep.subr.mxu0 %v738_v46  ;;  %7612 = vmatprep.subr.mxu1 %v770_v49  ;;  %v826_v40 = vld [vmem:[%s9912_s5 + $0x570] sm:$0xff]  ;;  %v841_v45 = vld [vmem:[%s9912_s5 + $0x5e8] sm:$0xff] }
0x16af   :  { %7578 = vmatpush3.msra.mxu0 %v722_v50  ;;  %7613 = vmatpush3.msra.mxu1 %v754_v51  ;;  %v793_v46 = vld [vmem:[%s9912_s5 + $0x468] sm:$0xff]  ;;  %v808_v50 = vld [vmem:[%s9912_s5 + $0x4e0] sm:$0xff] }
0x16b0   :  { %7579 = vmatprep.subr.mxu0 %v737_v52  ;;  %7614 = vmatprep.subr.mxu1 %v769_v53  ;;  %v825_v49 = vld [vmem:[%s9912_s5 + $0x568] sm:$0xff]  ;;  %v840_v51 = vld [vmem:[%s9912_s5 + $0x5e0] sm:$0xff] }
0x16b1   :  { %7580 = vmatpush3.msra.mxu0 %v721_v54  ;;  %7615 = vmatpush3.msra.mxu1 %v753_v55  ;;  %v792_v52 = vld [vmem:[%s9912_s5 + $0x460] sm:$0xff]  ;;  %v807_v54 = vld [vmem:[%s9912_s5 + $0x4d8] sm:$0xff] }
0x16b2   :  { %7581 = vmatprep.subr.mxu0 %v736_v56  ;;  %7616 = vmatprep.subr.mxu1 %v768_v59  ;;  %v824_v53 = vld [vmem:[%s9912_s5 + $0x560] sm:$0xff]  ;;  %v839_v55 = vld [vmem:[%s9912_s5 + $0x5d8] sm:$0xff] }
0x16b3   :  { %7582 = vmatpush3.msra.mxu0 %v720_v60  ;;  %7617 = vmatpush3.msra.mxu1 %v752_v62  ;;  %v791_v56 = vld [vmem:[%s9912_s5 + $0x458] sm:$0xff]  ;;  %v806_v60 = vld [vmem:[%s9912_s5 + $0x4d0] sm:$0xff] }
0x16b4   :  { %7583 = vmatprep.subr.mxu0 %v735_v2  ;;  %7618 = vmatprep.subr.mxu1 %v767_v4  ;;  %v823_v59 = vld [vmem:[%s9912_s5 + $0x558] sm:$0xff]  ;;  %v838_v62 = vld [vmem:[%s9912_s5 + $0x5d0] sm:$0xff] }
0x16b5   :  { %7584 = vmatpush3.msra.mxu0 %v719_v3  ;;  %7619 = vmatpush3.msra.mxu1 %v751_v26  ;;  %v790_v2 = vld [vmem:[%s9912_s5 + $0x450] sm:$0xff]  ;;  %v789_v3 = vld [vmem:[%s9912_s5 + $0x448] sm:$0xff] }
0x16b6   :  { %7585 = vmatprep.subr.mxu0 %v734_v6  ;;  %7620 = vmatprep.subr.mxu1 %v766_v7  ;;  %v822_v4 = vld [vmem:[%s9912_s5 + $0x550] sm:$0xff]  ;;  %v821_v26 = vld [vmem:[%s9912_s5 + $0x548] sm:$0xff]  ;;  %v804_v6 = vld [vmem:[%s9912_s5 + $0x4c0] sm:$0xff] }
0x16b7   :  { %7586 = vmatpush3.msra.mxu0 %v718_v33  ;;  %7621 = vmatpush3.msra.mxu1 %v750_v9  ;;  %v836_v7 = vld [vmem:[%s9912_s5 + $0x5c0] sm:$0xff]  ;;  %v803_v9 = vld [vmem:[%s9912_s5 + $0x4b8] sm:$0xff] }
0x16b8   :  { %7587 = vmatprep.subr.mxu0 %v733_v13  ;;  %7622 = vmatprep.subr.mxu1 %v765_v11  ;;  %v820_v33 = vld [vmem:[%s9912_s5 + $0x540] sm:$0xff]  ;;  %v819_v13 = vld [vmem:[%s9912_s5 + $0x538] sm:$0xff]  ;;  %v802_v11 = vld [vmem:[%s9912_s5 + $0x4b0] sm:$0xff] }
0x16b9   :  { %7588 = vmatpush3.msra.mxu0 %v717_v16  ;;  %7623 = vmatpush3.msra.mxu1 %v749_v17  ;;  %v801_v16 = vld [vmem:[%s9912_s5 + $0x4a8] sm:$0xff] }
0x16ba   :  { %7589 = vmatprep.subr.mxu0 %v732_v28  ;;  %7624 = vmatprep.subr.mxu1 %v764_v18  ;;  %v833_v17 = vld [vmem:[%s9912_s5 + $0x5a8] sm:$0xff] }
0x16bb   :  { %7590 = vmatpush3.msra.mxu0 %v716_v57  ;;  %7625 = vmatpush3.msra.mxu1 %v748_v20  ;;  %v785_v28 = vld [vmem:[%s9912_s5 + $0x428] sm:$0xff]  ;;  %v832_v57 = vld [vmem:[%s9912_s5 + $0x5a0] sm:$0xff] }
0x16bc   :  { %6431 = vmatmul.mubr.f32.vlgmr.msra.gmra.mxu0 %v6208_v61  ;;  %6501 = vmatmul.mubr.f32.vlgmr.msra.gmra.mxu1 %v6210_v23  ;;  %v817_v18 = vld [vmem:[%s9912_s5 + $0x528] sm:$0xff]  ;;  %v784_v20 = vld [vmem:[%s9912_s5 + $0x420] sm:$0xff]  ;;  %v9728_v61 = vpop.f32.mrf.mxu0  ;;  %v799_v23 = vld [vmem:[%s9912_s5 + $0x498] sm:$0xff] }
0x16bd   :  { %7629 = vmatprep.subr.mxu0 %v811_v29  ;;  %7664 = vmatprep.subr.mxu1 %v843_v31  ;;  %v831_v29 = vld [vmem:[%s9912_s5 + $0x598] sm:$0xff]  ;;  %v5588_v31 = vrot.slane %v9660_v5, %v8874_v24  ;;  %v782_v24 = vld [vmem:[%s9912_s5 + $0x410] sm:$0xff] }
0x16be   :  { %7630 = vmatpush3.msra.mxu0 %v795_v30  ;;  %6570 = vmatprep.mubr.f32.mxu0 %v6213_v36  ;;  %v5596_v30 = vrot.slane %v9660_v5, %v8877_v25  ;;  %v9736_v36 = vpop.f32.mrf.mxu1  ;;  %v814_v25 = vld [vmem:[%s9912_s5 + $0x510] sm:$0xff] }
0x16bf   :  { %7665 = vmatpush3.msra.mxu1 %v827_v34  ;;  %6640 = vmatprep.mubr.f32.mxu1 %v6215_v35  ;;  %v783_v34 = vld [vmem:[%s9912_s5 + $0x418] sm:$0xff] }
0x16c0   :  { %7631 = vmatprep.subr.mxu0 %v810_v37  ;;  %7666 = vmatprep.subr.mxu1 %v842_v38  ;;  %v815_v35 = vld [vmem:[%s9912_s5 + $0x518] sm:$0xff]  ;;  %v798_v37 = vld [vmem:[%s9912_s5 + $0x490] sm:$0xff] }
0x16c1   :  { %7632 = vmatpush3.msra.mxu0 %v794_v39  ;;  %7667 = vmatpush3.msra.mxu1 %v826_v40  ;;  %v830_v38 = vld [vmem:[%s9912_s5 + $0x590] sm:$0xff]  ;;  %v5608_v39 = vrot.slane %v9660_v5, %v8897_v43  ;;  %v6130_v40 = vpop.f32.mrf.mxu0  ;;  %v5987_v43 = vadd.f32 %v9647_v63, %v5588_v31  ;;  %v868_v31 = vld [vmem:[%s9912_s5 + $0x6c0] sm:$0xff] }
0x16c2   :  { %7633 = vmatprep.subr.mxu0 %v809_v42  ;;  %7668 = vmatprep.subr.mxu1 %v841_v45  ;;  %v5616_v42 = vrot.slane %v9660_v5, %v8900_v44  ;;  %v797_v45 = vld [vmem:[%s9912_s5 + $0x488] sm:$0xff]  ;;  %v796_v44 = vld [vmem:[%s9912_s5 + $0x480] sm:$0xff] }
0x16c3   :  { %7634 = vmatpush3.msra.mxu0 %v793_v46  ;;  %7669 = vmatpush3.msra.mxu1 %v825_v49  ;;  %v829_v46 = vld [vmem:[%s9912_s5 + $0x588] sm:$0xff]  ;;  %v6058_v49 = vadd.f32 %v9655_v14, %v5596_v30  ;;  %v6212_v14 = vmax.f32 %v5987_v43, 0.0  ;;  %v900_v30 = vld [vmem:[%s9912_s5 + $0x7c0] sm:$0xff] }
0x16c4   :  { %7635 = vmatprep.subr.mxu0 %v808_v50  ;;  %7670 = vmatprep.subr.mxu1 %v840_v51  ;;  %v6201_v50 = vpop.f32.mrf.mxu1  ;;  %v781_v51 = vld [vmem:[%s9912_s5 + $0x408] sm:$0xff] }
0x16c5   :  { %7636 = vmatpush3.msra.mxu0 %v792_v52  ;;  %7671 = vmatpush3.msra.mxu1 %v824_v53  ;;  %v813_v52 = vld [vmem:[%s9912_s5 + $0x508] sm:$0xff]  ;;  %v828_v53 = vld [vmem:[%s9912_s5 + $0x580] sm:$0xff]  ;;  %v6202_v63 = vadd.f32 %v6201_v50, %v5616_v42  ;;  %v850_v42 = vld [vmem:[%s9912_s5 + $0x630] sm:$0xff] }
0x16c6   :  { %7637 = vmatprep.subr.mxu0 %v807_v54  ;;  %7672 = vmatprep.subr.mxu1 %v839_v55  ;;  %v6131_v54 = vadd.f32 %v6130_v40, %v5608_v39  ;;  %v780_v55 = vld [vmem:[%s9912_s5 + $0x400] sm:$0xff]  ;;  %v851_v39 = vld [vmem:[%s9912_s5 + $0x638] sm:$0xff]  ;;  %v898_v40 = vld [vmem:[%s9912_s5 + $0x7b0] sm:$0xff] }
0x16c7   :  { %7638 = vmatpush3.msra.mxu0 %v791_v56  ;;  %7673 = vmatpush3.msra.mxu1 %v823_v59  ;;  %v812_v56 = vld [vmem:[%s9912_s5 + $0x500] sm:$0xff]  ;;  %v6214_v59 = vmax.f32 %v6058_v49, 0.0  ;;  %v897_v43 = vld [vmem:[%s9912_s5 + $0x7a8] sm:$0xff] }
0x16c8   :  { %7639 = vmatprep.subr.mxu0 %v806_v60  ;;  %7674 = vmatprep.subr.mxu1 %v838_v62  ;;  %v875_v60 = vld [vmem:[%s9912_s5 + $0x6f8] sm:$0xff]  ;;  %v849_v49 = vld [vmem:[%s9912_s5 + $0x628] sm:$0xff] }
0x16c9   :  { %7640 = vmatpush3.msra.mxu0 %v790_v2  ;;  %7675 = vmatpush3.msra.mxu1 %v822_v4  ;;  %v907_v62 = vld [vmem:[%s9912_s5 + $0x7f8] sm:$0xff]  ;;  %v6217_v4 = vmax.f32 %v6131_v54, 0.0  ;;  %v881_v50 = vld [vmem:[%s9912_s5 + $0x728] sm:$0xff] }
0x16ca   :  { %7641 = vmatprep.subr.mxu0 %v805_v22  ;;  %7676 = vmatprep.subr.mxu1 %v837_v32  ;;  %v859_v2 = vld [vmem:[%s9912_s5 + $0x678] sm:$0xff]  ;;  %v6219_v32 = vmax.f32 %v6202_v63, 0.0  ;;  %v5612_v63 = vrot.slane %v9660_v5, %v8954_v48  ;;  %v861_v48 = vld [vmem:[%s9912_s5 + $0x688] sm:$0xff] }
0x16cb   :  { %7642 = vmatpush3.msra.mxu0 %v789_v3  ;;  %7677 = vmatpush3.msra.mxu1 %v821_v26  ;;  %v891_v22 = vld [vmem:[%s9912_s5 + $0x778] sm:$0xff]  ;;  %v874_v3 = vld [vmem:[%s9912_s5 + $0x6f0] sm:$0xff] }
0x16cc   :  { %7643 = vmatprep.subr.mxu0 %v804_v6  ;;  %7678 = vmatprep.subr.mxu1 %v836_v7  ;;  %v906_v26 = vld [vmem:[%s9912_s5 + $0x7f0] sm:$0xff]  ;;  %v863_v54 = vld [vmem:[%s9912_s5 + $0x698] sm:$0xff] }
0x16cd   :  { %7644 = vmatpush3.msra.mxu0 %v788_v8  ;;  %7679 = vmatpush3.msra.mxu1 %v820_v33  ;;  %v858_v6 = vld [vmem:[%s9912_s5 + $0x670] sm:$0xff]  ;;  %v873_v8 = vld [vmem:[%s9912_s5 + $0x6e8] sm:$0xff] }
0x16ce   :  { %7645 = vmatprep.subr.mxu0 %v803_v9  ;;  %7680 = vmatprep.subr.mxu1 %v835_v10  ;;  %v890_v7 = vld [vmem:[%s9912_s5 + $0x770] sm:$0xff]  ;;  %v905_v33 = vld [vmem:[%s9912_s5 + $0x7e8] sm:$0xff] }
0x16cf   :  { %7646 = vmatpush3.msra.mxu0 %v787_v12  ;;  %7681 = vmatpush3.msra.mxu1 %v819_v13  ;;  %v857_v9 = vld [vmem:[%s9912_s5 + $0x668] sm:$0xff]  ;;  %v872_v12 = vld [vmem:[%s9912_s5 + $0x6e0] sm:$0xff] }
0x16d0   :  { %7647 = vmatprep.subr.mxu0 %v802_v11  ;;  %7682 = vmatprep.subr.mxu1 %v834_v27  ;;  %v889_v10 = vld [vmem:[%s9912_s5 + $0x768] sm:$0xff]  ;;  %v904_v13 = vld [vmem:[%s9912_s5 + $0x7e0] sm:$0xff] }
0x16d1   :  { %7648 = vmatpush3.msra.mxu0 %v786_v15  ;;  %7683 = vmatpush3.msra.mxu1 %v818_v1  ;;  %v856_v11 = vld [vmem:[%s9912_s5 + $0x660] sm:$0xff]  ;;  %v871_v15 = vld [vmem:[%s9912_s5 + $0x6d8] sm:$0xff] }
0x16d2   :  { %7649 = vmatprep.subr.mxu0 %v801_v16  ;;  %7684 = vmatprep.subr.mxu1 %v833_v17  ;;  %v888_v27 = vld [vmem:[%s9912_s5 + $0x760] sm:$0xff]  ;;  %v903_v1 = vld [vmem:[%s9912_s5 + $0x7d8] sm:$0xff] }
0x16d3   :  { %7650 = vmatpush3.msra.mxu0 %v785_v28  ;;  %7685 = vmatpush3.msra.mxu1 %v817_v18  ;;  %v855_v16 = vld [vmem:[%s9912_s5 + $0x658] sm:$0xff]  ;;  %v870_v28 = vld [vmem:[%s9912_s5 + $0x6d0] sm:$0xff] }
0x16d4   :  { %7651 = vmatprep.subr.mxu0 %v800_v19  ;;  %7686 = vmatprep.subr.mxu1 %v832_v57  ;;  %v887_v17 = vld [vmem:[%s9912_s5 + $0x758] sm:$0xff]  ;;  %v902_v18 = vld [vmem:[%s9912_s5 + $0x7d0] sm:$0xff] }
0x16d5   :  { %7652 = vmatpush3.msra.mxu0 %v784_v20  ;;  %7687 = vmatpush3.msra.mxu1 %v816_v41  ;;  %v854_v19 = vld [vmem:[%s9912_s5 + $0x650] sm:$0xff]  ;;  %v869_v20 = vld [vmem:[%s9912_s5 + $0x6c8] sm:$0xff] }
0x16d6   :  { %7653 = vmatprep.subr.mxu0 %v799_v23  ;;  %7688 = vmatprep.subr.mxu1 %v831_v29  ;;  %v886_v57 = vld [vmem:[%s9912_s5 + $0x750] sm:$0xff]  ;;  %v901_v41 = vld [vmem:[%s9912_s5 + $0x7c8] sm:$0xff] }
0x16d7   :  { %7654 = vmatpush3.msra.mxu0 %v783_v34  ;;  %7689 = vmatpush3.msra.mxu1 %v815_v35  ;;  %v853_v23 = vld [vmem:[%s9912_s5 + $0x648] sm:$0xff]  ;;  %v852_v34 = vld [vmem:[%s9912_s5 + $0x640] sm:$0xff] }
0x16d8   :  { %7655 = vmatprep.subr.mxu0 %v798_v37  ;;  %7690 = vmatprep.subr.mxu1 %v830_v38  ;;  %v885_v29 = vld [vmem:[%s9912_s5 + $0x748] sm:$0xff]  ;;  %v884_v35 = vld [vmem:[%s9912_s5 + $0x740] sm:$0xff]  ;;  %v867_v37 = vld [vmem:[%s9912_s5 + $0x6b8] sm:$0xff] }
0x16d9   :  { %7656 = vmatpush3.msra.mxu0 %v782_v24  ;;  %7691 = vmatpush3.msra.mxu1 %v814_v25  ;;  %v899_v38 = vld [vmem:[%s9912_s5 + $0x7b8] sm:$0xff]  ;;  %v866_v25 = vld [vmem:[%s9912_s5 + $0x6b0] sm:$0xff] }
0x16da   :  { %7657 = vmatprep.subr.mxu0 %v797_v45  ;;  %7692 = vmatprep.subr.mxu1 %v829_v46  ;;  %v883_v24 = vld [vmem:[%s9912_s5 + $0x738] sm:$0xff]  ;;  %v882_v45 = vld [vmem:[%s9912_s5 + $0x730] sm:$0xff]  ;;  %v865_v46 = vld [vmem:[%s9912_s5 + $0x6a8] sm:$0xff] }
0x16db   :  { %7658 = vmatpush3.msra.mxu0 %v781_v51  ;;  %7693 = vmatpush3.msra.mxu1 %v813_v52  ;;  %v864_v51 = vld [vmem:[%s9912_s5 + $0x6a0] sm:$0xff] }
0x16dc   :  { %7659 = vmatprep.subr.mxu0 %v796_v44  ;;  %7694 = vmatprep.subr.mxu1 %v828_v53  ;;  %v896_v52 = vld [vmem:[%s9912_s5 + $0x7a0] sm:$0xff] }
0x16dd   :  { %7660 = vmatpush3.msra.mxu0 %v780_v55  ;;  %7695 = vmatpush3.msra.mxu1 %v812_v56  ;;  %v848_v44 = vld [vmem:[%s9912_s5 + $0x620] sm:$0xff]  ;;  %v895_v55 = vld [vmem:[%s9912_s5 + $0x798] sm:$0xff]  ;;  %v5604_v56 = vrot.slane %v9660_v5, %v8951_v47  ;;  %v846_v47 = vld [vmem:[%s9912_s5 + $0x610] sm:$0xff] }
0x16de   :  { %6571 = vmatmul.mubr.f32.vlgmr.msra.gmra.mxu0 %v6212_v14  ;;  %6641 = vmatmul.mubr.f32.vlgmr.msra.gmra.mxu1 %v6214_v59  ;;  %v880_v53 = vld [vmem:[%s9912_s5 + $0x720] sm:$0xff]  ;;  %v847_v14 = vld [vmem:[%s9912_s5 + $0x618] sm:$0xff]  ;;  %v893_v5 = vld [vmem:[%s9912_s5 + $0x788] sm:$0xff] }
0x16df   :  { %7699 = vmatprep.subr.mxu0 %v875_v60  ;;  %7734 = vmatprep.subr.mxu1 %v907_v62  ;;  %v879_v59 = vld [vmem:[%s9912_s5 + $0x718] sm:$0xff]  ;;  %v862_v60 = vld [vmem:[%s9912_s5 + $0x690] sm:$0xff] }
0x16e0   :  { %7700 = vmatpush3.msra.mxu0 %v859_v2  ;;  %6710 = vmatprep.mubr.f32.mxu0 %v6217_v4  ;;  %v894_v62 = vld [vmem:[%s9912_s5 + $0x790] sm:$0xff]  ;;  %v6129_v4 = vadd.f32 %v9728_v61, %v5604_v56 }
0x16e1   :  { %7735 = vmatpush3.msra.mxu1 %v891_v22  ;;  %6780 = vmatprep.mubr.f32.mxu1 %v6219_v32  ;;  %v878_v2 = vld [vmem:[%s9912_s5 + $0x710] sm:$0xff]  ;;  %v6200_v22 = vadd.f32 %v9736_v36, %v5612_v63  ;;  %v845_v32 = vld [vmem:[%s9912_s5 + $0x608] sm:$0xff] }
0x16e2   :  { %7701 = vmatprep.subr.mxu0 %v874_v3  ;;  %7736 = vmatprep.subr.mxu1 %v906_v26  ;;  %v877_v3 = vld [vmem:[%s9912_s5 + $0x708] sm:$0xff]  ;;  %v860_v26 = vld [vmem:[%s9912_s5 + $0x680] sm:$0xff] }
0x16e3   :  { %7702 = vmatpush3.msra.mxu0 %v858_v6  ;;  %7737 = vmatpush3.msra.mxu1 %v890_v7  ;;  %v892_v6 = vld [vmem:[%s9912_s5 + $0x780] sm:$0xff] }
0x16e4   :  { %7703 = vmatprep.subr.mxu0 %v873_v8  ;;  %7738 = vmatprep.subr.mxu1 %v905_v33  ;;  %v844_v7 = vld [vmem:[%s9912_s5 + $0x600] sm:$0xff]  ;;  %v6216_v33 = vmax.f32 %v6129_v4, 0.0 }
0x16e5   :  { %7704 = vmatpush3.msra.mxu0 %v857_v9  ;;  %7739 = vmatpush3.msra.mxu1 %v889_v10  ;;  %v876_v8 = vld [vmem:[%s9912_s5 + $0x700] sm:$0xff]  ;;  %v6218_v9 = vmax.f32 %v6200_v22, 0.0 }
0x16e6   :  { %7705 = vmatprep.subr.mxu0 %v872_v12  ;;  %7740 = vmatprep.subr.mxu1 %v904_v13 }
0x16e7   :  { %7706 = vmatpush3.msra.mxu0 %v856_v11  ;;  %7741 = vmatpush3.msra.mxu1 %v888_v27  ;;  %v7087_v11 = vld [vmem:[%s9914_s17] ss:$0 sm:$0xff] }
0x16e8   :  { %7707 = vmatprep.subr.mxu0 %v871_v15  ;;  %7742 = vmatprep.subr.mxu1 %v903_v1 }
0x16e9   :  { %7708 = vmatpush3.msra.mxu0 %v855_v16  ;;  %7743 = vmatpush3.msra.mxu1 %v887_v17 }
0x16ea   :  { %7709 = vmatprep.subr.mxu0 %v870_v28  ;;  %7744 = vmatprep.subr.mxu1 %v902_v18 }
0x16eb   :  { %7710 = vmatpush3.msra.mxu0 %v854_v19  ;;  %7745 = vmatpush3.msra.mxu1 %v886_v57 }
0x16ec   :  { %7711 = vmatprep.subr.mxu0 %v869_v20  ;;  %7746 = vmatprep.subr.mxu1 %v901_v41 }
0x16ed   :  { %7712 = vmatpush3.msra.mxu0 %v853_v23  ;;  %7747 = vmatpush3.msra.mxu1 %v885_v29 }
0x16ee   :  { %7713 = vmatprep.subr.mxu0 %v868_v31  ;;  %7748 = vmatprep.subr.mxu1 %v900_v30 }
0x16ef   :  { %7714 = vmatpush3.msra.mxu0 %v852_v34  ;;  %7749 = vmatpush3.msra.mxu1 %v884_v35 }
0x16f0   :  { %7715 = vmatprep.subr.mxu0 %v867_v37  ;;  %7750 = vmatprep.subr.mxu1 %v899_v38 }
0x16f1   :  { %7716 = vmatpush3.msra.mxu0 %v851_v39  ;;  %7751 = vmatpush3.msra.mxu1 %v883_v24 }
0x16f2   :  { %7717 = vmatprep.subr.mxu0 %v866_v25  ;;  %7752 = vmatprep.subr.mxu1 %v898_v40 }
0x16f3   :  { %7718 = vmatpush3.msra.mxu0 %v850_v42  ;;  %7753 = vmatpush3.msra.mxu1 %v882_v45 }
0x16f4   :  { %7719 = vmatprep.subr.mxu0 %v865_v46  ;;  %7754 = vmatprep.subr.mxu1 %v897_v43 }
0x16f5   :  { %7720 = vmatpush3.msra.mxu0 %v849_v49  ;;  %7755 = vmatpush3.msra.mxu1 %v881_v50 }
0x16f6   :  { %7721 = vmatprep.subr.mxu0 %v864_v51  ;;  %7756 = vmatprep.subr.mxu1 %v896_v52 }
0x16f7   :  { %7722 = vmatpush3.msra.mxu0 %v848_v44  ;;  %7757 = vmatpush3.msra.mxu1 %v880_v53 }
0x16f8   :  { %7723 = vmatprep.subr.mxu0 %v863_v54  ;;  %7758 = vmatprep.subr.mxu1 %v895_v55 }
0x16f9   :  { %7724 = vmatpush3.msra.mxu0 %v847_v14  ;;  %7759 = vmatpush3.msra.mxu1 %v879_v59  ;;  %v7088_v59 = vld [vmem:[%s9915_s21] ss:$0 sm:$0xff] }
0x16fa   :  { %7725 = vmatprep.subr.mxu0 %v862_v60  ;;  %7760 = vmatprep.subr.mxu1 %v894_v62  ;;  %v7089_v60 = vld [vmem:[%s9916_s25] ss:$0 sm:$0xff] }
0x16fb   :  { %7726 = vmatpush3.msra.mxu0 %v846_v47  ;;  %7761 = vmatpush3.msra.mxu1 %v878_v2 }
0x16fc   :  { %7727 = vmatprep.subr.mxu0 %v861_v48  ;;  %7762 = vmatprep.subr.mxu1 %v893_v5 }
0x16fd   :  { %7728 = vmatpush3.msra.mxu0 %v845_v32  ;;  %7763 = vmatpush3.msra.mxu1 %v877_v3  ;;  %v920_v3 = vld [vmem:[%s8545_s27 + $0x18] sm:$0xff] }
0x16fe   :  { %7729 = vmatprep.subr.mxu0 %v860_v26  ;;  %7764 = vmatprep.subr.mxu1 %v892_v6  ;;  %v919_v26 = vld [vmem:[%s8545_s27 + $0x10] sm:$0xff]  ;;  %v918_v6 = vld [vmem:[%s8545_s27 + $0x8] sm:$0xff] }
0x16ff   :  { %7730 = vmatpush3.msra.mxu0 %v844_v7  ;;  %7765 = vmatpush3.msra.mxu1 %v876_v8  ;;  %v917_v7 = vld [vmem:[%s8545_s27] sm:$0xff]  ;;  %s8326_s27 = smov [#allocation8]  }
0x1700   :  { %6711 = vmatmul.mubr.f32.vlgmr.msra.gmra.mxu0 %v6216_v33  ;;  %6781 = vmatmul.mubr.f32.vlgmr.msra.gmra.mxu1 %v6218_v9  ;;  %s6946_s3 = sshll.u32 %s8326_s27, 4  ;;  %s6947_s3 = int_to_ptr.vmem [resolvable:$true] %s6946_s3 }
0x1701   :  { %8041 = vmatprep.subr.mxu0 %v8316_v0  ;;  %8049 = vmatprep.mubr.msk.f32.mxu0 %vm8317_vm0, %v8316_v0  ;;  %s8242_s8 = scalar_lea.vmem %s6947_s3, 128  ;;  %p8247_p2 = scmp.lt.s32.totalorder %s6947_s3, %s6947_s3 }
0x1702   :  { %8042 = vmatpush3.msra.mxu0 %v920_v3  ;;  %p8243_p1 = scmp.ne.s32.totalorder %s6947_s3, %s8242_s8  ;;  %p8248_p3 = scmp.lt.s32.totalorder %s8242_s8, %s8242_s8 }
0x1703   :  { %8043 = vmatprep.subr.mxu0 %v8316_v0 }
0x1704   :  { %8044 = vmatpush3.msra.mxu0 %v919_v26  ;;  %p8249_p4 = por %p8248_p3, %p8247_p2 }
0x1705   :  { %8045 = vmatprep.subr.mxu0 %v8316_v0 }
0x1706   :  { %8046 = vmatpush3.msra.mxu0 %v918_v6  ;;  %p8250_p5 = pnand %p8249_p4, %p8243_p1 }
0x1707   :  { %8047 = vmatprep.subr.mxu0 %v8316_v0 }
0x1708   :  { %8048 = vmatpush3.msra.mxu0 %v917_v7 }
0x175b   :  { %v7521_v61 = vpop.f32.mrf.mxu0  ;;  %v7556_v10 = vpop.f32.mrf.mxu1 }
0x175d   :  { %v7522_v36 = vpop.f32.mrf.mxu0  ;;  %v7557_v27 = vpop.f32.mrf.mxu1 }
0x175e   :  { %v7523_v13 = vadd.f32 %v7522_v36, %v7521_v61  ;;  %v7558_v28 = vadd.f32 %v7557_v27, %v7556_v10  ;;  %v7090_v36 = vld [vmem:[%s9917_s29] ss:$0 sm:$0xff]  ;;  %v7092_v27 = vld [vmem:[#allocation5] ss:$0 sm:$0xff] }
0x1760   :  { %v6293_v1 = vadd.f32 %v7523_v13, %v7087_v11 }
0x1762   :  { %v6363_v19 = vadd.f32 %v7558_v28, %v6293_v1 }
0x177c   :  { %v7591_v12 = vpop.f32.mrf.mxu0  ;;  %v7626_v16 = vpop.f32.mrf.mxu1 }
0x177e   :  { %v7592_v15 = vpop.f32.mrf.mxu0  ;;  %v7627_v57 = vpop.f32.mrf.mxu1 }
0x177f   :  { %v7593_v18 = vadd.f32 %v7592_v15, %v7591_v12  ;;  %v7628_v29 = vadd.f32 %v7627_v57, %v7626_v16  ;;  %v7091_v12 = vld [vmem:[#allocation2] ss:$0 sm:$0xff] }
0x1781   :  { %v6433_v41 = vadd.f32 %v7593_v18, %v6363_v19  ;;  %v6921_v19 = vand.u32 127, %v2199_v21 }
0x1783   :  { %v6503_v30 = vadd.f32 %v7628_v29, %v6433_v41  ;;  %vm6922_vm5 = vcmp.lt.s32.totalorder %v6921_v19, 8  ;;  %v7094_v41 = vld [vmem:[#allocation7] ss:$0 sm:$0xff] }
0x179e   :  { %v7661_v17 = vpop.f32.mrf.mxu0  ;;  %v7696_v23 = vpop.f32.mrf.mxu1 }
0x17a0   :  { %v7662_v20 = vpop.f32.mrf.mxu0  ;;  %v7697_v34 = vpop.f32.mrf.mxu1 }
0x17a1   :  { %v7663_v31 = vadd.f32 %v7662_v20, %v7661_v17  ;;  %v7698_v39 = vadd.f32 %v7697_v34, %v7696_v23 }
0x17a3   :  { %v6573_v35 = vadd.f32 %v7663_v31, %v6503_v30 }
0x17a5   :  { %v6643_v40 = vadd.f32 %v7698_v39, %v6573_v35 }
0x17c0   :  { %v7731_v37 = vpop.f32.mrf.mxu0  ;;  %v7766_v38 = vpop.f32.mrf.mxu1 }
0x17c2   :  { %v7732_v24 = vpop.f32.mrf.mxu0  ;;  %v7767_v25 = vpop.f32.mrf.mxu1 }
0x17c3   :  { %v7733_v42 = vadd.f32 %v7732_v24, %v7731_v37  ;;  %v7768_v46 = vadd.f32 %v7767_v25, %v7766_v38 }
0x17c5   :  { %v6713_v45 = vadd.f32 %v7733_v42, %v6643_v40 }
0x17c7   :  { %v6783_v43 = vadd.f32 %v7768_v46, %v6713_v45 }
0x17c9   :  { %v6786_v49 = vadd.f32 %v6783_v43, %v9446_v58 }
0x17cb   :  { %v6787_v50 = vsel %vm1167_vm2, %v6786_v49, 0.0 }
0x17cc   :  { %6788 = vadd.xlane.f32.xlu0 %v6787_v50 }
0x1855   :  { %v6789_v51 = vpop.xlane.xlu0 %6788 }
0x1856   :  { %v6790_v52 = vmul.f32 0.03125, %v6789_v51 }
0x1858   :  { %v6791_v44 = vsub.f32 %v6786_v49, %v6790_v52 }
0x185a   :  { %v6792_v53 = vmul.f32 %v6791_v44, %v6791_v44 }
0x185c   :  { %v6793_v54 = vsel %vm1167_vm2, %v6792_v53, 0.0 }
0x185d   :  { %6794 = vadd.xlane.f32.xlu0 %v6793_v54 }
0x18e6   :  { %v6795_v55 = vpop.xlane.xlu0 %6794 }
0x18e7   :  { %v6796_v56 = vmul.f32 0.03125, %v6795_v55 }
0x18e9   :  { %v6797_v63 = vadd.f32 1e-05, %v6796_v56 }
0x18eb   :  { %8169 = vrsqrt.f32 %v6797_v63 }
0x18f8   :  { %v8170_v14 = vpop.eup %8169 }
0x18f9   :  { %v6799_v58 = vmul.f32 %v8170_v14, %v6791_v44 }
0x18fb   :  { %v6806_v62 = vmul.f32 %v7088_v59, %v6799_v58 }
0x18fd   :  { %v6813_v47 = vadd.f32 %v7089_v60, %v6806_v62 }
0x18ff   :  { %v6814_v2 = vsel %vm1167_vm2, %v6813_v47, 0.0 }
0x1900   :  { %6815 = vadd.xlane.f32.xlu1 %v6814_v2 }
0x1989   :  { %v6816_v48 = vpop.xlane.xlu1 %6815 }
0x198a   :  { %v6817_v5 = vmul.f32 0.03125, %v6816_v48 }
0x198c   :  { %v6818_v4 = vsub.f32 %v6813_v47, %v6817_v5 }
0x198e   :  { %v6819_v22 = vmul.f32 %v6818_v4, %v6818_v4 }
0x1990   :  { %v6820_v32 = vsel %vm1167_vm2, %v6819_v22, 0.0 }
0x1991   :  { %6821 = vadd.xlane.f32.xlu0 %v6820_v32 }
0x1a1a   :  { %v6822_v8 = vpop.xlane.xlu0 %6821 }
0x1a1b   :  { %v6823_v33 = vmul.f32 0.03125, %v6822_v8 }
0x1a1d   :  { %v6824_v9 = vadd.f32 1e-05, %v6823_v33 }
0x1a1f   :  { %8171 = vrsqrt.f32 %v6824_v9 }
0x1a2c   :  { %v8172_v61 = vpop.eup %8171 }
0x1a2d   :  { %v6826_v10 = vmul.f32 %v8172_v61, %v6818_v4 }
0x1a2f   :  { %v6833_v13 = vmul.f32 %v7090_v36, %v6826_v10 }
0x1a31   :  { %v6840_v11 = vadd.f32 %v7091_v12, %v6833_v13 }
0x1a33   :  { %8050 = vmatmul.mubr.msk.f32.vlgmr.msra.gmra.mxu0 %vm1167_vm2, %v6840_v11 }
0x1af3   :  { %v6916_v15 = vpop.f32.mrf.mxu0 }
0x1af4   :  { %v6917_v1 = vadd.f32 %v7092_v27, %v6916_v15 }
0x1af5   :  { %v8051_v16 = vpop.f32.mrf.mxu0 }
0x1af6   :  { %v6924_v17 = vmin.f32 %v6917_v1, 20.0  ;;  %vm6923_vm6 = vcmp.gt.f32.partialorder %v6917_v1, 20.0 }
0x1af8   :  { %v6925_v28 = vmul.f32 1.442695, %v6924_v17 }
0x1afa   :  { %8173 = vpow2.f32 %v6925_v28 }
0x1b07   :  { %v8174_v0 = vpop.eup %8173 }
0x1b08   :  { %v6927_v18 = vadd.f32 1.0, %v8174_v0 }
0x1b0a   :  { %8175 = vlog2.f32 %v6927_v18 }
0x1b17   :  { %v8176_v57 = vpop.eup %8175 }
0x1b18   :  { %v6929_v20 = vmul.f32 0.6931472, %v8176_v57 }
0x1b1a   :  { %v6930_v23 = vsel %vm6923_vm6, %v6917_v1, %v6929_v20 }
0x1b1b   :  { %v6931_v29 = vsel %vm6922_vm5, %v6930_v23, %v6917_v1 }
0x1b1c   :  { %v6938_v31 = vadd.f32 %v7094_v41, %v6931_v29 }
0x1b1e   :  { %6939 = vst.msk [vmem:[#allocation8] sm:$0xff] %vm2085_vm3, %v6938_v31 }
0x1b1f   :  { %8253 = shalt.err (!%p8250_p5)
}
0x1b20   :  { %6949 = dma.vmem_to_hbm [thread:$0]  %s6947_s3, 128, %s8558_s6, [#allocation4]  }
0x1b21   :  { %8266 = dma.done.wait [#allocation4], 128  }
0x1b22   :  { %8267 = vsyncadd [#allocation4], 4294967168 }
0x1b23   :  { %6953 = vsyncpa [#allocation3], 1 }
0x1b24   :  { %6954 = vsyncpa [#allocation6], 1 }
0x1b25   :  { %6955 = vsyncpa [#allocation4], 1 }

</bundles_post_ra>
